<compile_context>
chip_gen: v7x
topology: tpu7x:2x2x1
jax: 0.10.0
libtpu: 0.0.40
codegen_flags: <defaults>
</compile_context>

<pallas_src>
import math
from functools import partial

import numpy as np
import jax
import jax.numpy as jnp
from jax import lax
from jax.experimental import pallas as pl
from jax.experimental.pallas import tpu as pltpu

# ----------------------- module hyper-parameters (small) --------------------
INPUT_DIM = 32
OUTPUT_DIM = 64
NUM_INIT_POINT = 32
NUM_SUB_POINT = [16, 8]
NUM_NEIGHBOR = [8, 4]
LN_EPS = 1e-5


# =============================== Pallas kernels ==============================
def _fps_kernel(px_ref, py_ref, cent_ref, *, npoint):
    # Farthest point sampling, whole state resident in vregs.
    # px/py: (R, N) point coordinates; cent: (R, npoint) int32 indices.
    # TODO(synk): torch starts FPS from a random index (torch.randint); start at 0.
    px = px_ref[...]
    py = py_ref[...]
    R, N = px.shape
    iota_n = lax.broadcasted_iota(jnp.int32, (R, N), 1)
    iota_p = lax.broadcasted_iota(jnp.int32, (R, npoint), 1)

    def body(i, carry):
        cent, distance, far = carry            # (R,npoint) i32, (R,N) f32, (R,1) i32
        cent = jnp.where(iota_p == i, far, cent)
        onehot = (iota_n == far).astype(jnp.float32)            # gather-free centroid pick
        cx = jnp.sum(px * onehot, axis=-1, keepdims=True)       # (R, 1)
        cy = jnp.sum(py * onehot, axis=-1, keepdims=True)
        d = jnp.square(px - cx) + jnp.square(py - cy)           # (R, N)
        distance = jnp.minimum(distance, d)
        dmax = jnp.max(distance, axis=-1, keepdims=True)
        far = jnp.min(jnp.where(distance >= dmax, iota_n, N),   # first argmax
                      axis=-1, keepdims=True)
        return cent, distance, far

    init = (jnp.zeros((R, npoint), jnp.int32),
            jnp.full((R, N), 1e10, jnp.float32),
            jnp.zeros((R, 1), jnp.int32))
    cent, _, _ = lax.fori_loop(0, npoint, body, init, unroll=True)
    cent_ref[...] = cent


def pallas_farthest_point_sample(xyz, npoint):
    # xyz: [R, N, 2] -> indices [R, npoint] int32
    R, N, _ = xyz.shape
    px = xyz[:, :, 0].astype(jnp.float32)      # split in XLA (fuses inside the stage jit)
    py = xyz[:, :, 1].astype(jnp.float32)
    return pl.pallas_call(
        partial(_fps_kernel, npoint=npoint),
        out_shape=jax.ShapeDtypeStruct((R, npoint), jnp.int32),
        grid=(1,),
        in_specs=[pl.BlockSpec((R, N), lambda i: (0, 0)),
                  pl.BlockSpec((R, N), lambda i: (0, 0))],
        out_specs=pl.BlockSpec((R, npoint), lambda i: (0, 0)),
        compiler_params=pltpu.CompilerParams(dimension_semantics=("arbitrary",)),
    )(px, py)


def _stage_kernel(grouped_ref, anchor_ref, wg_ref, wa_ref, small_ref,
                  rep_ref, pool_ref, out_ref):
    # grouped: (P*nnb, D2) grouped [fea|xy] per neighbor (row p*nnb+k)
    # anchor : (P, D2)     anchor  [fea|xy] per anchor (NOT repeated)
    # wg     : (D2, C)     fused weight acting on grouped points
    # wa     : (D2, C)     fused weight acting on the anchor point
    # small  : (3, C)      rows = [fused bias, LN gamma, LN beta]
    # rep    : (P*nnb, P)  0/1 anchor -> neighbor-row expansion matrix
    # pool   : (P, P*nnb)  block-mean (AvgPool over nnb neighbors) matrix
    # out    : (P, C)
    grouped = grouped_ref[...]
    anchor = anchor_ref[...]
    small = small_ref[...]
    b_fused = small[0:1, :]
    ln_g = small[1:2, :]
    ln_b = small[2:3, :]

    # Fused (diff_projector ∘ agg Conv1d) affine:  y = grouped@Wg + anchor@Wa + b
    g_part = jnp.dot(grouped, wg_ref[...], preferred_element_type=jnp.float32)   # [P*nnb, C]
    a_part = jnp.dot(anchor, wa_ref[...], preferred_element_type=jnp.float32) + b_fused  # [P, C]
    y = g_part + jnp.dot(rep_ref[...], a_part, preferred_element_type=jnp.float32)
    y = jnp.maximum(y, 0.0)                                    # ReLU  [P*nnb, C]

    # LayerNorm over C (biased variance, matches torch).
    mu = jnp.mean(y, axis=-1, keepdims=True)
    var = jnp.mean(jnp.square(y - mu), axis=-1, keepdims=True)
    yn = (y - mu) * lax.rsqrt(var + LN_EPS) * ln_g + ln_b

    # AvgPool1d(kernel=nnb) over neighbor groups via the pre-built block-mean
    # matrix (MXU has slack; avoids in-kernel reshapes/relayouts).
    out_ref[...] = jnp.dot(pool_ref[...], yn, preferred_element_type=jnp.float32)


def pallas_geo_stage(grouped, anchor, wg, wa, small, nnb):
    # grouped: [P*nnb, D2]; anchor: [P, D2] -> [P, C]
    # Whole stage in ONE grid step: working set is tens of KB, far below VMEM,
    # so finer tiling would only add the ~0.35us/step overhead.
    PN, D2 = grouped.shape
    P = anchor.shape[0]
    C = wg.shape[1]
    # Static (P, nnb)-dependent constants built once at trace time (host numpy).
    pool = jnp.asarray(np.kron(np.eye(P, dtype=np.float32),
                               np.full((1, nnb), 1.0 / nnb, np.float32)))   # [P, PN]
    rep = jnp.asarray(np.kron(np.eye(P, dtype=np.float32),
                              np.ones((nnb, 1), np.float32)))               # [PN, P]
    return pl.pallas_call(
        _stage_kernel,
        out_shape=jax.ShapeDtypeStruct((P, C), jnp.float32),
        grid=(1,),
        in_specs=[pl.BlockSpec((PN, D2), lambda i: (0, 0)),
                  pl.BlockSpec((P, D2), lambda i: (0, 0)),
                  pl.BlockSpec((D2, C), lambda i: (0, 0)),
                  pl.BlockSpec((D2, C), lambda i: (0, 0)),
                  pl.BlockSpec((3, C), lambda i: (0, 0)),
                  pl.BlockSpec((PN, P), lambda i: (0, 0)),
                  pl.BlockSpec((P, PN), lambda i: (0, 0))],
        out_specs=pl.BlockSpec((P, C), lambda i: (0, 0)),
        compiler_params=pltpu.CompilerParams(dimension_semantics=("arbitrary",)),
    )(grouped.astype(jnp.float32), anchor.astype(jnp.float32),
      wg, wa, small, rep, pool)


def _proj_kernel(x_ref, w_ref, b_ref, o_ref):
    # flatten_projector + dim_projector pre-folded into ONE affine map.
    o_ref[...] = (jnp.dot(x_ref[...], w_ref[...],
                          preferred_element_type=jnp.float32) + b_ref[...])


def pallas_final_projector(x, w, b):
    M, K = x.shape
    N = w.shape[1]
    return pl.pallas_call(
        _proj_kernel,
        out_shape=jax.ShapeDtypeStruct((M, N), jnp.float32),
        grid=(1,),
        in_specs=[pl.BlockSpec((M, K), lambda i: (0, 0)),
                  pl.BlockSpec((K, N), lambda i: (0, 0)),
                  pl.BlockSpec((1, N), lambda i: (0, 0))],
        out_specs=pl.BlockSpec((M, N), lambda i: (0, 0)),
        compiler_params=pltpu.CompilerParams(dimension_semantics=("arbitrary",)),
    )(x.astype(jnp.float32), w, b)


# ================================ JAX glue ===================================
def index_points(points, idx):
    # points [B, N, C]; idx [B, S] or [B, S, K]
    return jax.vmap(lambda p, i: p[i])(points, idx)


def knn_point(nsample, xyz, new_xyz):
    # Plain jnp distances (tiny VPU work) so XLA fuses them with top_k; a
    # separate Pallas launch here would cost more than it computes.
    diff = new_xyz[:, :, None, :] - xyz[:, None, :, :]        # [R, S, N, 2]
    sqd = jnp.sum(diff * diff, axis=-1)                       # [R, S, N]
    _, idx = lax.top_k(-sqd, nsample)                         # nsample smallest
    return idx


@partial(jax.jit, static_argnames=("nsub", "nnb"))
def _geo_stage_step(all_points, all_points_fea, wg, wa, small, *, nsub, nnb):
    # Whole per-stage pipeline (FPS kernel + kNN + gathers + fused stage
    # kernel) in one jit -> single device dispatch per stage.
    fps_idx = pallas_farthest_point_sample(all_points, nsub)            # [R, nsub]
    new_points = index_points(all_points, fps_idx)                      # [R, nsub, 2]
    new_points_fea = index_points(all_points_fea, fps_idx)              # [R, nsub, C]
    idx = knn_point(nnb, all_points, new_points)                        # [R, nsub, nnb]
    grouped_points = index_points(all_points, idx)                      # [R, nsub, nnb, 2]
    grouped_points_fea = index_points(all_points_fea, idx)              # [R, nsub, nnb, C]
    grouped = jnp.concatenate([grouped_points_fea, grouped_points], -1)  # [R, nsub, nnb, D2]
    anchor = jnp.concatenate([new_points_fea, new_points], -1)           # [R, nsub, D2]
    R = grouped.shape[0]
    D2 = grouped.shape[-1]
    P = R * nsub
    out = pallas_geo_stage(grouped.reshape(P * nnb, D2),
                           anchor.reshape(P, D2), wg, wa, small, nnb)
    return new_points, out.reshape(R, nsub, -1)


@jax.jit
def _final_projection(all_points_fea, proj_w, proj_b):
    x = all_points_fea.reshape(all_points_fea.shape[0], -1)
    return pallas_final_projector(x, proj_w, proj_b)


def bilinear_point_sample(fmap_chw, coords_xy):
    # grid_sample(align_corners=True, bilinear) equivalent; gather stays in JAX.
    # TODO(synk): data-dependent gather (grid_sample) has no clean Pallas mapping here.
    C, h, w = fmap_chw.shape
    x = coords_xy[:, 0] * (w - 1)
    y = coords_xy[:, 1] * (h - 1)
    x0 = jnp.floor(x)
    y0 = jnp.floor(y)
    wx1 = x - x0
    wx0 = 1.0 - wx1
    wy1 = y - y0
    wy0 = 1.0 - wy1
    x0i = jnp.clip(x0, 0, w - 1).astype(jnp.int32)
    x1i = jnp.clip(x0 + 1, 0, w - 1).astype(jnp.int32)
    y0i = jnp.clip(y0, 0, h - 1).astype(jnp.int32)
    y1i = jnp.clip(y0 + 1, 0, h - 1).astype(jnp.int32)
    f00 = fmap_chw[:, y0i, x0i]
    f01 = fmap_chw[:, y0i, x1i]
    f10 = fmap_chw[:, y1i, x0i]
    f11 = fmap_chw[:, y1i, x1i]
    out = f00 * (wy0 * wx0) + f01 * (wy0 * wx1) + f10 * (wy1 * wx0) + f11 * (wy1 * wx1)
    return out.T                                         # [P, C]


def rand_sample_repeat_np(coords, max_len, rng):
    # TODO(synk): torch uses randint/randperm; a fixed-seed numpy Generator is used instead.
    n = coords.shape[0]
    if n < max_len:
        extra = rng.integers(0, n, size=(max_len - n,))
        return np.concatenate([coords, coords[extra]], axis=0)
    if n == max_len:
        return coords
    perm = rng.permutation(n)[:max_len]
    return coords[perm]


def init_params(key):
    # Parameters are created in torch layout (Linear weight = [out, in],
    # Conv1d(k=1) weight = [out, in]); prepare_params() folds/transposes once.
    d2 = INPUT_DIM + 2
    params = {'stages': []}
    for _ in range(len(NUM_SUB_POINT)):
        key, k0, k1, k2, k3 = jax.random.split(key, 5)
        agg_w = jax.random.normal(k1, (INPUT_DIM, 2 * d2), jnp.float32) * 0.02
        params['stages'].append({
            'diff_w': jax.random.normal(k0, (d2, d2), jnp.float32) * 0.02,
            'diff_b': jax.random.normal(k2, (1, d2), jnp.float32) * 0.01,
            'agg_w1': agg_w[:, :d2],            # acts on diff-projected features
            'agg_w2': agg_w[:, d2:],            # acts on repeated anchor features
            'agg_b': jax.random.normal(k3, (1, INPUT_DIM), jnp.float32) * 0.01,
            'ln_g': jnp.ones((1, INPUT_DIM), jnp.float32),
            'ln_b': jnp.zeros((1, INPUT_DIM), jnp.float32),
        })
    key, k1, k2, k3, k4 = jax.random.split(key, 5)
    params['flat_w'] = jax.random.normal(k1, (INPUT_DIM, INPUT_DIM * NUM_SUB_POINT[-1]),
                                         jnp.float32) * 0.02
    params['flat_b'] = jax.random.normal(k2, (1, INPUT_DIM), jnp.float32) * 0.01
    params['dim_w'] = jax.random.normal(k3, (OUTPUT_DIM, INPUT_DIM), jnp.float32) * 0.02
    params['dim_b'] = jax.random.normal(k4, (1, OUTPUT_DIM), jnp.float32) * 0.01
    return params


def prepare_params(params):
    # One-time host-side algebraic folding:
    #   diff_projector ∘ agg Conv1d(k=1):
    #     y = (g - a) @ Wd + bd concat with a, then conv:
    #       = g @ (Wd @ W1) + a @ (W2 - Wd @ W1) + (bd @ W1 + bc)
    #   flatten_projector ∘ dim_projector:  x @ (Wf @ Wo) + (bf @ Wo + bo)
    prep = {'stages': []}
    for sp in params['stages']:
        diff_wT = jnp.transpose(sp['diff_w']).astype(jnp.float32)     # [D2, D2]
        agg_w1T = jnp.transpose(sp['agg_w1']).astype(jnp.float32)     # [D2, C]
        agg_w2T = jnp.transpose(sp['agg_w2']).astype(jnp.float32)     # [D2, C]
        wg = diff_wT @ agg_w1T                                        # [D2, C]
        wa = agg_w2T - wg                                             # [D2, C]
        b_fused = sp['diff_b'].astype(jnp.float32) @ agg_w1T + sp['agg_b']  # [1, C]
        small = jnp.concatenate(
            [b_fused, sp['ln_g'].astype(jnp.float32),
             sp['ln_b'].astype(jnp.float32)], axis=0)                 # [3, C]
        prep['stages'].append({'wg': wg, 'wa': wa, 'small': small})
    flat_wT = jnp.transpose(params['flat_w']).astype(jnp.float32)     # [256, 32]
    dim_wT = jnp.transpose(params['dim_w']).astype(jnp.float32)       # [32, 64]
    prep['proj_w'] = flat_wT @ dim_wT                                 # [256, 64]
    prep['proj_b'] = params['flat_b'].astype(jnp.float32) @ dim_wT + params['dim_b']
    return prep


def geo_region_sampler_forward(params, feature_map_list, region_masks_list,
                               return_dtype=jnp.float32):
    prep = prepare_params(params)
    rng = np.random.default_rng(0)
    all_points, all_points_fea, all_img_ids = [], [], []
    for img_idx, (fmap, masks) in enumerate(zip(feature_map_list, region_masks_list)):
        if len(masks) == 0:
            continue
        H, W = masks[0].shape
        wh = np.array([H, W], dtype=np.float32)
        pts = []
        for m in masks:
            nz = np.stack(np.nonzero(np.asarray(m)), axis=-1).astype(np.float32) / wh
            pts.append(rand_sample_repeat_np(nz, NUM_INIT_POINT, rng))
        pts = jnp.asarray(np.stack(pts, axis=0))                     # [R_i, P, 2] (row,col)
        hw = int(math.sqrt(fmap.shape[0]))
        C = fmap.shape[-1]
        fmap_chw = jnp.transpose(fmap.reshape(hw, hw, C), (2, 0, 1))  # CHW
        coords_xy = pts[..., ::-1]                                   # flip -> (x, y)
        fea = jax.vmap(lambda c: bilinear_point_sample(fmap_chw, c))(coords_xy)
        all_points.append(pts)
        all_points_fea.append(fea.astype(return_dtype))
        all_img_ids.extend([img_idx] * pts.shape[0])

    if len(all_points) == 0:
        return [None] * len(region_masks_list)

    all_points = jnp.concatenate(all_points, 0).astype(return_dtype)   # [R, P, 2]
    all_points_fea = jnp.concatenate(all_points_fea, 0)                # [R, P, C]
    all_img_ids = np.array(all_img_ids)

    for stage_i, (nsub, nnb) in enumerate(zip(NUM_SUB_POINT, NUM_NEIGHBOR)):
        sp = prep['stages'][stage_i]
        all_points, new_fea = _geo_stage_step(
            all_points, all_points_fea, sp['wg'], sp['wa'], sp['small'],
            nsub=nsub, nnb=nnb)
        all_points = all_points.astype(return_dtype)
        all_points_fea = new_fea.astype(return_dtype)

    all_region_fea = _final_projection(
        all_points_fea, prep['proj_w'], prep['proj_b']).astype(return_dtype)

    output = []
    for img_idx in range(len(region_masks_list)):
        sel = np.nonzero(all_img_ids == img_idx)[0]
        if sel.size == 0:
            output.append(None)
        else:
            output.append(all_region_fea[jnp.asarray(sel)])
    return output


# ================================== main =====================================
if __name__ == "__main__":
    key = jax.random.PRNGKey(0)
    params = init_params(key)

    k1, k2 = jax.random.split(jax.random.PRNGKey(0))
    h = w = 8
    fmap0 = jax.random.normal(k1, (h * w, INPUT_DIM), jnp.float32)   # flattened [h*w, C]
    fmap1 = jax.random.normal(k2, (h * w, INPUT_DIM), jnp.float32)

    H = W = 16

    def rect_mask(r0, r1, c0, c1):
        m = np.zeros((H, W), dtype=np.float32)
        m[r0:r1, c0:c1] = 1.0
        return m

    region_masks = [
        [rect_mask(2, 8, 3, 10), rect_mask(9, 15, 1, 6)],   # 2 regions for image 0
        [rect_mask(4, 12, 6, 14)],                          # 1 region  for image 1
    ]

    out = geo_region_sampler_forward(params, [fmap0, fmap1], region_masks)
    for o in out:
        if o is not None:
            jax.block_until_ready(o)

    assert out[0] is not None and out[0].shape == (2, OUTPUT_DIM)
    assert out[1] is not None and out[1].shape == (1, OUTPUT_DIM)
    assert all(bool(jnp.all(jnp.isfinite(o))) for o in out if o is not None)
    print("KERNEL_OK")
</pallas_src>

<mosaic_0001>
module attributes {stable_mosaic.version = 11 : i64} {
  func.func @_fps_kernel(%arg0: i32, %arg1: memref<3x32xf32, #tpu.memory_space<vmem>>, %arg2: memref<3x32xf32, #tpu.memory_space<vmem>>, %arg3: memref<3x16xi32, #tpu.memory_space<vmem>>) attributes {dimension_semantics = [#tpu.dimension_semantics<arbitrary>], iteration_bounds = array<i64: 1>, scalar_prefetch = 0 : i64, scratch_operands = 0 : i64, tpu.core_type = #tpu.core_type<tc>, window_params = [{pipeline_mode = #tpu.pipeline_mode<synchronous>, transform_indices = @transform_0, window_bounds = array<i64: 3, 32>}, {pipeline_mode = #tpu.pipeline_mode<synchronous>, transform_indices = @transform_1, window_bounds = array<i64: 3, 32>}, {pipeline_mode = #tpu.pipeline_mode<synchronous>, transform_indices = @transform_2, window_bounds = array<i64: 3, 16>}]} {
    %c0 = arith.constant 0 : index
    %c0_0 = arith.constant 0 : index
    %0 = vector.load %arg1[%c0, %c0_0] : memref<3x32xf32, #tpu.memory_space<vmem>>, vector<3x32xf32>
    %c0_1 = arith.constant 0 : index
    %c0_2 = arith.constant 0 : index
    %1 = vector.load %arg2[%c0_1, %c0_2] : memref<3x32xf32, #tpu.memory_space<vmem>>, vector<3x32xf32>
    %2 = tpu.iota {dimensions = array<i32: 1>} : vector<3x32xi32>
    %3 = tpu.iota {dimensions = array<i32: 1>} : vector<3x16xi32>
    %c0_i32 = arith.constant 0 : i32
    %4 = vector.broadcast %c0_i32 : i32 to vector<3x16xi32>
    %cst = arith.constant 1.000000e+10 : f32
    %5 = vector.broadcast %cst : f32 to vector<3x32xf32>
    %c0_i32_3 = arith.constant 0 : i32
    %6 = vector.broadcast %c0_i32_3 : i32 to vector<3x1xi32>
    %c0_i32_4 = arith.constant 0 : i32
    %7 = vector.broadcast %c0_i32_4 : i32 to vector<3x16xi32>
    %8 = arith.cmpi eq, %3, %7 : vector<3x16xi32>
    %9 = vector.shape_cast %6 : vector<3x1xi32> to vector<3x1xi32>
    %10 = vector.broadcast %9 : vector<3x1xi32> to vector<3x16xi32>
    %11 = arith.select %8, %10, %4 : vector<3x16xi1>, vector<3x16xi32>
    %12 = vector.broadcast %6 : vector<3x1xi32> to vector<3x32xi32>
    %13 = arith.cmpi eq, %2, %12 : vector<3x32xi32>
    %14 = arith.extui %13 : vector<3x32xi1> to vector<3x32xi32>
    %15 = arith.sitofp %14 : vector<3x32xi32> to vector<3x32xf32>
    %16 = arith.mulf %0, %15 : vector<3x32xf32>
    %cst_5 = arith.constant dense<0.000000e+00> : vector<3xf32>
    %17 = vector.multi_reduction <add>, %16, %cst_5 [1] : vector<3x32xf32> to vector<3xf32>
    %18 = vector.shape_cast %17 : vector<3xf32> to vector<3x1xf32>
    %19 = arith.mulf %1, %15 : vector<3x32xf32>
    %cst_6 = arith.constant dense<0.000000e+00> : vector<3xf32>
    %20 = vector.multi_reduction <add>, %19, %cst_6 [1] : vector<3x32xf32> to vector<3xf32>
    %21 = vector.shape_cast %20 : vector<3xf32> to vector<3x1xf32>
    %22 = vector.broadcast %18 : vector<3x1xf32> to vector<3x32xf32>
    %23 = arith.subf %0, %22 : vector<3x32xf32>
    %24 = arith.mulf %23, %23 : vector<3x32xf32>
    %25 = vector.broadcast %21 : vector<3x1xf32> to vector<3x32xf32>
    %26 = arith.subf %1, %25 : vector<3x32xf32>
    %27 = arith.mulf %26, %26 : vector<3x32xf32>
    %28 = arith.addf %24, %27 : vector<3x32xf32>
    %29 = arith.minimumf %5, %28 : vector<3x32xf32>
    %cst_7 = arith.constant dense<0xFF800000> : vector<3xf32>
    %30 = vector.multi_reduction <maximumf>, %29, %cst_7 [1] : vector<3x32xf32> to vector<3xf32>
    %31 = vector.shape_cast %30 : vector<3xf32> to vector<3x1xf32>
    %32 = vector.broadcast %31 : vector<3x1xf32> to vector<3x32xf32>
    %33 = arith.cmpf oge, %29, %32 : vector<3x32xf32>
    %c32_i32 = arith.constant 32 : i32
    %34 = vector.broadcast %c32_i32 : i32 to vector<3x32xi32>
    %35 = arith.select %33, %2, %34 : vector<3x32xi1>, vector<3x32xi32>
    %cst_8 = arith.constant dense<2147483647> : vector<3xi32>
    %36 = vector.multi_reduction <minsi>, %35, %cst_8 [1] : vector<3x32xi32> to vector<3xi32>
    %37 = vector.shape_cast %36 : vector<3xi32> to vector<3x1xi32>
    %c1_i32 = arith.constant 1 : i32
    %38 = vector.broadcast %c1_i32 : i32 to vector<3x16xi32>
    %39 = arith.cmpi eq, %3, %38 : vector<3x16xi32>
    %40 = vector.shape_cast %37 : vector<3x1xi32> to vector<3x1xi32>
    %41 = vector.broadcast %40 : vector<3x1xi32> to vector<3x16xi32>
    %42 = arith.select %39, %41, %11 : vector<3x16xi1>, vector<3x16xi32>
    %43 = vector.broadcast %37 : vector<3x1xi32> to vector<3x32xi32>
    %44 = arith.cmpi eq, %2, %43 : vector<3x32xi32>
    %45 = arith.extui %44 : vector<3x32xi1> to vector<3x32xi32>
    %46 = arith.sitofp %45 : vector<3x32xi32> to vector<3x32xf32>
    %47 = arith.mulf %0, %46 : vector<3x32xf32>
    %cst_9 = arith.constant dense<0.000000e+00> : vector<3xf32>
    %48 = vector.multi_reduction <add>, %47, %cst_9 [1] : vector<3x32xf32> to vector<3xf32>
    %49 = vector.shape_cast %48 : vector<3xf32> to vector<3x1xf32>
    %50 = arith.mulf %1, %46 : vector<3x32xf32>
    %cst_10 = arith.constant dense<0.000000e+00> : vector<3xf32>
    %51 = vector.multi_reduction <add>, %50, %cst_10 [1] : vector<3x32xf32> to vector<3xf32>
    %52 = vector.shape_cast %51 : vector<3xf32> to vector<3x1xf32>
    %53 = vector.broadcast %49 : vector<3x1xf32> to vector<3x32xf32>
    %54 = arith.subf %0, %53 : vector<3x32xf32>
    %55 = arith.mulf %54, %54 : vector<3x32xf32>
    %56 = vector.broadcast %52 : vector<3x1xf32> to vector<3x32xf32>
    %57 = arith.subf %1, %56 : vector<3x32xf32>
    %58 = arith.mulf %57, %57 : vector<3x32xf32>
    %59 = arith.addf %55, %58 : vector<3x32xf32>
    %60 = arith.minimumf %29, %59 : vector<3x32xf32>
    %cst_11 = arith.constant dense<0xFF800000> : vector<3xf32>
    %61 = vector.multi_reduction <maximumf>, %60, %cst_11 [1] : vector<3x32xf32> to vector<3xf32>
    %62 = vector.shape_cast %61 : vector<3xf32> to vector<3x1xf32>
    %63 = vector.broadcast %62 : vector<3x1xf32> to vector<3x32xf32>
    %64 = arith.cmpf oge, %60, %63 : vector<3x32xf32>
    %c32_i32_12 = arith.constant 32 : i32
    %65 = vector.broadcast %c32_i32_12 : i32 to vector<3x32xi32>
    %66 = arith.select %64, %2, %65 : vector<3x32xi1>, vector<3x32xi32>
    %cst_13 = arith.constant dense<2147483647> : vector<3xi32>
    %67 = vector.multi_reduction <minsi>, %66, %cst_13 [1] : vector<3x32xi32> to vector<3xi32>
    %68 = vector.shape_cast %67 : vector<3xi32> to vector<3x1xi32>
    %c2_i32 = arith.constant 2 : i32
    %69 = vector.broadcast %c2_i32 : i32 to vector<3x16xi32>
    %70 = arith.cmpi eq, %3, %69 : vector<3x16xi32>
    %71 = vector.shape_cast %68 : vector<3x1xi32> to vector<3x1xi32>
    %72 = vector.broadcast %71 : vector<3x1xi32> to vector<3x16xi32>
    %73 = arith.select %70, %72, %42 : vector<3x16xi1>, vector<3x16xi32>
    %74 = vector.broadcast %68 : vector<3x1xi32> to vector<3x32xi32>
    %75 = arith.cmpi eq, %2, %74 : vector<3x32xi32>
    %76 = arith.extui %75 : vector<3x32xi1> to vector<3x32xi32>
    %77 = arith.sitofp %76 : vector<3x32xi32> to vector<3x32xf32>
    %78 = arith.mulf %0, %77 : vector<3x32xf32>
    %cst_14 = arith.constant dense<0.000000e+00> : vector<3xf32>
    %79 = vector.multi_reduction <add>, %78, %cst_14 [1] : vector<3x32xf32> to vector<3xf32>
    %80 = vector.shape_cast %79 : vector<3xf32> to vector<3x1xf32>
    %81 = arith.mulf %1, %77 : vector<3x32xf32>
    %cst_15 = arith.constant dense<0.000000e+00> : vector<3xf32>
    %82 = vector.multi_reduction <add>, %81, %cst_15 [1] : vector<3x32xf32> to vector<3xf32>
    %83 = vector.shape_cast %82 : vector<3xf32> to vector<3x1xf32>
    %84 = vector.broadcast %80 : vector<3x1xf32> to vector<3x32xf32>
    %85 = arith.subf %0, %84 : vector<3x32xf32>
    %86 = arith.mulf %85, %85 : vector<3x32xf32>
    %87 = vector.broadcast %83 : vector<3x1xf32> to vector<3x32xf32>
    %88 = arith.subf %1, %87 : vector<3x32xf32>
    %89 = arith.mulf %88, %88 : vector<3x32xf32>
    %90 = arith.addf %86, %89 : vector<3x32xf32>
    %91 = arith.minimumf %60, %90 : vector<3x32xf32>
    %cst_16 = arith.constant dense<0xFF800000> : vector<3xf32>
    %92 = vector.multi_reduction <maximumf>, %91, %cst_16 [1] : vector<3x32xf32> to vector<3xf32>
    %93 = vector.shape_cast %92 : vector<3xf32> to vector<3x1xf32>
    %94 = vector.broadcast %93 : vector<3x1xf32> to vector<3x32xf32>
    %95 = arith.cmpf oge, %91, %94 : vector<3x32xf32>
    %c32_i32_17 = arith.constant 32 : i32
    %96 = vector.broadcast %c32_i32_17 : i32 to vector<3x32xi32>
    %97 = arith.select %95, %2, %96 : vector<3x32xi1>, vector<3x32xi32>
    %cst_18 = arith.constant dense<2147483647> : vector<3xi32>
    %98 = vector.multi_reduction <minsi>, %97, %cst_18 [1] : vector<3x32xi32> to vector<3xi32>
    %99 = vector.shape_cast %98 : vector<3xi32> to vector<3x1xi32>
    %c3_i32 = arith.constant 3 : i32
    %100 = vector.broadcast %c3_i32 : i32 to vector<3x16xi32>
    %101 = arith.cmpi eq, %3, %100 : vector<3x16xi32>
    %102 = vector.shape_cast %99 : vector<3x1xi32> to vector<3x1xi32>
    %103 = vector.broadcast %102 : vector<3x1xi32> to vector<3x16xi32>
    %104 = arith.select %101, %103, %73 : vector<3x16xi1>, vector<3x16xi32>
    %105 = vector.broadcast %99 : vector<3x1xi32> to vector<3x32xi32>
    %106 = arith.cmpi eq, %2, %105 : vector<3x32xi32>
    %107 = arith.extui %106 : vector<3x32xi1> to vector<3x32xi32>
    %108 = arith.sitofp %107 : vector<3x32xi32> to vector<3x32xf32>
    %109 = arith.mulf %0, %108 : vector<3x32xf32>
    %cst_19 = arith.constant dense<0.000000e+00> : vector<3xf32>
    %110 = vector.multi_reduction <add>, %109, %cst_19 [1] : vector<3x32xf32> to vector<3xf32>
    %111 = vector.shape_cast %110 : vector<3xf32> to vector<3x1xf32>
    %112 = arith.mulf %1, %108 : vector<3x32xf32>
    %cst_20 = arith.constant dense<0.000000e+00> : vector<3xf32>
    %113 = vector.multi_reduction <add>, %112, %cst_20 [1] : vector<3x32xf32> to vector<3xf32>
    %114 = vector.shape_cast %113 : vector<3xf32> to vector<3x1xf32>
    %115 = vector.broadcast %111 : vector<3x1xf32> to vector<3x32xf32>
    %116 = arith.subf %0, %115 : vector<3x32xf32>
    %117 = arith.mulf %116, %116 : vector<3x32xf32>
    %118 = vector.broadcast %114 : vector<3x1xf32> to vector<3x32xf32>
    %119 = arith.subf %1, %118 : vector<3x32xf32>
    %120 = arith.mulf %119, %119 : vector<3x32xf32>
    %121 = arith.addf %117, %120 : vector<3x32xf32>
    %122 = arith.minimumf %91, %121 : vector<3x32xf32>
    %cst_21 = arith.constant dense<0xFF800000> : vector<3xf32>
    %123 = vector.multi_reduction <maximumf>, %122, %cst_21 [1] : vector<3x32xf32> to vector<3xf32>
    %124 = vector.shape_cast %123 : vector<3xf32> to vector<3x1xf32>
    %125 = vector.broadcast %124 : vector<3x1xf32> to vector<3x32xf32>
    %126 = arith.cmpf oge, %122, %125 : vector<3x32xf32>
    %c32_i32_22 = arith.constant 32 : i32
    %127 = vector.broadcast %c32_i32_22 : i32 to vector<3x32xi32>
    %128 = arith.select %126, %2, %127 : vector<3x32xi1>, vector<3x32xi32>
    %cst_23 = arith.constant dense<2147483647> : vector<3xi32>
    %129 = vector.multi_reduction <minsi>, %128, %cst_23 [1] : vector<3x32xi32> to vector<3xi32>
    %130 = vector.shape_cast %129 : vector<3xi32> to vector<3x1xi32>
    %c4_i32 = arith.constant 4 : i32
    %131 = vector.broadcast %c4_i32 : i32 to vector<3x16xi32>
    %132 = arith.cmpi eq, %3, %131 : vector<3x16xi32>
    %133 = vector.shape_cast %130 : vector<3x1xi32> to vector<3x1xi32>
    %134 = vector.broadcast %133 : vector<3x1xi32> to vector<3x16xi32>
    %135 = arith.select %132, %134, %104 : vector<3x16xi1>, vector<3x16xi32>
    %136 = vector.broadcast %130 : vector<3x1xi32> to vector<3x32xi32>
    %137 = arith.cmpi eq, %2, %136 : vector<3x32xi32>
    %138 = arith.extui %137 : vector<3x32xi1> to vector<3x32xi32>
    %139 = arith.sitofp %138 : vector<3x32xi32> to vector<3x32xf32>
    %140 = arith.mulf %0, %139 : vector<3x32xf32>
    %cst_24 = arith.constant dense<0.000000e+00> : vector<3xf32>
    %141 = vector.multi_reduction <add>, %140, %cst_24 [1] : vector<3x32xf32> to vector<3xf32>
    %142 = vector.shape_cast %141 : vector<3xf32> to vector<3x1xf32>
    %143 = arith.mulf %1, %139 : vector<3x32xf32>
    %cst_25 = arith.constant dense<0.000000e+00> : vector<3xf32>
    %144 = vector.multi_reduction <add>, %143, %cst_25 [1] : vector<3x32xf32> to vector<3xf32>
    %145 = vector.shape_cast %144 : vector<3xf32> to vector<3x1xf32>
    %146 = vector.broadcast %142 : vector<3x1xf32> to vector<3x32xf32>
    %147 = arith.subf %0, %146 : vector<3x32xf32>
    %148 = arith.mulf %147, %147 : vector<3x32xf32>
    %149 = vector.broadcast %145 : vector<3x1xf32> to vector<3x32xf32>
    %150 = arith.subf %1, %149 : vector<3x32xf32>
    %151 = arith.mulf %150, %150 : vector<3x32xf32>
    %152 = arith.addf %148, %151 : vector<3x32xf32>
    %153 = arith.minimumf %122, %152 : vector<3x32xf32>
    %cst_26 = arith.constant dense<0xFF800000> : vector<3xf32>
    %154 = vector.multi_reduction <maximumf>, %153, %cst_26 [1] : vector<3x32xf32> to vector<3xf32>
    %155 = vector.shape_cast %154 : vector<3xf32> to vector<3x1xf32>
    %156 = vector.broadcast %155 : vector<3x1xf32> to vector<3x32xf32>
    %157 = arith.cmpf oge, %153, %156 : vector<3x32xf32>
    %c32_i32_27 = arith.constant 32 : i32
    %158 = vector.broadcast %c32_i32_27 : i32 to vector<3x32xi32>
    %159 = arith.select %157, %2, %158 : vector<3x32xi1>, vector<3x32xi32>
    %cst_28 = arith.constant dense<2147483647> : vector<3xi32>
    %160 = vector.multi_reduction <minsi>, %159, %cst_28 [1] : vector<3x32xi32> to vector<3xi32>
    %161 = vector.shape_cast %160 : vector<3xi32> to vector<3x1xi32>
    %c5_i32 = arith.constant 5 : i32
    %162 = vector.broadcast %c5_i32 : i32 to vector<3x16xi32>
    %163 = arith.cmpi eq, %3, %162 : vector<3x16xi32>
    %164 = vector.shape_cast %161 : vector<3x1xi32> to vector<3x1xi32>
    %165 = vector.broadcast %164 : vector<3x1xi32> to vector<3x16xi32>
    %166 = arith.select %163, %165, %135 : vector<3x16xi1>, vector<3x16xi32>
    %167 = vector.broadcast %161 : vector<3x1xi32> to vector<3x32xi32>
    %168 = arith.cmpi eq, %2, %167 : vector<3x32xi32>
    %169 = arith.extui %168 : vector<3x32xi1> to vector<3x32xi32>
    %170 = arith.sitofp %169 : vector<3x32xi32> to vector<3x32xf32>
    %171 = arith.mulf %0, %170 : vector<3x32xf32>
    %cst_29 = arith.constant dense<0.000000e+00> : vector<3xf32>
    %172 = vector.multi_reduction <add>, %171, %cst_29 [1] : vector<3x32xf32> to vector<3xf32>
    %173 = vector.shape_cast %172 : vector<3xf32> to vector<3x1xf32>
    %174 = arith.mulf %1, %170 : vector<3x32xf32>
    %cst_30 = arith.constant dense<0.000000e+00> : vector<3xf32>
    %175 = vector.multi_reduction <add>, %174, %cst_30 [1] : vector<3x32xf32> to vector<3xf32>
    %176 = vector.shape_cast %175 : vector<3xf32> to vector<3x1xf32>
    %177 = vector.broadcast %173 : vector<3x1xf32> to vector<3x32xf32>
    %178 = arith.subf %0, %177 : vector<3x32xf32>
    %179 = arith.mulf %178, %178 : vector<3x32xf32>
    %180 = vector.broadcast %176 : vector<3x1xf32> to vector<3x32xf32>
    %181 = arith.subf %1, %180 : vector<3x32xf32>
    %182 = arith.mulf %181, %181 : vector<3x32xf32>
    %183 = arith.addf %179, %182 : vector<3x32xf32>
    %184 = arith.minimumf %153, %183 : vector<3x32xf32>
    %cst_31 = arith.constant dense<0xFF800000> : vector<3xf32>
    %185 = vector.multi_reduction <maximumf>, %184, %cst_31 [1] : vector<3x32xf32> to vector<3xf32>
    %186 = vector.shape_cast %185 : vector<3xf32> to vector<3x1xf32>
    %187 = vector.broadcast %186 : vector<3x1xf32> to vector<3x32xf32>
    %188 = arith.cmpf oge, %184, %187 : vector<3x32xf32>
    %c32_i32_32 = arith.constant 32 : i32
    %189 = vector.broadcast %c32_i32_32 : i32 to vector<3x32xi32>
    %190 = arith.select %188, %2, %189 : vector<3x32xi1>, vector<3x32xi32>
    %cst_33 = arith.constant dense<2147483647> : vector<3xi32>
    %191 = vector.multi_reduction <minsi>, %190, %cst_33 [1] : vector<3x32xi32> to vector<3xi32>
    %192 = vector.shape_cast %191 : vector<3xi32> to vector<3x1xi32>
    %c6_i32 = arith.constant 6 : i32
    %193 = vector.broadcast %c6_i32 : i32 to vector<3x16xi32>
    %194 = arith.cmpi eq, %3, %193 : vector<3x16xi32>
    %195 = vector.shape_cast %192 : vector<3x1xi32> to vector<3x1xi32>
    %196 = vector.broadcast %195 : vector<3x1xi32> to vector<3x16xi32>
    %197 = arith.select %194, %196, %166 : vector<3x16xi1>, vector<3x16xi32>
    %198 = vector.broadcast %192 : vector<3x1xi32> to vector<3x32xi32>
    %199 = arith.cmpi eq, %2, %198 : vector<3x32xi32>
    %200 = arith.extui %199 : vector<3x32xi1> to vector<3x32xi32>
    %201 = arith.sitofp %200 : vector<3x32xi32> to vector<3x32xf32>
    %202 = arith.mulf %0, %201 : vector<3x32xf32>
    %cst_34 = arith.constant dense<0.000000e+00> : vector<3xf32>
    %203 = vector.multi_reduction <add>, %202, %cst_34 [1] : vector<3x32xf32> to vector<3xf32>
    %204 = vector.shape_cast %203 : vector<3xf32> to vector<3x1xf32>
    %205 = arith.mulf %1, %201 : vector<3x32xf32>
    %cst_35 = arith.constant dense<0.000000e+00> : vector<3xf32>
    %206 = vector.multi_reduction <add>, %205, %cst_35 [1] : vector<3x32xf32> to vector<3xf32>
    %207 = vector.shape_cast %206 : vector<3xf32> to vector<3x1xf32>
    %208 = vector.broadcast %204 : vector<3x1xf32> to vector<3x32xf32>
    %209 = arith.subf %0, %208 : vector<3x32xf32>
    %210 = arith.mulf %209, %209 : vector<3x32xf32>
    %211 = vector.broadcast %207 : vector<3x1xf32> to vector<3x32xf32>
    %212 = arith.subf %1, %211 : vector<3x32xf32>
    %213 = arith.mulf %212, %212 : vector<3x32xf32>
    %214 = arith.addf %210, %213 : vector<3x32xf32>
    %215 = arith.minimumf %184, %214 : vector<3x32xf32>
    %cst_36 = arith.constant dense<0xFF800000> : vector<3xf32>
    %216 = vector.multi_reduction <maximumf>, %215, %cst_36 [1] : vector<3x32xf32> to vector<3xf32>
    %217 = vector.shape_cast %216 : vector<3xf32> to vector<3x1xf32>
    %218 = vector.broadcast %217 : vector<3x1xf32> to vector<3x32xf32>
    %219 = arith.cmpf oge, %215, %218 : vector<3x32xf32>
    %c32_i32_37 = arith.constant 32 : i32
    %220 = vector.broadcast %c32_i32_37 : i32 to vector<3x32xi32>
    %221 = arith.select %219, %2, %220 : vector<3x32xi1>, vector<3x32xi32>
    %cst_38 = arith.constant dense<2147483647> : vector<3xi32>
    %222 = vector.multi_reduction <minsi>, %221, %cst_38 [1] : vector<3x32xi32> to vector<3xi32>
    %223 = vector.shape_cast %222 : vector<3xi32> to vector<3x1xi32>
    %c7_i32 = arith.constant 7 : i32
    %224 = vector.broadcast %c7_i32 : i32 to vector<3x16xi32>
    %225 = arith.cmpi eq, %3, %224 : vector<3x16xi32>
    %226 = vector.shape_cast %223 : vector<3x1xi32> to vector<3x1xi32>
    %227 = vector.broadcast %226 : vector<3x1xi32> to vector<3x16xi32>
    %228 = arith.select %225, %227, %197 : vector<3x16xi1>, vector<3x16xi32>
    %229 = vector.broadcast %223 : vector<3x1xi32> to vector<3x32xi32>
    %230 = arith.cmpi eq, %2, %229 : vector<3x32xi32>
    %231 = arith.extui %230 : vector<3x32xi1> to vector<3x32xi32>
    %232 = arith.sitofp %231 : vector<3x32xi32> to vector<3x32xf32>
    %233 = arith.mulf %0, %232 : vector<3x32xf32>
    %cst_39 = arith.constant dense<0.000000e+00> : vector<3xf32>
    %234 = vector.multi_reduction <add>, %233, %cst_39 [1] : vector<3x32xf32> to vector<3xf32>
    %235 = vector.shape_cast %234 : vector<3xf32> to vector<3x1xf32>
    %236 = arith.mulf %1, %232 : vector<3x32xf32>
    %cst_40 = arith.constant dense<0.000000e+00> : vector<3xf32>
    %237 = vector.multi_reduction <add>, %236, %cst_40 [1] : vector<3x32xf32> to vector<3xf32>
    %238 = vector.shape_cast %237 : vector<3xf32> to vector<3x1xf32>
    %239 = vector.broadcast %235 : vector<3x1xf32> to vector<3x32xf32>
    %240 = arith.subf %0, %239 : vector<3x32xf32>
    %241 = arith.mulf %240, %240 : vector<3x32xf32>
    %242 = vector.broadcast %238 : vector<3x1xf32> to vector<3x32xf32>
    %243 = arith.subf %1, %242 : vector<3x32xf32>
    %244 = arith.mulf %243, %243 : vector<3x32xf32>
    %245 = arith.addf %241, %244 : vector<3x32xf32>
    %246 = arith.minimumf %215, %245 : vector<3x32xf32>
    %cst_41 = arith.constant dense<0xFF800000> : vector<3xf32>
    %247 = vector.multi_reduction <maximumf>, %246, %cst_41 [1] : vector<3x32xf32> to vector<3xf32>
    %248 = vector.shape_cast %247 : vector<3xf32> to vector<3x1xf32>
    %249 = vector.broadcast %248 : vector<3x1xf32> to vector<3x32xf32>
    %250 = arith.cmpf oge, %246, %249 : vector<3x32xf32>
    %c32_i32_42 = arith.constant 32 : i32
    %251 = vector.broadcast %c32_i32_42 : i32 to vector<3x32xi32>
    %252 = arith.select %250, %2, %251 : vector<3x32xi1>, vector<3x32xi32>
    %cst_43 = arith.constant dense<2147483647> : vector<3xi32>
    %253 = vector.multi_reduction <minsi>, %252, %cst_43 [1] : vector<3x32xi32> to vector<3xi32>
    %254 = vector.shape_cast %253 : vector<3xi32> to vector<3x1xi32>
    %c8_i32 = arith.constant 8 : i32
    %255 = vector.broadcast %c8_i32 : i32 to vector<3x16xi32>
    %256 = arith.cmpi eq, %3, %255 : vector<3x16xi32>
    %257 = vector.shape_cast %254 : vector<3x1xi32> to vector<3x1xi32>
    %258 = vector.broadcast %257 : vector<3x1xi32> to vector<3x16xi32>
    %259 = arith.select %256, %258, %228 : vector<3x16xi1>, vector<3x16xi32>
    %260 = vector.broadcast %254 : vector<3x1xi32> to vector<3x32xi32>
    %261 = arith.cmpi eq, %2, %260 : vector<3x32xi32>
    %262 = arith.extui %261 : vector<3x32xi1> to vector<3x32xi32>
    %263 = arith.sitofp %262 : vector<3x32xi32> to vector<3x32xf32>
    %264 = arith.mulf %0, %263 : vector<3x32xf32>
    %cst_44 = arith.constant dense<0.000000e+00> : vector<3xf32>
    %265 = vector.multi_reduction <add>, %264, %cst_44 [1] : vector<3x32xf32> to vector<3xf32>
    %266 = vector.shape_cast %265 : vector<3xf32> to vector<3x1xf32>
    %267 = arith.mulf %1, %263 : vector<3x32xf32>
    %cst_45 = arith.constant dense<0.000000e+00> : vector<3xf32>
    %268 = vector.multi_reduction <add>, %267, %cst_45 [1] : vector<3x32xf32> to vector<3xf32>
    %269 = vector.shape_cast %268 : vector<3xf32> to vector<3x1xf32>
    %270 = vector.broadcast %266 : vector<3x1xf32> to vector<3x32xf32>
    %271 = arith.subf %0, %270 : vector<3x32xf32>
    %272 = arith.mulf %271, %271 : vector<3x32xf32>
    %273 = vector.broadcast %269 : vector<3x1xf32> to vector<3x32xf32>
    %274 = arith.subf %1, %273 : vector<3x32xf32>
    %275 = arith.mulf %274, %274 : vector<3x32xf32>
    %276 = arith.addf %272, %275 : vector<3x32xf32>
    %277 = arith.minimumf %246, %276 : vector<3x32xf32>
    %cst_46 = arith.constant dense<0xFF800000> : vector<3xf32>
    %278 = vector.multi_reduction <maximumf>, %277, %cst_46 [1] : vector<3x32xf32> to vector<3xf32>
    %279 = vector.shape_cast %278 : vector<3xf32> to vector<3x1xf32>
    %280 = vector.broadcast %279 : vector<3x1xf32> to vector<3x32xf32>
    %281 = arith.cmpf oge, %277, %280 : vector<3x32xf32>
    %c32_i32_47 = arith.constant 32 : i32
    %282 = vector.broadcast %c32_i32_47 : i32 to vector<3x32xi32>
    %283 = arith.select %281, %2, %282 : vector<3x32xi1>, vector<3x32xi32>
    %cst_48 = arith.constant dense<2147483647> : vector<3xi32>
    %284 = vector.multi_reduction <minsi>, %283, %cst_48 [1] : vector<3x32xi32> to vector<3xi32>
    %285 = vector.shape_cast %284 : vector<3xi32> to vector<3x1xi32>
    %c9_i32 = arith.constant 9 : i32
    %286 = vector.broadcast %c9_i32 : i32 to vector<3x16xi32>
    %287 = arith.cmpi eq, %3, %286 : vector<3x16xi32>
    %288 = vector.shape_cast %285 : vector<3x1xi32> to vector<3x1xi32>
    %289 = vector.broadcast %288 : vector<3x1xi32> to vector<3x16xi32>
    %290 = arith.select %287, %289, %259 : vector<3x16xi1>, vector<3x16xi32>
    %291 = vector.broadcast %285 : vector<3x1xi32> to vector<3x32xi32>
    %292 = arith.cmpi eq, %2, %291 : vector<3x32xi32>
    %293 = arith.extui %292 : vector<3x32xi1> to vector<3x32xi32>
    %294 = arith.sitofp %293 : vector<3x32xi32> to vector<3x32xf32>
    %295 = arith.mulf %0, %294 : vector<3x32xf32>
    %cst_49 = arith.constant dense<0.000000e+00> : vector<3xf32>
    %296 = vector.multi_reduction <add>, %295, %cst_49 [1] : vector<3x32xf32> to vector<3xf32>
    %297 = vector.shape_cast %296 : vector<3xf32> to vector<3x1xf32>
    %298 = arith.mulf %1, %294 : vector<3x32xf32>
    %cst_50 = arith.constant dense<0.000000e+00> : vector<3xf32>
    %299 = vector.multi_reduction <add>, %298, %cst_50 [1] : vector<3x32xf32> to vector<3xf32>
    %300 = vector.shape_cast %299 : vector<3xf32> to vector<3x1xf32>
    %301 = vector.broadcast %297 : vector<3x1xf32> to vector<3x32xf32>
    %302 = arith.subf %0, %301 : vector<3x32xf32>
    %303 = arith.mulf %302, %302 : vector<3x32xf32>
    %304 = vector.broadcast %300 : vector<3x1xf32> to vector<3x32xf32>
    %305 = arith.subf %1, %304 : vector<3x32xf32>
    %306 = arith.mulf %305, %305 : vector<3x32xf32>
    %307 = arith.addf %303, %306 : vector<3x32xf32>
    %308 = arith.minimumf %277, %307 : vector<3x32xf32>
    %cst_51 = arith.constant dense<0xFF800000> : vector<3xf32>
    %309 = vector.multi_reduction <maximumf>, %308, %cst_51 [1] : vector<3x32xf32> to vector<3xf32>
    %310 = vector.shape_cast %309 : vector<3xf32> to vector<3x1xf32>
    %311 = vector.broadcast %310 : vector<3x1xf32> to vector<3x32xf32>
    %312 = arith.cmpf oge, %308, %311 : vector<3x32xf32>
    %c32_i32_52 = arith.constant 32 : i32
    %313 = vector.broadcast %c32_i32_52 : i32 to vector<3x32xi32>
    %314 = arith.select %312, %2, %313 : vector<3x32xi1>, vector<3x32xi32>
    %cst_53 = arith.constant dense<2147483647> : vector<3xi32>
    %315 = vector.multi_reduction <minsi>, %314, %cst_53 [1] : vector<3x32xi32> to vector<3xi32>
    %316 = vector.shape_cast %315 : vector<3xi32> to vector<3x1xi32>
    %c10_i32 = arith.constant 10 : i32
    %317 = vector.broadcast %c10_i32 : i32 to vector<3x16xi32>
    %318 = arith.cmpi eq, %3, %317 : vector<3x16xi32>
    %319 = vector.shape_cast %316 : vector<3x1xi32> to vector<3x1xi32>
    %320 = vector.broadcast %319 : vector<3x1xi32> to vector<3x16xi32>
    %321 = arith.select %318, %320, %290 : vector<3x16xi1>, vector<3x16xi32>
    %322 = vector.broadcast %316 : vector<3x1xi32> to vector<3x32xi32>
    %323 = arith.cmpi eq, %2, %322 : vector<3x32xi32>
    %324 = arith.extui %323 : vector<3x32xi1> to vector<3x32xi32>
    %325 = arith.sitofp %324 : vector<3x32xi32> to vector<3x32xf32>
    %326 = arith.mulf %0, %325 : vector<3x32xf32>
    %cst_54 = arith.constant dense<0.000000e+00> : vector<3xf32>
    %327 = vector.multi_reduction <add>, %326, %cst_54 [1] : vector<3x32xf32> to vector<3xf32>
    %328 = vector.shape_cast %327 : vector<3xf32> to vector<3x1xf32>
    %329 = arith.mulf %1, %325 : vector<3x32xf32>
    %cst_55 = arith.constant dense<0.000000e+00> : vector<3xf32>
    %330 = vector.multi_reduction <add>, %329, %cst_55 [1] : vector<3x32xf32> to vector<3xf32>
    %331 = vector.shape_cast %330 : vector<3xf32> to vector<3x1xf32>
    %332 = vector.broadcast %328 : vector<3x1xf32> to vector<3x32xf32>
    %333 = arith.subf %0, %332 : vector<3x32xf32>
    %334 = arith.mulf %333, %333 : vector<3x32xf32>
    %335 = vector.broadcast %331 : vector<3x1xf32> to vector<3x32xf32>
    %336 = arith.subf %1, %335 : vector<3x32xf32>
    %337 = arith.mulf %336, %336 : vector<3x32xf32>
    %338 = arith.addf %334, %337 : vector<3x32xf32>
    %339 = arith.minimumf %308, %338 : vector<3x32xf32>
    %cst_56 = arith.constant dense<0xFF800000> : vector<3xf32>
    %340 = vector.multi_reduction <maximumf>, %339, %cst_56 [1] : vector<3x32xf32> to vector<3xf32>
    %341 = vector.shape_cast %340 : vector<3xf32> to vector<3x1xf32>
    %342 = vector.broadcast %341 : vector<3x1xf32> to vector<3x32xf32>
    %343 = arith.cmpf oge, %339, %342 : vector<3x32xf32>
    %c32_i32_57 = arith.constant 32 : i32
    %344 = vector.broadcast %c32_i32_57 : i32 to vector<3x32xi32>
    %345 = arith.select %343, %2, %344 : vector<3x32xi1>, vector<3x32xi32>
    %cst_58 = arith.constant dense<2147483647> : vector<3xi32>
    %346 = vector.multi_reduction <minsi>, %345, %cst_58 [1] : vector<3x32xi32> to vector<3xi32>
    %347 = vector.shape_cast %346 : vector<3xi32> to vector<3x1xi32>
    %c11_i32 = arith.constant 11 : i32
    %348 = vector.broadcast %c11_i32 : i32 to vector<3x16xi32>
    %349 = arith.cmpi eq, %3, %348 : vector<3x16xi32>
    %350 = vector.shape_cast %347 : vector<3x1xi32> to vector<3x1xi32>
    %351 = vector.broadcast %350 : vector<3x1xi32> to vector<3x16xi32>
    %352 = arith.select %349, %351, %321 : vector<3x16xi1>, vector<3x16xi32>
    %353 = vector.broadcast %347 : vector<3x1xi32> to vector<3x32xi32>
    %354 = arith.cmpi eq, %2, %353 : vector<3x32xi32>
    %355 = arith.extui %354 : vector<3x32xi1> to vector<3x32xi32>
    %356 = arith.sitofp %355 : vector<3x32xi32> to vector<3x32xf32>
    %357 = arith.mulf %0, %356 : vector<3x32xf32>
    %cst_59 = arith.constant dense<0.000000e+00> : vector<3xf32>
    %358 = vector.multi_reduction <add>, %357, %cst_59 [1] : vector<3x32xf32> to vector<3xf32>
    %359 = vector.shape_cast %358 : vector<3xf32> to vector<3x1xf32>
    %360 = arith.mulf %1, %356 : vector<3x32xf32>
    %cst_60 = arith.constant dense<0.000000e+00> : vector<3xf32>
    %361 = vector.multi_reduction <add>, %360, %cst_60 [1] : vector<3x32xf32> to vector<3xf32>
    %362 = vector.shape_cast %361 : vector<3xf32> to vector<3x1xf32>
    %363 = vector.broadcast %359 : vector<3x1xf32> to vector<3x32xf32>
    %364 = arith.subf %0, %363 : vector<3x32xf32>
    %365 = arith.mulf %364, %364 : vector<3x32xf32>
    %366 = vector.broadcast %362 : vector<3x1xf32> to vector<3x32xf32>
    %367 = arith.subf %1, %366 : vector<3x32xf32>
    %368 = arith.mulf %367, %367 : vector<3x32xf32>
    %369 = arith.addf %365, %368 : vector<3x32xf32>
    %370 = arith.minimumf %339, %369 : vector<3x32xf32>
    %cst_61 = arith.constant dense<0xFF800000> : vector<3xf32>
    %371 = vector.multi_reduction <maximumf>, %370, %cst_61 [1] : vector<3x32xf32> to vector<3xf32>
    %372 = vector.shape_cast %371 : vector<3xf32> to vector<3x1xf32>
    %373 = vector.broadcast %372 : vector<3x1xf32> to vector<3x32xf32>
    %374 = arith.cmpf oge, %370, %373 : vector<3x32xf32>
    %c32_i32_62 = arith.constant 32 : i32
    %375 = vector.broadcast %c32_i32_62 : i32 to vector<3x32xi32>
    %376 = arith.select %374, %2, %375 : vector<3x32xi1>, vector<3x32xi32>
    %cst_63 = arith.constant dense<2147483647> : vector<3xi32>
    %377 = vector.multi_reduction <minsi>, %376, %cst_63 [1] : vector<3x32xi32> to vector<3xi32>
    %378 = vector.shape_cast %377 : vector<3xi32> to vector<3x1xi32>
    %c12_i32 = arith.constant 12 : i32
    %379 = vector.broadcast %c12_i32 : i32 to vector<3x16xi32>
    %380 = arith.cmpi eq, %3, %379 : vector<3x16xi32>
    %381 = vector.shape_cast %378 : vector<3x1xi32> to vector<3x1xi32>
    %382 = vector.broadcast %381 : vector<3x1xi32> to vector<3x16xi32>
    %383 = arith.select %380, %382, %352 : vector<3x16xi1>, vector<3x16xi32>
    %384 = vector.broadcast %378 : vector<3x1xi32> to vector<3x32xi32>
    %385 = arith.cmpi eq, %2, %384 : vector<3x32xi32>
    %386 = arith.extui %385 : vector<3x32xi1> to vector<3x32xi32>
    %387 = arith.sitofp %386 : vector<3x32xi32> to vector<3x32xf32>
    %388 = arith.mulf %0, %387 : vector<3x32xf32>
    %cst_64 = arith.constant dense<0.000000e+00> : vector<3xf32>
    %389 = vector.multi_reduction <add>, %388, %cst_64 [1] : vector<3x32xf32> to vector<3xf32>
    %390 = vector.shape_cast %389 : vector<3xf32> to vector<3x1xf32>
    %391 = arith.mulf %1, %387 : vector<3x32xf32>
    %cst_65 = arith.constant dense<0.000000e+00> : vector<3xf32>
    %392 = vector.multi_reduction <add>, %391, %cst_65 [1] : vector<3x32xf32> to vector<3xf32>
    %393 = vector.shape_cast %392 : vector<3xf32> to vector<3x1xf32>
    %394 = vector.broadcast %390 : vector<3x1xf32> to vector<3x32xf32>
    %395 = arith.subf %0, %394 : vector<3x32xf32>
    %396 = arith.mulf %395, %395 : vector<3x32xf32>
    %397 = vector.broadcast %393 : vector<3x1xf32> to vector<3x32xf32>
    %398 = arith.subf %1, %397 : vector<3x32xf32>
    %399 = arith.mulf %398, %398 : vector<3x32xf32>
    %400 = arith.addf %396, %399 : vector<3x32xf32>
    %401 = arith.minimumf %370, %400 : vector<3x32xf32>
    %cst_66 = arith.constant dense<0xFF800000> : vector<3xf32>
    %402 = vector.multi_reduction <maximumf>, %401, %cst_66 [1] : vector<3x32xf32> to vector<3xf32>
    %403 = vector.shape_cast %402 : vector<3xf32> to vector<3x1xf32>
    %404 = vector.broadcast %403 : vector<3x1xf32> to vector<3x32xf32>
    %405 = arith.cmpf oge, %401, %404 : vector<3x32xf32>
    %c32_i32_67 = arith.constant 32 : i32
    %406 = vector.broadcast %c32_i32_67 : i32 to vector<3x32xi32>
    %407 = arith.select %405, %2, %406 : vector<3x32xi1>, vector<3x32xi32>
    %cst_68 = arith.constant dense<2147483647> : vector<3xi32>
    %408 = vector.multi_reduction <minsi>, %407, %cst_68 [1] : vector<3x32xi32> to vector<3xi32>
    %409 = vector.shape_cast %408 : vector<3xi32> to vector<3x1xi32>
    %c13_i32 = arith.constant 13 : i32
    %410 = vector.broadcast %c13_i32 : i32 to vector<3x16xi32>
    %411 = arith.cmpi eq, %3, %410 : vector<3x16xi32>
    %412 = vector.shape_cast %409 : vector<3x1xi32> to vector<3x1xi32>
    %413 = vector.broadcast %412 : vector<3x1xi32> to vector<3x16xi32>
    %414 = arith.select %411, %413, %383 : vector<3x16xi1>, vector<3x16xi32>
    %415 = vector.broadcast %409 : vector<3x1xi32> to vector<3x32xi32>
    %416 = arith.cmpi eq, %2, %415 : vector<3x32xi32>
    %417 = arith.extui %416 : vector<3x32xi1> to vector<3x32xi32>
    %418 = arith.sitofp %417 : vector<3x32xi32> to vector<3x32xf32>
    %419 = arith.mulf %0, %418 : vector<3x32xf32>
    %cst_69 = arith.constant dense<0.000000e+00> : vector<3xf32>
    %420 = vector.multi_reduction <add>, %419, %cst_69 [1] : vector<3x32xf32> to vector<3xf32>
    %421 = vector.shape_cast %420 : vector<3xf32> to vector<3x1xf32>
    %422 = arith.mulf %1, %418 : vector<3x32xf32>
    %cst_70 = arith.constant dense<0.000000e+00> : vector<3xf32>
    %423 = vector.multi_reduction <add>, %422, %cst_70 [1] : vector<3x32xf32> to vector<3xf32>
    %424 = vector.shape_cast %423 : vector<3xf32> to vector<3x1xf32>
    %425 = vector.broadcast %421 : vector<3x1xf32> to vector<3x32xf32>
    %426 = arith.subf %0, %425 : vector<3x32xf32>
    %427 = arith.mulf %426, %426 : vector<3x32xf32>
    %428 = vector.broadcast %424 : vector<3x1xf32> to vector<3x32xf32>
    %429 = arith.subf %1, %428 : vector<3x32xf32>
    %430 = arith.mulf %429, %429 : vector<3x32xf32>
    %431 = arith.addf %427, %430 : vector<3x32xf32>
    %432 = arith.minimumf %401, %431 : vector<3x32xf32>
    %cst_71 = arith.constant dense<0xFF800000> : vector<3xf32>
    %433 = vector.multi_reduction <maximumf>, %432, %cst_71 [1] : vector<3x32xf32> to vector<3xf32>
    %434 = vector.shape_cast %433 : vector<3xf32> to vector<3x1xf32>
    %435 = vector.broadcast %434 : vector<3x1xf32> to vector<3x32xf32>
    %436 = arith.cmpf oge, %432, %435 : vector<3x32xf32>
    %c32_i32_72 = arith.constant 32 : i32
    %437 = vector.broadcast %c32_i32_72 : i32 to vector<3x32xi32>
    %438 = arith.select %436, %2, %437 : vector<3x32xi1>, vector<3x32xi32>
    %cst_73 = arith.constant dense<2147483647> : vector<3xi32>
    %439 = vector.multi_reduction <minsi>, %438, %cst_73 [1] : vector<3x32xi32> to vector<3xi32>
    %440 = vector.shape_cast %439 : vector<3xi32> to vector<3x1xi32>
    %c14_i32 = arith.constant 14 : i32
    %441 = vector.broadcast %c14_i32 : i32 to vector<3x16xi32>
    %442 = arith.cmpi eq, %3, %441 : vector<3x16xi32>
    %443 = vector.shape_cast %440 : vector<3x1xi32> to vector<3x1xi32>
    %444 = vector.broadcast %443 : vector<3x1xi32> to vector<3x16xi32>
    %445 = arith.select %442, %444, %414 : vector<3x16xi1>, vector<3x16xi32>
    %446 = vector.broadcast %440 : vector<3x1xi32> to vector<3x32xi32>
    %447 = arith.cmpi eq, %2, %446 : vector<3x32xi32>
    %448 = arith.extui %447 : vector<3x32xi1> to vector<3x32xi32>
    %449 = arith.sitofp %448 : vector<3x32xi32> to vector<3x32xf32>
    %450 = arith.mulf %0, %449 : vector<3x32xf32>
    %cst_74 = arith.constant dense<0.000000e+00> : vector<3xf32>
    %451 = vector.multi_reduction <add>, %450, %cst_74 [1] : vector<3x32xf32> to vector<3xf32>
    %452 = vector.shape_cast %451 : vector<3xf32> to vector<3x1xf32>
    %453 = arith.mulf %1, %449 : vector<3x32xf32>
    %cst_75 = arith.constant dense<0.000000e+00> : vector<3xf32>
    %454 = vector.multi_reduction <add>, %453, %cst_75 [1] : vector<3x32xf32> to vector<3xf32>
    %455 = vector.shape_cast %454 : vector<3xf32> to vector<3x1xf32>
    %456 = vector.broadcast %452 : vector<3x1xf32> to vector<3x32xf32>
    %457 = arith.subf %0, %456 : vector<3x32xf32>
    %458 = arith.mulf %457, %457 : vector<3x32xf32>
    %459 = vector.broadcast %455 : vector<3x1xf32> to vector<3x32xf32>
    %460 = arith.subf %1, %459 : vector<3x32xf32>
    %461 = arith.mulf %460, %460 : vector<3x32xf32>
    %462 = arith.addf %458, %461 : vector<3x32xf32>
    %463 = arith.minimumf %432, %462 : vector<3x32xf32>
    %cst_76 = arith.constant dense<0xFF800000> : vector<3xf32>
    %464 = vector.multi_reduction <maximumf>, %463, %cst_76 [1] : vector<3x32xf32> to vector<3xf32>
    %465 = vector.shape_cast %464 : vector<3xf32> to vector<3x1xf32>
    %466 = vector.broadcast %465 : vector<3x1xf32> to vector<3x32xf32>
    %467 = arith.cmpf oge, %463, %466 : vector<3x32xf32>
    %c32_i32_77 = arith.constant 32 : i32
    %468 = vector.broadcast %c32_i32_77 : i32 to vector<3x32xi32>
    %469 = arith.select %467, %2, %468 : vector<3x32xi1>, vector<3x32xi32>
    %cst_78 = arith.constant dense<2147483647> : vector<3xi32>
    %470 = vector.multi_reduction <minsi>, %469, %cst_78 [1] : vector<3x32xi32> to vector<3xi32>
    %471 = vector.shape_cast %470 : vector<3xi32> to vector<3x1xi32>
    %c15_i32 = arith.constant 15 : i32
    %472 = vector.broadcast %c15_i32 : i32 to vector<3x16xi32>
    %473 = arith.cmpi eq, %3, %472 : vector<3x16xi32>
    %474 = vector.shape_cast %471 : vector<3x1xi32> to vector<3x1xi32>
    %475 = vector.broadcast %474 : vector<3x1xi32> to vector<3x16xi32>
    %476 = arith.select %473, %475, %445 : vector<3x16xi1>, vector<3x16xi32>
    %477 = vector.broadcast %471 : vector<3x1xi32> to vector<3x32xi32>
    %478 = arith.cmpi eq, %2, %477 : vector<3x32xi32>
    %479 = arith.extui %478 : vector<3x32xi1> to vector<3x32xi32>
    %480 = arith.sitofp %479 : vector<3x32xi32> to vector<3x32xf32>
    %481 = arith.mulf %0, %480 : vector<3x32xf32>
    %cst_79 = arith.constant dense<0.000000e+00> : vector<3xf32>
    %482 = vector.multi_reduction <add>, %481, %cst_79 [1] : vector<3x32xf32> to vector<3xf32>
    %483 = vector.shape_cast %482 : vector<3xf32> to vector<3x1xf32>
    %484 = arith.mulf %1, %480 : vector<3x32xf32>
    %cst_80 = arith.constant dense<0.000000e+00> : vector<3xf32>
    %485 = vector.multi_reduction <add>, %484, %cst_80 [1] : vector<3x32xf32> to vector<3xf32>
    %486 = vector.shape_cast %485 : vector<3xf32> to vector<3x1xf32>
    %487 = vector.broadcast %483 : vector<3x1xf32> to vector<3x32xf32>
    %488 = arith.subf %0, %487 : vector<3x32xf32>
    %489 = arith.mulf %488, %488 : vector<3x32xf32>
    %490 = vector.broadcast %486 : vector<3x1xf32> to vector<3x32xf32>
    %491 = arith.subf %1, %490 : vector<3x32xf32>
    %492 = arith.mulf %491, %491 : vector<3x32xf32>
    %493 = arith.addf %489, %492 : vector<3x32xf32>
    %494 = arith.minimumf %463, %493 : vector<3x32xf32>
    %cst_81 = arith.constant dense<0xFF800000> : vector<3xf32>
    %495 = vector.multi_reduction <maximumf>, %494, %cst_81 [1] : vector<3x32xf32> to vector<3xf32>
    %496 = vector.shape_cast %495 : vector<3xf32> to vector<3x1xf32>
    %497 = vector.broadcast %496 : vector<3x1xf32> to vector<3x32xf32>
    %498 = arith.cmpf oge, %494, %497 : vector<3x32xf32>
    %c32_i32_82 = arith.constant 32 : i32
    %499 = vector.broadcast %c32_i32_82 : i32 to vector<3x32xi32>
    %500 = arith.select %498, %2, %499 : vector<3x32xi1>, vector<3x32xi32>
    %cst_83 = arith.constant dense<2147483647> : vector<3xi32>
    %501 = vector.multi_reduction <minsi>, %500, %cst_83 [1] : vector<3x32xi32> to vector<3xi32>
    %502 = vector.shape_cast %501 : vector<3xi32> to vector<3x1xi32>
    %c16_i32 = arith.constant 16 : i32
    %c0_84 = arith.constant 0 : index
    %c0_85 = arith.constant 0 : index
    %503 = vector.load %arg3[%c0_84, %c0_85] : memref<3x16xi32, #tpu.memory_space<vmem>>, vector<3x16xi32>
    tpu.vector_store %arg3[%c0_84, %c0_85], %476 {strides = array<i32>} : memref<3x16xi32, #tpu.memory_space<vmem>>, vector<3x16xi32>,
    return
  }
  func.func @transform_0(%arg0: i32) -> (i32, i32) {
    %c0_i32 = arith.constant 0 : i32
    %c0_i32_0 = arith.constant 0 : i32
    %c0_i32_1 = arith.constant 0 : i32
    return %c0_i32, %c0_i32_0 : i32, i32
  }
  func.func @transform_1(%arg0: i32) -> (i32, i32) {
    %c0_i32 = arith.constant 0 : i32
    %c0_i32_0 = arith.constant 0 : i32
    %c0_i32_1 = arith.constant 0 : i32
    return %c0_i32, %c0_i32_0 : i32, i32
  }
  func.func @transform_2(%arg0: i32) -> (i32, i32) {
    %c0_i32 = arith.constant 0 : i32
    %c0_i32_0 = arith.constant 0 : i32
    %c0_i32_1 = arith.constant 0 : i32
    return %c0_i32, %c0_i32_0 : i32, i32
  }
}

module attributes {stable_mosaic.version = 11 : i64} {
  func.func @_stage_kernel(%arg0: i32, %arg1: memref<384x34xf32, #tpu.memory_space<vmem>>, %arg2: memref<48x34xf32, #tpu.memory_space<vmem>>, %arg3: memref<34x32xf32, #tpu.memory_space<vmem>>, %arg4: memref<34x32xf32, #tpu.memory_space<vmem>>, %arg5: memref<3x32xf32, #tpu.memory_space<vmem>>, %arg6: memref<384x48xf32, #tpu.memory_space<vmem>>, %arg7: memref<48x384xf32, #tpu.memory_space<vmem>>, %arg8: memref<48x32xf32, #tpu.memory_space<vmem>>) attributes {dimension_semantics = [#tpu.dimension_semantics<arbitrary>], iteration_bounds = array<i64: 1>, scalar_prefetch = 0 : i64, scratch_operands = 0 : i64, tpu.core_type = #tpu.core_type<tc>, window_params = [{pipeline_mode = #tpu.pipeline_mode<synchronous>, transform_indices = @transform_0, window_bounds = array<i64: 384, 34>}, {pipeline_mode = #tpu.pipeline_mode<synchronous>, transform_indices = @transform_1, window_bounds = array<i64: 48, 34>}, {pipeline_mode = #tpu.pipeline_mode<synchronous>, transform_indices = @transform_2, window_bounds = array<i64: 34, 32>}, {pipeline_mode = #tpu.pipeline_mode<synchronous>, transform_indices = @transform_3, window_bounds = array<i64: 34, 32>}, {pipeline_mode = #tpu.pipeline_mode<synchronous>, transform_indices = @transform_4, window_bounds = array<i64: 3, 32>}, {pipeline_mode = #tpu.pipeline_mode<synchronous>, transform_indices = @transform_5, window_bounds = array<i64: 384, 48>}, {pipeline_mode = #tpu.pipeline_mode<synchronous>, transform_indices = @transform_6, window_bounds = array<i64: 48, 384>}, {pipeline_mode = #tpu.pipeline_mode<synchronous>, transform_indices = @transform_7, window_bounds = array<i64: 48, 32>}]} {
    %c0 = arith.constant 0 : index
    %c0_0 = arith.constant 0 : index
    %0 = vector.load %arg1[%c0, %c0_0] : memref<384x34xf32, #tpu.memory_space<vmem>>, vector<384x34xf32>
    %c0_1 = arith.constant 0 : index
    %c0_2 = arith.constant 0 : index
    %1 = vector.load %arg2[%c0_1, %c0_2] : memref<48x34xf32, #tpu.memory_space<vmem>>, vector<48x34xf32>
    %c0_3 = arith.constant 0 : index
    %c0_4 = arith.constant 0 : index
    %2 = vector.load %arg5[%c0_3, %c0_4] : memref<3x32xf32, #tpu.memory_space<vmem>>, vector<3x32xf32>
    %3 = vector.extract_strided_slice %2 {offsets = [0, 0], sizes = [1, 32], strides = [1, 1]} : vector<3x32xf32> to vector<1x32xf32>
    %4 = vector.extract_strided_slice %2 {offsets = [1, 0], sizes = [1, 32], strides = [1, 1]} : vector<3x32xf32> to vector<1x32xf32>
    %5 = vector.extract_strided_slice %2 {offsets = [2, 0], sizes = [1, 32], strides = [1, 1]} : vector<3x32xf32> to vector<1x32xf32>
    %c0_5 = arith.constant 0 : index
    %c0_6 = arith.constant 0 : index
    %6 = vector.load %arg3[%c0_5, %c0_6] : memref<34x32xf32, #tpu.memory_space<vmem>>, vector<34x32xf32>
    %cst = arith.constant dense<0.000000e+00> : vector<384x32xf32>
    %7 = tpu.matmul %0, %6, %cst {dimension_numbers = #tpu.dot_dimension_numbers<[1], [0], [0], [1], [0, 0, 1, 1], [], []>} : vector<384x34xf32>, vector<34x32xf32>, vector<384x32xf32> -> vector<384x32xf32>
    %c0_7 = arith.constant 0 : index
    %c0_8 = arith.constant 0 : index
    %8 = vector.load %arg4[%c0_7, %c0_8] : memref<34x32xf32, #tpu.memory_space<vmem>>, vector<34x32xf32>
    %cst_9 = arith.constant dense<0.000000e+00> : vector<48x32xf32>
    %9 = tpu.matmul %1, %8, %cst_9 {dimension_numbers = #tpu.dot_dimension_numbers<[1], [0], [0], [1], [0, 0, 1, 1], [], []>} : vector<48x34xf32>, vector<34x32xf32>, vector<48x32xf32> -> vector<48x32xf32>
    %10 = vector.broadcast %3 : vector<1x32xf32> to vector<48x32xf32>
    %11 = arith.addf %9, %10 : vector<48x32xf32>
    %c0_10 = arith.constant 0 : index
    %c0_11 = arith.constant 0 : index
    %12 = vector.load %arg6[%c0_10, %c0_11] : memref<384x48xf32, #tpu.memory_space<vmem>>, vector<384x48xf32>
    %cst_12 = arith.constant dense<0.000000e+00> : vector<384x32xf32>
    %13 = tpu.matmul %12, %11, %cst_12 {dimension_numbers = #tpu.dot_dimension_numbers<[1], [0], [0], [1], [0, 0, 1, 1], [], []>} : vector<384x48xf32>, vector<48x32xf32>, vector<384x32xf32> -> vector<384x32xf32>
    %14 = arith.addf %7, %13 : vector<384x32xf32>
    %cst_13 = arith.constant 0.000000e+00 : f32
    %15 = vector.broadcast %cst_13 : f32 to vector<384x32xf32>
    %16 = arith.maximumf %14, %15 : vector<384x32xf32>
    %cst_14 = arith.constant dense<0.000000e+00> : vector<384xf32>
    %17 = vector.multi_reduction <add>, %16, %cst_14 [1] : vector<384x32xf32> to vector<384xf32>
    %18 = vector.shape_cast %17 : vector<384xf32> to vector<384x1xf32>
    %cst_15 = arith.constant 3.200000e+01 : f32
    %19 = vector.broadcast %cst_15 : f32 to vector<384x1xf32>
    %20 = arith.divf %18, %19 : vector<384x1xf32>
    %21 = vector.broadcast %20 : vector<384x1xf32> to vector<384x32xf32>
    %22 = arith.subf %16, %21 : vector<384x32xf32>
    %23 = arith.mulf %22, %22 : vector<384x32xf32>
    %cst_16 = arith.constant dense<0.000000e+00> : vector<384xf32>
    %24 = vector.multi_reduction <add>, %23, %cst_16 [1] : vector<384x32xf32> to vector<384xf32>
    %25 = vector.shape_cast %24 : vector<384xf32> to vector<384x1xf32>
    %cst_17 = arith.constant 3.200000e+01 : f32
    %26 = vector.broadcast %cst_17 : f32 to vector<384x1xf32>
    %27 = arith.divf %25, %26 : vector<384x1xf32>
    %28 = vector.broadcast %20 : vector<384x1xf32> to vector<384x32xf32>
    %29 = arith.subf %16, %28 : vector<384x32xf32>
    %cst_18 = arith.constant 9.99999974E-6 : f32
    %30 = vector.broadcast %cst_18 : f32 to vector<384x1xf32>
    %31 = arith.addf %27, %30 : vector<384x1xf32>
    %32 = math.rsqrt %31 : vector<384x1xf32>
    %33 = vector.broadcast %32 : vector<384x1xf32> to vector<384x32xf32>
    %34 = arith.mulf %29, %33 : vector<384x32xf32>
    %35 = vector.broadcast %4 : vector<1x32xf32> to vector<384x32xf32>
    %36 = arith.mulf %34, %35 : vector<384x32xf32>
    %37 = vector.broadcast %5 : vector<1x32xf32> to vector<384x32xf32>
    %38 = arith.addf %36, %37 : vector<384x32xf32>
    %c0_19 = arith.constant 0 : index
    %c0_20 = arith.constant 0 : index
    %39 = vector.load %arg7[%c0_19, %c0_20] : memref<48x384xf32, #tpu.memory_space<vmem>>, vector<48x384xf32>
    %cst_21 = arith.constant dense<0.000000e+00> : vector<48x32xf32>
    %40 = tpu.matmul %39, %38, %cst_21 {dimension_numbers = #tpu.dot_dimension_numbers<[1], [0], [0], [1], [0, 0, 1, 1], [], []>} : vector<48x384xf32>, vector<384x32xf32>, vector<48x32xf32> -> vector<48x32xf32>
    %c0_22 = arith.constant 0 : index
    %c0_23 = arith.constant 0 : index
    %41 = vector.load %arg8[%c0_22, %c0_23] : memref<48x32xf32, #tpu.memory_space<vmem>>, vector<48x32xf32>
    tpu.vector_store %arg8[%c0_22, %c0_23], %40 {strides = array<i32>} : memref<48x32xf32, #tpu.memory_space<vmem>>, vector<48x32xf32>,
    return
  }
  func.func @transform_0(%arg0: i32) -> (i32, i32) {
    %c0_i32 = arith.constant 0 : i32
    %c0_i32_0 = arith.constant 0 : i32
    %c0_i32_1 = arith.constant 0 : i32
    return %c0_i32, %c0_i32_0 : i32, i32
  }
  func.func @transform_1(%arg0: i32) -> (i32, i32) {
    %c0_i32 = arith.constant 0 : i32
    %c0_i32_0 = arith.constant 0 : i32
    %c0_i32_1 = arith.constant 0 : i32
    return %c0_i32, %c0_i32_0 : i32, i32
  }
  func.func @transform_2(%arg0: i32) -> (i32, i32) {
    %c0_i32 = arith.constant 0 : i32
    %c0_i32_0 = arith.constant 0 : i32
    %c0_i32_1 = arith.constant 0 : i32
    return %c0_i32, %c0_i32_0 : i32, i32
  }
  func.func @transform_3(%arg0: i32) -> (i32, i32) {
    %c0_i32 = arith.constant 0 : i32
    %c0_i32_0 = arith.constant 0 : i32
    %c0_i32_1 = arith.constant 0 : i32
    return %c0_i32, %c0_i32_0 : i32, i32
  }
  func.func @transform_4(%arg0: i32) -> (i32, i32) {
    %c0_i32 = arith.constant 0 : i32
    %c0_i32_0 = arith.constant 0 : i32
    %c0_i32_1 = arith.constant 0 : i32
    return %c0_i32, %c0_i32_0 : i32, i32
  }
  func.func @transform_5(%arg0: i32) -> (i32, i32) {
    %c0_i32 = arith.constant 0 : i32
    %c0_i32_0 = arith.constant 0 : i32
    %c0_i32_1 = arith.constant 0 : i32
    return %c0_i32, %c0_i32_0 : i32, i32
  }
  func.func @transform_6(%arg0: i32) -> (i32, i32) {
    %c0_i32 = arith.constant 0 : i32
    %c0_i32_0 = arith.constant 0 : i32
    %c0_i32_1 = arith.constant 0 : i32
    return %c0_i32, %c0_i32_0 : i32, i32
  }
  func.func @transform_7(%arg0: i32) -> (i32, i32) {
    %c0_i32 = arith.constant 0 : i32
    %c0_i32_0 = arith.constant 0 : i32
    %c0_i32_1 = arith.constant 0 : i32
    return %c0_i32, %c0_i32_0 : i32, i32
  }
}

</mosaic_0001>

<bundles_post_ra>
// kernel: neg.1
= control target key start
LH: loop header
LB: loop body
LE: loop exit
PB: predicated region body
PF: predicated region fallthrough
CT: control target
= control target key end

     0   :  { %s104_s0 = inlined_call_operand.vmem [shape: f32[3,16,32], index: 0, kind: input, shape index: {}]   ;;  %s105_s1 = inlined_call_operand.vmem [shape: f32[3,16,32], index: 1, kind: output, shape index: {}]  }
   0x1   :  { %v2_v0 = vld [vmem:[%s104_s0] sm:$0xff]  ;;  %v48_v1 = vld [vmem:[%s104_s0 + $0x10] sm:$0xff]  ;;  %v52_v6 = vld [vmem:[%s104_s0 + $0x8] sm:$0xff] }
   0x2   :  { %v50_v2 = vld [vmem:[%s104_s0 + $0x20] sm:$0xff]  ;;  %v5_v3 = vxor.u32 2147483648, %v2_v0  ;;  %v12_v4 = vxor.u32 2147483648, %v48_v1  ;;  %v54_v7 = vld [vmem:[%s104_s0 + $0x18] sm:$0xff]  ;;  %v56_v8 = vld [vmem:[%s104_s0 + $0x28] sm:$0xff]  ;;  %v28_v9 = vxor.u32 2147483648, %v52_v6 }
   0x3   :  { %v20_v5 = vxor.u32 2147483648, %v50_v2  ;;  %v36_v10 = vxor.u32 2147483648, %v54_v7  ;;  %v44_v11 = vxor.u32 2147483648, %v56_v8 }
   0x4   :  { %7 = vst [vmem:[%s105_s1] sm:$0xff] %v5_v3  ;;  %49 = vst [vmem:[%s105_s1 + $0x10] sm:$0xff] %v12_v4 }
   0x5   :  { %51 = vst [vmem:[%s105_s1 + $0x20] sm:$0xff] %v20_v5  ;;  %53 = vst [vmem:[%s105_s1 + $0x8] sm:$0xff] %v28_v9 }
   0x6   :  { %55 = vst [vmem:[%s105_s1 + $0x18] sm:$0xff] %v36_v10  ;;  %57 = vst [vmem:[%s105_s1 + $0x28] sm:$0xff] %v44_v11 }

// kernel: _geo_stage_step.2
= control target key start
LH: loop header
LB: loop body
LE: loop exit
PB: predicated region body
PF: predicated region fallthrough
CT: control target
= control target key end

     0   :  { %v13_v0 = vlaneseq  ;;  %v625_v4 = vmov 0.0   ;;  %vm19_vm1 = vcmask 256000   ;;  %s838_s0 = inlined_call_operand.vmem [shape: f32[3,32], index: 0, kind: input, shape index: {}]   ;;  %s839_s1 = inlined_call_operand.vmem [shape: f32[3,32], index: 1, kind: input, shape index: {}]   ;;  %s840_s2 = inlined_call_operand.vmem [shape: s32[3,16], index: 2, kind: output, shape index: {}]  }
   0x1   :  { %v646_v2 = vld [vmem:[%s838_s0] sm:$0x7] }
   0x2   :  { %v641_v1 = vand.u32 127, %v13_v0  ;;  %v651_v3 = vld [vmem:[%s839_s1] sm:$0x7] }
   0x4   :  { %vm15_vm0 = vcmp.eq.s32.totalorder %v641_v1, 0  ;;  %vm53_vm7 = vcmp.eq.s32.totalorder %v641_v1, 1  ;;  %vm92_vm8 = vcmp.eq.s32.totalorder %v641_v1, 2  ;;  %vm131_vm12 = vcmp.eq.s32.totalorder %v641_v1, 3 }
   0x5   :  { %v607_v5 = vsel %vm15_vm0, 1.0, %v625_v4  ;;  %vm170_vm0 = vcmp.eq.s32.totalorder %v641_v1, 4 }
   0x6   :  { %v18_v6 = vmul.f32 %v607_v5, %v646_v2  ;;  %v23_v7 = vmul.f32 %v607_v5, %v651_v3 }
   0x8   :  { %v20_v8 = vsel %vm19_vm1, %v18_v6, 0.0  ;;  %v24_v9 = vsel %vm19_vm1, %v23_v7, 0.0 }
   0x9   :  { %21 = vadd.xlane.f32.xlu0 %v20_v8 }
   0xd   :  { %25 = vadd.xlane.f32.xlu0 %v24_v9 }
  0x96   :  { %v22_v10 = vpop.xlane.xlu0 %21 }
  0x97   :  { %v27_v11 = vsub.f32 %v646_v2, %v22_v10 }
  0x99   :  { %v28_v14 = vmul.f32 %v27_v11, %v27_v11 }
  0x9a   :  { %v26_v12 = vpop.xlane.xlu0 %25 }
  0x9b   :  { %v29_v13 = vsub.f32 %v651_v3, %v26_v12 }
  0x9d   :  { %v30_v15 = vmul.f32 %v29_v13, %v29_v13 }
  0x9f   :  { %v31_v16 = vadd.f32 %v30_v15, %v28_v14 }
  0xa1   :  { %v32_v17 = vmin.f32 %v31_v16, 1e+10 }
  0xa3   :  { %v33_v18 = vsel %vm19_vm1, %v32_v17, -inf }
  0xa4   :  { %34 = vmax.xlane.f32.xlu1 %v33_v18 }
 0x131   :  { %v35_v19 = vpop.xlane.xlu1 %34 }
 0x132   :  { %vm36_vm2 = vcmp.ge.f32.partialorder %v32_v17, %v35_v19 }
 0x133   :  { %v37_v20 = vsel %vm36_vm2, %v641_v1, 32 }
 0x134   :  { %v38_v21 = vsel %vm19_vm1, %v37_v20, 2147483647 }
 0x135   :  { %v40_v22 = vshra.s32 %v38_v21, 16  ;;  %v39_v24 = vand.u32 65535, %v38_v21 }
 0x137   :  { %v42_v23 = vcvt.s32.f32 %v40_v22  ;;  %v41_v26 = vcvt.s32.f32 %v39_v24 }
 0x139   :  { %43 = vmin.xlane.f32.xlu1 %v42_v23 }
 0x1c6   :  { %v44_v25 = vpop.xlane.xlu1 %43 }
 0x1c7   :  { %vm45_vm3 = vcmp.eq.f32.partialorder %v42_v23, %v44_v25  ;;  %v50_v28 = vcvt.f32.s32 %v44_v25 }
 0x1c8   :  { %v46_v27 = vsel %vm45_vm3, %v41_v26, inf }
 0x1c9   :  { %47 = vmin.xlane.f32.xlu0 %v46_v27  ;;  %v51_v30 = vshll.u32 %v50_v28, 16 }
 0x256   :  { %v48_v29 = vpop.xlane.xlu0 %47 }
 0x257   :  { %v49_v31 = vcvt.f32.s32 %v48_v29 }
 0x259   :  { %v52_v32 = vadd.s32 %v51_v30, %v49_v31 }
 0x25b   :  { %vm55_vm4 = vcmp.eq.s32.totalorder %v641_v1, %v52_v32  ;;  %v54_v61 = vsel %vm53_vm7, %v52_v32, 0 }
 0x25c   :  { %v608_v33 = vsel %vm55_vm4, 1.0, %v625_v4 }
 0x25d   :  { %v62_v34 = vmul.f32 %v608_v33, %v651_v3  ;;  %v58_v35 = vmul.f32 %v608_v33, %v646_v2 }
 0x25f   :  { %v63_v36 = vsel %vm19_vm1, %v62_v34, 0.0  ;;  %v59_v37 = vsel %vm19_vm1, %v58_v35, 0.0 }
 0x260   :  { %64 = vadd.xlane.f32.xlu0 %v63_v36  ;;  %60 = vadd.xlane.f32.xlu1 %v59_v37 }
 0x2ed   :  { %v65_v38 = vpop.xlane.xlu0 %64  ;;  %v61_v39 = vpop.xlane.xlu1 %60 }
 0x2ee   :  { %v68_v40 = vsub.f32 %v651_v3, %v65_v38  ;;  %v66_v41 = vsub.f32 %v646_v2, %v61_v39 }
 0x2f0   :  { %v69_v42 = vmul.f32 %v68_v40, %v68_v40  ;;  %v67_v43 = vmul.f32 %v66_v41, %v66_v41 }
 0x2f2   :  { %v70_v44 = vadd.f32 %v69_v42, %v67_v43 }
 0x2f4   :  { %v71_v45 = vmin.f32 %v32_v17, %v70_v44 }
 0x2f6   :  { %v72_v46 = vsel %vm19_vm1, %v71_v45, -inf }
 0x2f7   :  { %73 = vmax.xlane.f32.xlu1 %v72_v46 }
 0x384   :  { %v74_v47 = vpop.xlane.xlu1 %73 }
 0x385   :  { %vm75_vm5 = vcmp.ge.f32.partialorder %v71_v45, %v74_v47 }
 0x386   :  { %v76_v48 = vsel %vm75_vm5, %v641_v1, 32  ;;  %vm209_vm5 = vcmp.eq.s32.totalorder %v641_v1, 5 }
 0x387   :  { %v77_v49 = vsel %vm19_vm1, %v76_v48, 2147483647 }
 0x388   :  { %v79_v50 = vshra.s32 %v77_v49, 16  ;;  %v78_v52 = vand.u32 65535, %v77_v49 }
 0x38a   :  { %v81_v51 = vcvt.s32.f32 %v79_v50  ;;  %v80_v54 = vcvt.s32.f32 %v78_v52 }
 0x38c   :  { %82 = vmin.xlane.f32.xlu0 %v81_v51 }
 0x419   :  { %v83_v53 = vpop.xlane.xlu0 %82 }
 0x41a   :  { %vm84_vm6 = vcmp.eq.f32.partialorder %v81_v51, %v83_v53  ;;  %v89_v56 = vcvt.f32.s32 %v83_v53 }
 0x41b   :  { %v85_v55 = vsel %vm84_vm6, %v80_v54, inf }
 0x41c   :  { %86 = vmin.xlane.f32.xlu1 %v85_v55  ;;  %v90_v58 = vshll.u32 %v89_v56, 16 }
 0x4a9   :  { %v87_v57 = vpop.xlane.xlu1 %86 }
 0x4aa   :  { %v88_v59 = vcvt.f32.s32 %v87_v57 }
 0x4ac   :  { %v91_v60 = vadd.s32 %v90_v58, %v88_v59 }
 0x4ae   :  { %v93_v62 = vsel %vm92_vm8, %v91_v60, %v54_v61  ;;  %vm94_vm9 = vcmp.eq.s32.totalorder %v641_v1, %v91_v60 }
 0x4af   :  { %v609_v63 = vsel %vm94_vm9, 1.0, %v625_v4  ;;  %vm248_vm9 = vcmp.eq.s32.totalorder %v641_v1, 6 }
 0x4b0   :  { %v101_v0 = vmul.f32 %v609_v63, %v651_v3  ;;  %v97_v5 = vmul.f32 %v609_v63, %v646_v2 }
 0x4b2   :  { %v102_v6 = vsel %vm19_vm1, %v101_v0, 0.0  ;;  %v98_v7 = vsel %vm19_vm1, %v97_v5, 0.0 }
 0x4b3   :  { %103 = vadd.xlane.f32.xlu1 %v102_v6  ;;  %99 = vadd.xlane.f32.xlu0 %v98_v7 }
 0x540   :  { %v104_v8 = vpop.xlane.xlu1 %103  ;;  %v100_v9 = vpop.xlane.xlu0 %99 }
 0x541   :  { %v107_v10 = vsub.f32 %v651_v3, %v104_v8  ;;  %v105_v11 = vsub.f32 %v646_v2, %v100_v9 }
 0x543   :  { %v108_v12 = vmul.f32 %v107_v10, %v107_v10  ;;  %v106_v13 = vmul.f32 %v105_v11, %v105_v11 }
 0x545   :  { %v109_v14 = vadd.f32 %v108_v12, %v106_v13 }
 0x547   :  { %v110_v15 = vmin.f32 %v71_v45, %v109_v14 }
 0x549   :  { %v111_v16 = vsel %vm19_vm1, %v110_v15, -inf }
 0x54a   :  { %112 = vmax.xlane.f32.xlu0 %v111_v16 }
 0x5d7   :  { %v113_v17 = vpop.xlane.xlu0 %112 }
 0x5d8   :  { %vm114_vm10 = vcmp.ge.f32.partialorder %v110_v15, %v113_v17 }
 0x5d9   :  { %v115_v18 = vsel %vm114_vm10, %v641_v1, 32 }
 0x5da   :  { %v116_v19 = vsel %vm19_vm1, %v115_v18, 2147483647 }
 0x5db   :  { %v118_v20 = vshra.s32 %v116_v19, 16  ;;  %v117_v22 = vand.u32 65535, %v116_v19 }
 0x5dd   :  { %v120_v21 = vcvt.s32.f32 %v118_v20  ;;  %v119_v24 = vcvt.s32.f32 %v117_v22 }
 0x5df   :  { %121 = vmin.xlane.f32.xlu1 %v120_v21 }
 0x66c   :  { %v122_v23 = vpop.xlane.xlu1 %121 }
 0x66d   :  { %vm123_vm11 = vcmp.eq.f32.partialorder %v120_v21, %v122_v23  ;;  %v128_v26 = vcvt.f32.s32 %v122_v23 }
 0x66e   :  { %v124_v25 = vsel %vm123_vm11, %v119_v24, inf }
 0x66f   :  { %125 = vmin.xlane.f32.xlu0 %v124_v25  ;;  %v129_v28 = vshll.u32 %v128_v26, 16 }
 0x6fc   :  { %v126_v27 = vpop.xlane.xlu0 %125 }
 0x6fd   :  { %v127_v29 = vcvt.f32.s32 %v126_v27 }
 0x6ff   :  { %v130_v30 = vadd.s32 %v129_v28, %v127_v29 }
 0x701   :  { %v132_v31 = vsel %vm131_vm12, %v130_v30, %v93_v62  ;;  %vm133_vm13 = vcmp.eq.s32.totalorder %v641_v1, %v130_v30 }
 0x702   :  { %v610_v32 = vsel %vm133_vm13, 1.0, %v625_v4  ;;  %vm287_vm13 = vcmp.eq.s32.totalorder %v641_v1, 7 }
 0x703   :  { %v140_v33 = vmul.f32 %v610_v32, %v651_v3  ;;  %v136_v34 = vmul.f32 %v610_v32, %v646_v2 }
 0x705   :  { %v141_v35 = vsel %vm19_vm1, %v140_v33, 0.0  ;;  %v137_v36 = vsel %vm19_vm1, %v136_v34, 0.0 }
 0x706   :  { %142 = vadd.xlane.f32.xlu0 %v141_v35  ;;  %138 = vadd.xlane.f32.xlu1 %v137_v36 }
 0x793   :  { %v143_v37 = vpop.xlane.xlu0 %142  ;;  %v139_v38 = vpop.xlane.xlu1 %138 }
 0x794   :  { %v146_v39 = vsub.f32 %v651_v3, %v143_v37  ;;  %v144_v40 = vsub.f32 %v646_v2, %v139_v38 }
 0x796   :  { %v147_v41 = vmul.f32 %v146_v39, %v146_v39  ;;  %v145_v42 = vmul.f32 %v144_v40, %v144_v40 }
 0x798   :  { %v148_v43 = vadd.f32 %v147_v41, %v145_v42 }
 0x79a   :  { %v149_v44 = vmin.f32 %v110_v15, %v148_v43 }
 0x79c   :  { %v150_v45 = vsel %vm19_vm1, %v149_v44, -inf }
 0x79d   :  { %151 = vmax.xlane.f32.xlu1 %v150_v45 }
 0x82a   :  { %v152_v46 = vpop.xlane.xlu1 %151 }
 0x82b   :  { %vm153_vm14 = vcmp.ge.f32.partialorder %v149_v44, %v152_v46 }
 0x82c   :  { %v154_v47 = vsel %vm153_vm14, %v641_v1, 32 }
 0x82d   :  { %v155_v48 = vsel %vm19_vm1, %v154_v47, 2147483647 }
 0x82e   :  { %v157_v49 = vshra.s32 %v155_v48, 16  ;;  %v156_v51 = vand.u32 65535, %v155_v48 }
 0x830   :  { %v159_v50 = vcvt.s32.f32 %v157_v49  ;;  %v158_v53 = vcvt.s32.f32 %v156_v51 }
 0x832   :  { %160 = vmin.xlane.f32.xlu0 %v159_v50 }
 0x8bf   :  { %v161_v52 = vpop.xlane.xlu0 %160 }
 0x8c0   :  { %vm162_vm15 = vcmp.eq.f32.partialorder %v159_v50, %v161_v52  ;;  %v167_v55 = vcvt.f32.s32 %v161_v52 }
 0x8c1   :  { %v163_v54 = vsel %vm162_vm15, %v158_v53, inf }
 0x8c2   :  { %164 = vmin.xlane.f32.xlu1 %v163_v54  ;;  %v168_v57 = vshll.u32 %v167_v55, 16 }
 0x94f   :  { %v165_v56 = vpop.xlane.xlu1 %164 }
 0x950   :  { %v166_v58 = vcvt.f32.s32 %v165_v56 }
 0x952   :  { %v169_v59 = vadd.s32 %v168_v57, %v166_v58 }
 0x954   :  { %v171_v60 = vsel %vm170_vm0, %v169_v59, %v132_v31  ;;  %vm172_vm2 = vcmp.eq.s32.totalorder %v641_v1, %v169_v59 }
 0x955   :  { %v611_v61 = vsel %vm172_vm2, 1.0, %v625_v4  ;;  %vm326_vm2 = vcmp.eq.s32.totalorder %v641_v1, 8 }
 0x956   :  { %v179_v62 = vmul.f32 %v611_v61, %v651_v3  ;;  %v175_v63 = vmul.f32 %v611_v61, %v646_v2 }
 0x958   :  { %v180_v0 = vsel %vm19_vm1, %v179_v62, 0.0  ;;  %v176_v5 = vsel %vm19_vm1, %v175_v63, 0.0 }
 0x959   :  { %181 = vadd.xlane.f32.xlu1 %v180_v0  ;;  %177 = vadd.xlane.f32.xlu0 %v176_v5 }
 0x9e6   :  { %v182_v6 = vpop.xlane.xlu1 %181  ;;  %v178_v7 = vpop.xlane.xlu0 %177 }
 0x9e7   :  { %v185_v8 = vsub.f32 %v651_v3, %v182_v6  ;;  %v183_v9 = vsub.f32 %v646_v2, %v178_v7 }
 0x9e9   :  { %v186_v10 = vmul.f32 %v185_v8, %v185_v8  ;;  %v184_v11 = vmul.f32 %v183_v9, %v183_v9 }
 0x9eb   :  { %v187_v12 = vadd.f32 %v186_v10, %v184_v11 }
 0x9ed   :  { %v188_v13 = vmin.f32 %v149_v44, %v187_v12 }
 0x9ef   :  { %v189_v14 = vsel %vm19_vm1, %v188_v13, -inf }
 0x9f0   :  { %190 = vmax.xlane.f32.xlu0 %v189_v14 }
 0xa7d   :  { %v191_v15 = vpop.xlane.xlu0 %190 }
 0xa7e   :  { %vm192_vm3 = vcmp.ge.f32.partialorder %v188_v13, %v191_v15 }
 0xa7f   :  { %v193_v16 = vsel %vm192_vm3, %v641_v1, 32 }
 0xa80   :  { %v194_v17 = vsel %vm19_vm1, %v193_v16, 2147483647 }
 0xa81   :  { %v196_v18 = vshra.s32 %v194_v17, 16  ;;  %v195_v20 = vand.u32 65535, %v194_v17 }
 0xa83   :  { %v198_v19 = vcvt.s32.f32 %v196_v18  ;;  %v197_v22 = vcvt.s32.f32 %v195_v20 }
 0xa85   :  { %199 = vmin.xlane.f32.xlu1 %v198_v19 }
 0xb12   :  { %v200_v21 = vpop.xlane.xlu1 %199 }
 0xb13   :  { %vm201_vm4 = vcmp.eq.f32.partialorder %v198_v19, %v200_v21  ;;  %v206_v24 = vcvt.f32.s32 %v200_v21 }
 0xb14   :  { %v202_v23 = vsel %vm201_vm4, %v197_v22, inf }
 0xb15   :  { %203 = vmin.xlane.f32.xlu0 %v202_v23  ;;  %v207_v26 = vshll.u32 %v206_v24, 16 }
 0xba2   :  { %v204_v25 = vpop.xlane.xlu0 %203 }
 0xba3   :  { %v205_v27 = vcvt.f32.s32 %v204_v25 }
 0xba5   :  { %v208_v28 = vadd.s32 %v207_v26, %v205_v27 }
 0xba7   :  { %v210_v29 = vsel %vm209_vm5, %v208_v28, %v171_v60  ;;  %vm211_vm6 = vcmp.eq.s32.totalorder %v641_v1, %v208_v28 }
 0xba8   :  { %v612_v30 = vsel %vm211_vm6, 1.0, %v625_v4  ;;  %vm365_vm6 = vcmp.eq.s32.totalorder %v641_v1, 9 }
 0xba9   :  { %v218_v31 = vmul.f32 %v612_v30, %v651_v3  ;;  %v214_v32 = vmul.f32 %v612_v30, %v646_v2 }
 0xbab   :  { %v219_v33 = vsel %vm19_vm1, %v218_v31, 0.0  ;;  %v215_v34 = vsel %vm19_vm1, %v214_v32, 0.0 }
 0xbac   :  { %220 = vadd.xlane.f32.xlu0 %v219_v33  ;;  %216 = vadd.xlane.f32.xlu1 %v215_v34 }
 0xc39   :  { %v221_v35 = vpop.xlane.xlu0 %220  ;;  %v217_v36 = vpop.xlane.xlu1 %216 }
 0xc3a   :  { %v224_v37 = vsub.f32 %v651_v3, %v221_v35  ;;  %v222_v38 = vsub.f32 %v646_v2, %v217_v36 }
 0xc3c   :  { %v225_v39 = vmul.f32 %v224_v37, %v224_v37  ;;  %v223_v40 = vmul.f32 %v222_v38, %v222_v38 }
 0xc3e   :  { %v226_v41 = vadd.f32 %v225_v39, %v223_v40 }
 0xc40   :  { %v227_v42 = vmin.f32 %v188_v13, %v226_v41 }
 0xc42   :  { %v228_v43 = vsel %vm19_vm1, %v227_v42, -inf }
 0xc43   :  { %229 = vmax.xlane.f32.xlu1 %v228_v43 }
 0xcd0   :  { %v230_v44 = vpop.xlane.xlu1 %229 }
 0xcd1   :  { %vm231_vm7 = vcmp.ge.f32.partialorder %v227_v42, %v230_v44 }
 0xcd2   :  { %v232_v45 = vsel %vm231_vm7, %v641_v1, 32 }
 0xcd3   :  { %v233_v46 = vsel %vm19_vm1, %v232_v45, 2147483647 }
 0xcd4   :  { %v235_v47 = vshra.s32 %v233_v46, 16  ;;  %v234_v49 = vand.u32 65535, %v233_v46 }
 0xcd6   :  { %v237_v48 = vcvt.s32.f32 %v235_v47  ;;  %v236_v51 = vcvt.s32.f32 %v234_v49 }
 0xcd8   :  { %238 = vmin.xlane.f32.xlu0 %v237_v48 }
 0xd65   :  { %v239_v50 = vpop.xlane.xlu0 %238 }
 0xd66   :  { %vm240_vm8 = vcmp.eq.f32.partialorder %v237_v48, %v239_v50  ;;  %v245_v53 = vcvt.f32.s32 %v239_v50 }
 0xd67   :  { %v241_v52 = vsel %vm240_vm8, %v236_v51, inf }
 0xd68   :  { %242 = vmin.xlane.f32.xlu1 %v241_v52  ;;  %v246_v55 = vshll.u32 %v245_v53, 16 }
 0xdf5   :  { %v243_v54 = vpop.xlane.xlu1 %242 }
 0xdf6   :  { %v244_v56 = vcvt.f32.s32 %v243_v54 }
 0xdf8   :  { %v247_v57 = vadd.s32 %v246_v55, %v244_v56 }
 0xdfa   :  { %v249_v58 = vsel %vm248_vm9, %v247_v57, %v210_v29  ;;  %vm250_vm10 = vcmp.eq.s32.totalorder %v641_v1, %v247_v57 }
 0xdfb   :  { %v613_v59 = vsel %vm250_vm10, 1.0, %v625_v4  ;;  %vm404_vm10 = vcmp.eq.s32.totalorder %v641_v1, 10 }
 0xdfc   :  { %v257_v60 = vmul.f32 %v613_v59, %v651_v3  ;;  %v253_v61 = vmul.f32 %v613_v59, %v646_v2 }
 0xdfe   :  { %v258_v62 = vsel %vm19_vm1, %v257_v60, 0.0  ;;  %v254_v63 = vsel %vm19_vm1, %v253_v61, 0.0 }
 0xdff   :  { %259 = vadd.xlane.f32.xlu1 %v258_v62  ;;  %255 = vadd.xlane.f32.xlu0 %v254_v63 }
 0xe8c   :  { %v260_v0 = vpop.xlane.xlu1 %259  ;;  %v256_v5 = vpop.xlane.xlu0 %255 }
 0xe8d   :  { %v263_v6 = vsub.f32 %v651_v3, %v260_v0  ;;  %v261_v7 = vsub.f32 %v646_v2, %v256_v5 }
 0xe8f   :  { %v264_v8 = vmul.f32 %v263_v6, %v263_v6  ;;  %v262_v9 = vmul.f32 %v261_v7, %v261_v7 }
 0xe91   :  { %v265_v10 = vadd.f32 %v264_v8, %v262_v9 }
 0xe93   :  { %v266_v11 = vmin.f32 %v227_v42, %v265_v10 }
 0xe95   :  { %v267_v12 = vsel %vm19_vm1, %v266_v11, -inf }
 0xe96   :  { %268 = vmax.xlane.f32.xlu0 %v267_v12 }
 0xf23   :  { %v269_v13 = vpop.xlane.xlu0 %268 }
 0xf24   :  { %vm270_vm11 = vcmp.ge.f32.partialorder %v266_v11, %v269_v13 }
 0xf25   :  { %v271_v14 = vsel %vm270_vm11, %v641_v1, 32 }
 0xf26   :  { %v272_v15 = vsel %vm19_vm1, %v271_v14, 2147483647 }
 0xf27   :  { %v274_v16 = vshra.s32 %v272_v15, 16  ;;  %v273_v18 = vand.u32 65535, %v272_v15 }
 0xf29   :  { %v276_v17 = vcvt.s32.f32 %v274_v16  ;;  %v275_v20 = vcvt.s32.f32 %v273_v18 }
 0xf2b   :  { %277 = vmin.xlane.f32.xlu1 %v276_v17 }
 0xfb8   :  { %v278_v19 = vpop.xlane.xlu1 %277 }
 0xfb9   :  { %vm279_vm12 = vcmp.eq.f32.partialorder %v276_v17, %v278_v19  ;;  %v284_v22 = vcvt.f32.s32 %v278_v19 }
 0xfba   :  { %v280_v21 = vsel %vm279_vm12, %v275_v20, inf }
 0xfbb   :  { %281 = vmin.xlane.f32.xlu0 %v280_v21  ;;  %v285_v24 = vshll.u32 %v284_v22, 16 }
0x1048   :  { %v282_v23 = vpop.xlane.xlu0 %281 }
0x1049   :  { %v283_v25 = vcvt.f32.s32 %v282_v23 }
0x104b   :  { %v286_v26 = vadd.s32 %v285_v24, %v283_v25 }
0x104d   :  { %v288_v27 = vsel %vm287_vm13, %v286_v26, %v249_v58  ;;  %vm289_vm14 = vcmp.eq.s32.totalorder %v641_v1, %v286_v26 }
0x104e   :  { %v614_v28 = vsel %vm289_vm14, 1.0, %v625_v4  ;;  %vm443_vm14 = vcmp.eq.s32.totalorder %v641_v1, 11 }
0x104f   :  { %v296_v29 = vmul.f32 %v614_v28, %v651_v3  ;;  %v292_v30 = vmul.f32 %v614_v28, %v646_v2 }
0x1051   :  { %v297_v31 = vsel %vm19_vm1, %v296_v29, 0.0  ;;  %v293_v32 = vsel %vm19_vm1, %v292_v30, 0.0 }
0x1052   :  { %298 = vadd.xlane.f32.xlu0 %v297_v31  ;;  %294 = vadd.xlane.f32.xlu1 %v293_v32 }
0x10df   :  { %v299_v33 = vpop.xlane.xlu0 %298  ;;  %v295_v34 = vpop.xlane.xlu1 %294 }
0x10e0   :  { %v302_v35 = vsub.f32 %v651_v3, %v299_v33  ;;  %v300_v36 = vsub.f32 %v646_v2, %v295_v34 }
0x10e2   :  { %v303_v37 = vmul.f32 %v302_v35, %v302_v35  ;;  %v301_v38 = vmul.f32 %v300_v36, %v300_v36 }
0x10e4   :  { %v304_v39 = vadd.f32 %v303_v37, %v301_v38 }
0x10e6   :  { %v305_v40 = vmin.f32 %v266_v11, %v304_v39 }
0x10e8   :  { %v306_v41 = vsel %vm19_vm1, %v305_v40, -inf }
0x10e9   :  { %307 = vmax.xlane.f32.xlu1 %v306_v41 }
0x1176   :  { %v308_v42 = vpop.xlane.xlu1 %307 }
0x1177   :  { %vm309_vm15 = vcmp.ge.f32.partialorder %v305_v40, %v308_v42 }
0x1178   :  { %v310_v43 = vsel %vm309_vm15, %v641_v1, 32 }
0x1179   :  { %v311_v44 = vsel %vm19_vm1, %v310_v43, 2147483647 }
0x117a   :  { %v313_v45 = vshra.s32 %v311_v44, 16  ;;  %v312_v47 = vand.u32 65535, %v311_v44 }
0x117c   :  { %v315_v46 = vcvt.s32.f32 %v313_v45  ;;  %v314_v49 = vcvt.s32.f32 %v312_v47 }
0x117e   :  { %316 = vmin.xlane.f32.xlu0 %v315_v46 }
0x120b   :  { %v317_v48 = vpop.xlane.xlu0 %316 }
0x120c   :  { %vm318_vm0 = vcmp.eq.f32.partialorder %v315_v46, %v317_v48  ;;  %v323_v51 = vcvt.f32.s32 %v317_v48 }
0x120d   :  { %v319_v50 = vsel %vm318_vm0, %v314_v49, inf }
0x120e   :  { %320 = vmin.xlane.f32.xlu1 %v319_v50  ;;  %v324_v53 = vshll.u32 %v323_v51, 16 }
0x129b   :  { %v321_v52 = vpop.xlane.xlu1 %320 }
0x129c   :  { %v322_v54 = vcvt.f32.s32 %v321_v52 }
0x129e   :  { %v325_v55 = vadd.s32 %v324_v53, %v322_v54 }
0x12a0   :  { %v327_v56 = vsel %vm326_vm2, %v325_v55, %v288_v27  ;;  %vm328_vm3 = vcmp.eq.s32.totalorder %v641_v1, %v325_v55 }
0x12a1   :  { %v615_v57 = vsel %vm328_vm3, 1.0, %v625_v4  ;;  %vm482_vm3 = vcmp.eq.s32.totalorder %v641_v1, 12 }
0x12a2   :  { %v335_v58 = vmul.f32 %v615_v57, %v651_v3  ;;  %v331_v59 = vmul.f32 %v615_v57, %v646_v2 }
0x12a4   :  { %v336_v60 = vsel %vm19_vm1, %v335_v58, 0.0  ;;  %v332_v61 = vsel %vm19_vm1, %v331_v59, 0.0 }
0x12a5   :  { %337 = vadd.xlane.f32.xlu1 %v336_v60  ;;  %333 = vadd.xlane.f32.xlu0 %v332_v61 }
0x1332   :  { %v338_v62 = vpop.xlane.xlu1 %337  ;;  %v334_v63 = vpop.xlane.xlu0 %333 }
0x1333   :  { %v341_v0 = vsub.f32 %v651_v3, %v338_v62  ;;  %v339_v5 = vsub.f32 %v646_v2, %v334_v63 }
0x1335   :  { %v342_v6 = vmul.f32 %v341_v0, %v341_v0  ;;  %v340_v7 = vmul.f32 %v339_v5, %v339_v5 }
0x1337   :  { %v343_v8 = vadd.f32 %v342_v6, %v340_v7 }
0x1339   :  { %v344_v9 = vmin.f32 %v305_v40, %v343_v8 }
0x133b   :  { %v345_v10 = vsel %vm19_vm1, %v344_v9, -inf }
0x133c   :  { %346 = vmax.xlane.f32.xlu0 %v345_v10 }
0x13c9   :  { %v347_v11 = vpop.xlane.xlu0 %346 }
0x13ca   :  { %vm348_vm4 = vcmp.ge.f32.partialorder %v344_v9, %v347_v11 }
0x13cb   :  { %v349_v12 = vsel %vm348_vm4, %v641_v1, 32 }
0x13cc   :  { %v350_v13 = vsel %vm19_vm1, %v349_v12, 2147483647 }
0x13cd   :  { %v352_v14 = vshra.s32 %v350_v13, 16  ;;  %v351_v16 = vand.u32 65535, %v350_v13 }
0x13cf   :  { %v354_v15 = vcvt.s32.f32 %v352_v14  ;;  %v353_v18 = vcvt.s32.f32 %v351_v16 }
0x13d1   :  { %355 = vmin.xlane.f32.xlu1 %v354_v15 }
0x145e   :  { %v356_v17 = vpop.xlane.xlu1 %355 }
0x145f   :  { %vm357_vm5 = vcmp.eq.f32.partialorder %v354_v15, %v356_v17  ;;  %v362_v20 = vcvt.f32.s32 %v356_v17 }
0x1460   :  { %v358_v19 = vsel %vm357_vm5, %v353_v18, inf }
0x1461   :  { %359 = vmin.xlane.f32.xlu0 %v358_v19  ;;  %v363_v22 = vshll.u32 %v362_v20, 16 }
0x14ee   :  { %v360_v21 = vpop.xlane.xlu0 %359 }
0x14ef   :  { %v361_v23 = vcvt.f32.s32 %v360_v21 }
0x14f1   :  { %v364_v24 = vadd.s32 %v363_v22, %v361_v23 }
0x14f3   :  { %v366_v25 = vsel %vm365_vm6, %v364_v24, %v327_v56  ;;  %vm367_vm7 = vcmp.eq.s32.totalorder %v641_v1, %v364_v24 }
0x14f4   :  { %v616_v26 = vsel %vm367_vm7, 1.0, %v625_v4  ;;  %vm521_vm7 = vcmp.eq.s32.totalorder %v641_v1, 13 }
0x14f5   :  { %v374_v27 = vmul.f32 %v616_v26, %v651_v3  ;;  %v370_v28 = vmul.f32 %v616_v26, %v646_v2 }
0x14f7   :  { %v375_v29 = vsel %vm19_vm1, %v374_v27, 0.0  ;;  %v371_v30 = vsel %vm19_vm1, %v370_v28, 0.0 }
0x14f8   :  { %376 = vadd.xlane.f32.xlu0 %v375_v29  ;;  %372 = vadd.xlane.f32.xlu1 %v371_v30 }
0x1585   :  { %v377_v31 = vpop.xlane.xlu0 %376  ;;  %v373_v32 = vpop.xlane.xlu1 %372 }
0x1586   :  { %v380_v33 = vsub.f32 %v651_v3, %v377_v31  ;;  %v378_v34 = vsub.f32 %v646_v2, %v373_v32 }
0x1588   :  { %v381_v35 = vmul.f32 %v380_v33, %v380_v33  ;;  %v379_v36 = vmul.f32 %v378_v34, %v378_v34 }
0x158a   :  { %v382_v37 = vadd.f32 %v381_v35, %v379_v36 }
0x158c   :  { %v383_v38 = vmin.f32 %v344_v9, %v382_v37 }
0x158e   :  { %v384_v39 = vsel %vm19_vm1, %v383_v38, -inf }
0x158f   :  { %385 = vmax.xlane.f32.xlu1 %v384_v39 }
0x161c   :  { %v386_v40 = vpop.xlane.xlu1 %385 }
0x161d   :  { %vm387_vm8 = vcmp.ge.f32.partialorder %v383_v38, %v386_v40 }
0x161e   :  { %v388_v41 = vsel %vm387_vm8, %v641_v1, 32 }
0x161f   :  { %v389_v42 = vsel %vm19_vm1, %v388_v41, 2147483647 }
0x1620   :  { %v391_v43 = vshra.s32 %v389_v42, 16  ;;  %v390_v45 = vand.u32 65535, %v389_v42 }
0x1622   :  { %v393_v44 = vcvt.s32.f32 %v391_v43  ;;  %v392_v47 = vcvt.s32.f32 %v390_v45 }
0x1624   :  { %394 = vmin.xlane.f32.xlu0 %v393_v44 }
0x16b1   :  { %v395_v46 = vpop.xlane.xlu0 %394 }
0x16b2   :  { %vm396_vm9 = vcmp.eq.f32.partialorder %v393_v44, %v395_v46  ;;  %v401_v49 = vcvt.f32.s32 %v395_v46 }
0x16b3   :  { %v397_v48 = vsel %vm396_vm9, %v392_v47, inf }
0x16b4   :  { %398 = vmin.xlane.f32.xlu1 %v397_v48  ;;  %v402_v51 = vshll.u32 %v401_v49, 16 }
0x1741   :  { %v399_v50 = vpop.xlane.xlu1 %398 }
0x1742   :  { %v400_v52 = vcvt.f32.s32 %v399_v50 }
0x1744   :  { %v403_v53 = vadd.s32 %v402_v51, %v400_v52 }
0x1746   :  { %v405_v54 = vsel %vm404_vm10, %v403_v53, %v366_v25  ;;  %vm406_vm11 = vcmp.eq.s32.totalorder %v641_v1, %v403_v53 }
0x1747   :  { %v617_v55 = vsel %vm406_vm11, 1.0, %v625_v4  ;;  %vm560_vm11 = vcmp.eq.s32.totalorder %v641_v1, 14 }
0x1748   :  { %v413_v56 = vmul.f32 %v617_v55, %v651_v3  ;;  %v409_v57 = vmul.f32 %v617_v55, %v646_v2 }
0x174a   :  { %v414_v58 = vsel %vm19_vm1, %v413_v56, 0.0  ;;  %v410_v59 = vsel %vm19_vm1, %v409_v57, 0.0 }
0x174b   :  { %415 = vadd.xlane.f32.xlu1 %v414_v58  ;;  %411 = vadd.xlane.f32.xlu0 %v410_v59 }
0x17d8   :  { %v416_v60 = vpop.xlane.xlu1 %415  ;;  %v412_v61 = vpop.xlane.xlu0 %411 }
0x17d9   :  { %v419_v62 = vsub.f32 %v651_v3, %v416_v60  ;;  %v417_v63 = vsub.f32 %v646_v2, %v412_v61 }
0x17db   :  { %v420_v0 = vmul.f32 %v419_v62, %v419_v62  ;;  %v418_v5 = vmul.f32 %v417_v63, %v417_v63 }
0x17dd   :  { %v421_v6 = vadd.f32 %v420_v0, %v418_v5 }
0x17df   :  { %v422_v7 = vmin.f32 %v383_v38, %v421_v6 }
0x17e1   :  { %v423_v8 = vsel %vm19_vm1, %v422_v7, -inf }
0x17e2   :  { %424 = vmax.xlane.f32.xlu0 %v423_v8 }
0x186f   :  { %v425_v9 = vpop.xlane.xlu0 %424 }
0x1870   :  { %vm426_vm12 = vcmp.ge.f32.partialorder %v422_v7, %v425_v9 }
0x1871   :  { %v427_v10 = vsel %vm426_vm12, %v641_v1, 32 }
0x1872   :  { %v428_v11 = vsel %vm19_vm1, %v427_v10, 2147483647 }
0x1873   :  { %v430_v12 = vshra.s32 %v428_v11, 16  ;;  %v429_v14 = vand.u32 65535, %v428_v11 }
0x1875   :  { %v432_v13 = vcvt.s32.f32 %v430_v12  ;;  %v431_v16 = vcvt.s32.f32 %v429_v14 }
0x1877   :  { %433 = vmin.xlane.f32.xlu1 %v432_v13 }
0x1904   :  { %v434_v15 = vpop.xlane.xlu1 %433 }
0x1905   :  { %vm435_vm13 = vcmp.eq.f32.partialorder %v432_v13, %v434_v15  ;;  %v440_v18 = vcvt.f32.s32 %v434_v15 }
0x1906   :  { %v436_v17 = vsel %vm435_vm13, %v431_v16, inf }
0x1907   :  { %437 = vmin.xlane.f32.xlu0 %v436_v17  ;;  %v441_v20 = vshll.u32 %v440_v18, 16 }
0x1994   :  { %v438_v19 = vpop.xlane.xlu0 %437 }
0x1995   :  { %v439_v21 = vcvt.f32.s32 %v438_v19 }
0x1997   :  { %v442_v22 = vadd.s32 %v441_v20, %v439_v21 }
0x1999   :  { %v444_v23 = vsel %vm443_vm14, %v442_v22, %v405_v54  ;;  %vm445_vm15 = vcmp.eq.s32.totalorder %v641_v1, %v442_v22 }
0x199a   :  { %v618_v24 = vsel %vm445_vm15, 1.0, %v625_v4  ;;  %vm599_vm15 = vcmp.eq.s32.totalorder %v641_v1, 15 }
0x199b   :  { %v452_v25 = vmul.f32 %v618_v24, %v651_v3  ;;  %v448_v26 = vmul.f32 %v618_v24, %v646_v2 }
0x199d   :  { %v453_v27 = vsel %vm19_vm1, %v452_v25, 0.0  ;;  %v449_v28 = vsel %vm19_vm1, %v448_v26, 0.0 }
0x199e   :  { %454 = vadd.xlane.f32.xlu0 %v453_v27  ;;  %450 = vadd.xlane.f32.xlu1 %v449_v28 }
0x1a2b   :  { %v455_v29 = vpop.xlane.xlu0 %454  ;;  %v451_v30 = vpop.xlane.xlu1 %450 }
0x1a2c   :  { %v458_v31 = vsub.f32 %v651_v3, %v455_v29  ;;  %v456_v32 = vsub.f32 %v646_v2, %v451_v30 }
0x1a2e   :  { %v459_v33 = vmul.f32 %v458_v31, %v458_v31  ;;  %v457_v34 = vmul.f32 %v456_v32, %v456_v32 }
0x1a30   :  { %v460_v35 = vadd.f32 %v459_v33, %v457_v34 }
0x1a32   :  { %v461_v36 = vmin.f32 %v422_v7, %v460_v35 }
0x1a34   :  { %v462_v37 = vsel %vm19_vm1, %v461_v36, -inf }
0x1a35   :  { %463 = vmax.xlane.f32.xlu1 %v462_v37 }
0x1ac2   :  { %v464_v38 = vpop.xlane.xlu1 %463 }
0x1ac3   :  { %vm465_vm0 = vcmp.ge.f32.partialorder %v461_v36, %v464_v38 }
0x1ac4   :  { %v466_v39 = vsel %vm465_vm0, %v641_v1, 32  ;;  %vm601_vm0 = vcmask 124928  }
0x1ac5   :  { %v467_v40 = vsel %vm19_vm1, %v466_v39, 2147483647 }
0x1ac6   :  { %v469_v41 = vshra.s32 %v467_v40, 16  ;;  %v468_v43 = vand.u32 65535, %v467_v40 }
0x1ac8   :  { %v471_v42 = vcvt.s32.f32 %v469_v41  ;;  %v470_v45 = vcvt.s32.f32 %v468_v43 }
0x1aca   :  { %472 = vmin.xlane.f32.xlu0 %v471_v42 }
0x1b57   :  { %v473_v44 = vpop.xlane.xlu0 %472 }
0x1b58   :  { %vm474_vm2 = vcmp.eq.f32.partialorder %v471_v42, %v473_v44  ;;  %v479_v47 = vcvt.f32.s32 %v473_v44 }
0x1b59   :  { %v475_v46 = vsel %vm474_vm2, %v470_v45, inf }
0x1b5a   :  { %476 = vmin.xlane.f32.xlu1 %v475_v46  ;;  %v480_v49 = vshll.u32 %v479_v47, 16 }
0x1be7   :  { %v477_v48 = vpop.xlane.xlu1 %476 }
0x1be8   :  { %v478_v50 = vcvt.f32.s32 %v477_v48 }
0x1bea   :  { %v481_v51 = vadd.s32 %v480_v49, %v478_v50  ;;  %v623_v50 = vld [vmem:[%s839_s1] sm:$0x7] }
0x1bec   :  { %v483_v52 = vsel %vm482_vm3, %v481_v51, %v444_v23  ;;  %vm484_vm4 = vcmp.eq.s32.totalorder %v641_v1, %v481_v51 }
0x1bed   :  { %v619_v53 = vsel %vm484_vm4, 1.0, %v625_v4 }
0x1bee   :  { %v491_v54 = vmul.f32 %v619_v53, %v651_v3  ;;  %v487_v55 = vmul.f32 %v619_v53, %v646_v2 }
0x1bf0   :  { %v492_v56 = vsel %vm19_vm1, %v491_v54, 0.0  ;;  %v488_v57 = vsel %vm19_vm1, %v487_v55, 0.0 }
0x1bf1   :  { %493 = vadd.xlane.f32.xlu1 %v492_v56  ;;  %489 = vadd.xlane.f32.xlu0 %v488_v57 }
0x1c7e   :  { %v494_v58 = vpop.xlane.xlu1 %493  ;;  %v490_v59 = vpop.xlane.xlu0 %489 }
0x1c7f   :  { %v497_v60 = vsub.f32 %v651_v3, %v494_v58  ;;  %v495_v61 = vsub.f32 %v646_v2, %v490_v59 }
0x1c81   :  { %v498_v62 = vmul.f32 %v497_v60, %v497_v60  ;;  %v496_v63 = vmul.f32 %v495_v61, %v495_v61 }
0x1c83   :  { %v499_v0 = vadd.f32 %v498_v62, %v496_v63 }
0x1c85   :  { %v500_v5 = vmin.f32 %v461_v36, %v499_v0 }
0x1c87   :  { %v501_v6 = vsel %vm19_vm1, %v500_v5, -inf }
0x1c88   :  { %502 = vmax.xlane.f32.xlu0 %v501_v6 }
0x1d15   :  { %v503_v7 = vpop.xlane.xlu0 %502 }
0x1d16   :  { %vm504_vm5 = vcmp.ge.f32.partialorder %v500_v5, %v503_v7 }
0x1d17   :  { %v505_v8 = vsel %vm504_vm5, %v641_v1, 32 }
0x1d18   :  { %v506_v9 = vsel %vm19_vm1, %v505_v8, 2147483647 }
0x1d19   :  { %v508_v10 = vshra.s32 %v506_v9, 16  ;;  %v507_v12 = vand.u32 65535, %v506_v9 }
0x1d1b   :  { %v510_v11 = vcvt.s32.f32 %v508_v10  ;;  %v509_v14 = vcvt.s32.f32 %v507_v12 }
0x1d1d   :  { %511 = vmin.xlane.f32.xlu1 %v510_v11 }
0x1daa   :  { %v512_v13 = vpop.xlane.xlu1 %511 }
0x1dab   :  { %vm513_vm6 = vcmp.eq.f32.partialorder %v510_v11, %v512_v13  ;;  %v518_v16 = vcvt.f32.s32 %v512_v13 }
0x1dac   :  { %v514_v15 = vsel %vm513_vm6, %v509_v14, inf }
0x1dad   :  { %515 = vmin.xlane.f32.xlu0 %v514_v15  ;;  %v519_v18 = vshll.u32 %v518_v16, 16 }
0x1e3a   :  { %v516_v17 = vpop.xlane.xlu0 %515 }
0x1e3b   :  { %v517_v19 = vcvt.f32.s32 %v516_v17 }
0x1e3d   :  { %v520_v20 = vadd.s32 %v519_v18, %v517_v19 }
0x1e3f   :  { %v522_v21 = vsel %vm521_vm7, %v520_v20, %v483_v52  ;;  %vm523_vm8 = vcmp.eq.s32.totalorder %v641_v1, %v520_v20  ;;  %v624_v52 = vld [vmem:[%s838_s0] sm:$0x7] }
0x1e40   :  { %v620_v22 = vsel %vm523_vm8, 1.0, %v625_v4 }
0x1e41   :  { %v530_v23 = vmul.f32 %v620_v22, %v651_v3  ;;  %v526_v24 = vmul.f32 %v620_v22, %v646_v2 }
0x1e43   :  { %v531_v25 = vsel %vm19_vm1, %v530_v23, 0.0  ;;  %v527_v26 = vsel %vm19_vm1, %v526_v24, 0.0 }
0x1e44   :  { %532 = vadd.xlane.f32.xlu0 %v531_v25  ;;  %528 = vadd.xlane.f32.xlu1 %v527_v26 }
0x1ed1   :  { %v533_v27 = vpop.xlane.xlu0 %532  ;;  %v529_v28 = vpop.xlane.xlu1 %528 }
0x1ed2   :  { %v536_v29 = vsub.f32 %v651_v3, %v533_v27  ;;  %v534_v30 = vsub.f32 %v646_v2, %v529_v28 }
0x1ed4   :  { %v537_v31 = vmul.f32 %v536_v29, %v536_v29  ;;  %v535_v32 = vmul.f32 %v534_v30, %v534_v30 }
0x1ed6   :  { %v538_v33 = vadd.f32 %v537_v31, %v535_v32 }
0x1ed8   :  { %v539_v34 = vmin.f32 %v500_v5, %v538_v33 }
0x1eda   :  { %v540_v35 = vsel %vm19_vm1, %v539_v34, -inf }
0x1edb   :  { %541 = vmax.xlane.f32.xlu1 %v540_v35 }
0x1f68   :  { %v542_v36 = vpop.xlane.xlu1 %541 }
0x1f69   :  { %vm543_vm9 = vcmp.ge.f32.partialorder %v539_v34, %v542_v36 }
0x1f6a   :  { %v544_v37 = vsel %vm543_vm9, %v641_v1, 32 }
0x1f6b   :  { %v545_v38 = vsel %vm19_vm1, %v544_v37, 2147483647 }
0x1f6c   :  { %v547_v39 = vshra.s32 %v545_v38, 16  ;;  %v546_v41 = vand.u32 65535, %v545_v38 }
0x1f6e   :  { %v549_v40 = vcvt.s32.f32 %v547_v39  ;;  %v548_v42 = vcvt.s32.f32 %v546_v41 }
0x1f70   :  { %550 = vmin.xlane.f32.xlu0 %v549_v40 }
0x1ffd   :  { %v551_v3 = vpop.xlane.xlu0 %550 }
0x1ffe   :  { %vm552_vm10 = vcmp.eq.f32.partialorder %v549_v40, %v551_v3  ;;  %v557_v43 = vcvt.f32.s32 %v551_v3 }
0x1fff   :  { %v553_v2 = vsel %vm552_vm10, %v548_v42, inf }
0x2000   :  { %554 = vmin.xlane.f32.xlu1 %v553_v2  ;;  %v558_v45 = vshll.u32 %v557_v43, 16 }
0x208d   :  { %v555_v44 = vpop.xlane.xlu1 %554 }
0x208e   :  { %v556_v46 = vcvt.f32.s32 %v555_v44 }
0x2090   :  { %v559_v47 = vadd.s32 %v558_v45, %v556_v46 }
0x2092   :  { %v561_v48 = vsel %vm560_vm11, %v559_v47, %v522_v21  ;;  %vm562_vm12 = vcmp.eq.s32.totalorder %v641_v1, %v559_v47 }
0x2093   :  { %v621_v49 = vsel %vm562_vm12, 1.0, %v625_v4 }
0x2094   :  { %v569_v51 = vmul.f32 %v623_v50, %v621_v49  ;;  %v565_v53 = vmul.f32 %v624_v52, %v621_v49 }
0x2096   :  { %v570_v54 = vsel %vm19_vm1, %v569_v51, 0.0  ;;  %v566_v55 = vsel %vm19_vm1, %v565_v53, 0.0 }
0x2097   :  { %571 = vadd.xlane.f32.xlu1 %v570_v54  ;;  %567 = vadd.xlane.f32.xlu0 %v566_v55 }
0x2124   :  { %v572_v56 = vpop.xlane.xlu1 %571  ;;  %v568_v57 = vpop.xlane.xlu0 %567 }
0x2125   :  { %v575_v58 = vsub.f32 %v623_v50, %v572_v56  ;;  %v573_v4 = vsub.f32 %v624_v52, %v568_v57 }
0x2127   :  { %v576_v59 = vmul.f32 %v575_v58, %v575_v58  ;;  %v574_v60 = vmul.f32 %v573_v4, %v573_v4 }
0x2129   :  { %v577_v61 = vadd.f32 %v576_v59, %v574_v60 }
0x212b   :  { %v578_v62 = vmin.f32 %v539_v34, %v577_v61 }
0x212d   :  { %v579_v63 = vsel %vm19_vm1, %v578_v62, -inf }
0x212e   :  { %580 = vmax.xlane.f32.xlu0 %v579_v63 }
0x21bb   :  { %v581_v0 = vpop.xlane.xlu0 %580 }
0x21bc   :  { %vm582_vm13 = vcmp.ge.f32.partialorder %v578_v62, %v581_v0 }
0x21bd   :  { %v583_v5 = vsel %vm582_vm13, %v641_v1, 32 }
0x21be   :  { %v584_v6 = vsel %vm19_vm1, %v583_v5, 2147483647 }
0x21bf   :  { %v586_v7 = vshra.s32 %v584_v6, 16  ;;  %v585_v9 = vand.u32 65535, %v584_v6 }
0x21c1   :  { %v588_v8 = vcvt.s32.f32 %v586_v7  ;;  %v587_v11 = vcvt.s32.f32 %v585_v9 }
0x21c3   :  { %589 = vmin.xlane.f32.xlu1 %v588_v8 }
0x2250   :  { %v590_v10 = vpop.xlane.xlu1 %589 }
0x2251   :  { %vm591_vm14 = vcmp.eq.f32.partialorder %v588_v8, %v590_v10  ;;  %v596_v13 = vcvt.f32.s32 %v590_v10 }
0x2252   :  { %v592_v12 = vsel %vm591_vm14, %v587_v11, inf }
0x2253   :  { %593 = vmin.xlane.f32.xlu0 %v592_v12  ;;  %v597_v15 = vshll.u32 %v596_v13, 16 }
0x22e0   :  { %v594_v14 = vpop.xlane.xlu0 %593 }
0x22e1   :  { %v595_v16 = vcvt.f32.s32 %v594_v14 }
0x22e3   :  { %v598_v17 = vadd.s32 %v597_v15, %v595_v16 }
0x22e5   :  { %v600_v18 = vsel %vm599_vm15, %v598_v17, %v561_v48 }
0x22e6   :  { %602 = vst.msk [vmem:[%s840_s2] sm:$0x7] %vm601_vm0, %v600_v18 }

// kernel: _geo_stage_step.3
= control target key start
LH: loop header
LB: loop body
LE: loop exit
PB: predicated region body
PF: predicated region fallthrough
CT: control target
= control target key end

     0   :  { %vm96_vm0 = vcmask 277504   ;;  %s4428_s0 = inlined_call_operand.vmem [shape: f32[384,34], index: 0, kind: input, shape index: {}]   ;;  %s4429_s1 = inlined_call_operand.vmem [shape: f32[48,34], index: 1, kind: input, shape index: {}]   ;;  %s4430_s2 = inlined_call_operand.vmem [shape: f32[34,32], index: 2, kind: input, shape index: {}]   ;;  %s4431_s3 = inlined_call_operand.vmem [shape: f32[34,32], index: 3, kind: input, shape index: {}]   ;;  %s4432_s4 = inlined_call_operand.vmem [shape: f32[3,32], index: 4, kind: input, shape index: {}]   ;;  %s4433_s5 = inlined_call_operand.vmem [shape: f32[384,48], index: 5, kind: input, shape index: {}]   ;;  %s4434_s6 = inlined_call_operand.vmem [shape: f32[48,384], index: 6, kind: input, shape index: {}]   ;;  %s4435_s7 = inlined_call_operand.hbm [shape: f32[48,32], index: 7, kind: output, shape index: {}]  }
   0x1   :  { %v87_v0 = vld [vmem:[%s4431_s3] sm:$0xff]  ;;  %v88_v1 = vld [vmem:[%s4431_s3 + $0x8] sm:$0xff]  ;;  %v89_v2 = vld [vmem:[%s4431_s3 + $0x10] sm:$0xff] }
   0x2   :  { %v2692_v3 = vpack.c.bf16 %v88_v1, %v87_v0  ;;  %v90_v4 = vld [vmem:[%s4431_s3 + $0x18] sm:$0xff]  ;;  %v75_v5 = vld [vmem:[%s4429_s1] sm:$0xff] }
   0x3   :  { %v2696_v6 = vpack.c.bf16 %v90_v4, %v89_v2  ;;  %2476 = vmatprep.mubr.msk.f32.mxu0 %vm96_vm0, %v75_v5 }
   0x4   :  { %2693 = vmatprep.subr.bf16.mxu0 %v2692_v3 }
   0x5   :  { %2695 = vmatpush3.bf16.msra.mxu0 %v2692_v3 }
   0x6   :  { %12 = vsyncpa [#allocation3], 0  ;;  %2697 = vmatprep.subr.bf16.mxu0 %v2696_v6  ;;  %v91_v7 = vld [vmem:[%s4431_s3 + $0x20] sm:$0x3]  ;;  %vm115_vm1 = vcmask 1041408   ;;  %v76_v8 = vld [vmem:[%s4429_s1 + $0x8] sm:$0xff]  ;;  %v92_v15 = vlaneseq }
   0x7   :  { %v77_v9 = vld [vmem:[%s4429_s1 + $0x10] sm:$0xff]  ;;  %v78_v10 = vld [vmem:[%s4429_s1 + $0x18] sm:$0xff]  ;;  %v79_v11 = vld [vmem:[%s4429_s1 + $0x20] sm:$0xff]  ;;  %vm262_vm2 = vcmask 392192   ;;  %vm1212_vm3 = vcmask 261120  }
   0x8   :  { %v80_v12 = vld [vmem:[%s4429_s1 + $0x28] sm:$0xff]  ;;  %v248_v13 = vld [vmem:[%s4433_s5 + $0x110] sm:$0xff]  ;;  %v214_v14 = vld [vmem:[%s4433_s5] sm:$0xff]  ;;  %v3054_v16 = vshrl.u32 %v92_v15, 7 }
   0x9   :  { %2699 = vmatpush3.bf16.msra.mxu0 %v2696_v6  ;;  %2548 = vmatprep.mubr.msk.f32.mxu1 %vm262_vm2, %v248_v13  ;;  %v81_v18 = vld [vmem:[%s4432_s4] sm:$0x7]  ;;  %v83_v34 = vld [vmem:[%s4430_s2 + $0x8] sm:$0xff]  ;;  %v84_v38 = vld [vmem:[%s4430_s2 + $0x10] sm:$0xff] }
   0xa   :  { %2474 = vmatprep.subr.msk.mxu0 %vm115_vm1, %v91_v7  ;;  %v94_v17 = vsub.s32 0, %v3054_v16  ;;  %v82_v33 = vld [vmem:[%s4430_s2] sm:$0xff]  ;;  %v85_v39 = vld [vmem:[%s4430_s2 + $0x18] sm:$0xff]  ;;  %v215_v41 = vld [vmem:[%s4433_s5 + $0x8] sm:$0xff] }
   0xb   :  { %v2712_v37 = vpack.c.bf16 %v83_v34, %v82_v33  ;;  %v249_v40 = vld [vmem:[%s4433_s5 + $0x118] sm:$0xff]  ;;  %v250_v42 = vld [vmem:[%s4433_s5 + $0x120] sm:$0xff]  ;;  %v2716_v43 = vpack.c.bf16 %v85_v39, %v84_v38  ;;  %v216_v44 = vld [vmem:[%s4433_s5 + $0x10] sm:$0xff] }
   0xc   :  { %v95_v19 = vrot.slane %v81_v18, %v94_v17  ;;  %v251_v45 = vld [vmem:[%s4433_s5 + $0x128] sm:$0xff]  ;;  %v217_v46 = vld [vmem:[%s4433_s5 + $0x18] sm:$0xff]  ;;  %v252_v47 = vld [vmem:[%s4433_s5 + $0x130] sm:$0xff] }
   0xd   :  { %2475 = vmatpush3.msk.msra.mxu0 %vm115_vm1, %v91_v7  ;;  %v86_v48 = vld [vmem:[%s4430_s2 + $0x20] sm:$0x3]  ;;  %v253_v50 = vld [vmem:[%s4433_s5 + $0x138] sm:$0xff]  ;;  %v219_v51 = vld [vmem:[%s4433_s5 + $0x28] sm:$0xff] }
   0xe   :  { %2477 = vmatmul.mubr.msk.f32.vlgmr.msra.gmra.mrb[0].mxu0 %vm96_vm0, %v76_v8  ;;  %v218_v49 = vld [vmem:[%s4433_s5 + $0x20] sm:$0xff]  ;;  %v220_v53 = vld [vmem:[%s4433_s5 + $0x30] sm:$0xff]  ;;  %v255_v54 = vld [vmem:[%s4433_s5 + $0x148] sm:$0xff] }
   0xf   :  { %2479 = vmatprep.mubr.msk.f32.mxu0 %vm96_vm0, %v77_v9  ;;  %v254_v52 = vld [vmem:[%s4433_s5 + $0x140] sm:$0xff]  ;;  %v221_v55 = vld [vmem:[%s4433_s5 + $0x38] sm:$0xff]  ;;  %v256_v56 = vld [vmem:[%s4433_s5 + $0x150] sm:$0xff] }
  0x10   :  { %v222_v57 = vld [vmem:[%s4433_s5 + $0x40] sm:$0xff]  ;;  %v257_v58 = vld [vmem:[%s4433_s5 + $0x158] sm:$0xff]  ;;  %v223_v59 = vld [vmem:[%s4433_s5 + $0x48] sm:$0xff] }
  0x11   :  { %v258_v60 = vld [vmem:[%s4433_s5 + $0x160] sm:$0xff]  ;;  %v224_v61 = vld [vmem:[%s4433_s5 + $0x50] sm:$0xff]  ;;  %v259_v62 = vld [vmem:[%s4433_s5 + $0x168] sm:$0xff] }
  0x12   :  { %2480 = vmatmul.mubr.msk.f32.gmra.mrb[2].mxu0 %vm96_vm0, %v78_v10  ;;  %v225_v63 = vld [vmem:[%s4433_s5 + $0x58] sm:$0xff]  ;;  %v260_v0 = vld [vmem:[%s4433_s5 + $0x170] sm:$0xff]  ;;  %v226_v1 = vld [vmem:[%s4433_s5 + $0x60] sm:$0xff] }
  0x13   :  { %2482 = vmatprep.mubr.msk.f32.mxu0 %vm96_vm0, %v79_v11  ;;  %v261_v2 = vld [vmem:[%s4433_s5 + $0x178] sm:$0xff]  ;;  %v227_v3 = vld [vmem:[%s4433_s5 + $0x68] sm:$0xff]  ;;  %v27_v4 = vld [vmem:[%s4428_s0] sm:$0xff] }
  0x14   :  { %v228_v5 = vld [vmem:[%s4433_s5 + $0x70] sm:$0xff]  ;;  %v28_v6 = vld [vmem:[%s4428_s0 + $0x8] sm:$0xff]  ;;  %v229_v7 = vld [vmem:[%s4433_s5 + $0x78] sm:$0xff] }
  0x15   :  { %v29_v8 = vld [vmem:[%s4428_s0 + $0x10] sm:$0xff]  ;;  %v230_v9 = vld [vmem:[%s4433_s5 + $0x80] sm:$0xff]  ;;  %v30_v10 = vld [vmem:[%s4428_s0 + $0x18] sm:$0xff] }
  0x16   :  { %2483 = vmatmul.mubr.msk.f32.gmra.mrb[4].mxu0 %vm96_vm0, %v80_v12  ;;  %v231_v11 = vld [vmem:[%s4433_s5 + $0x88] sm:$0xff]  ;;  %v31_v12 = vld [vmem:[%s4428_s0 + $0x20] sm:$0xff]  ;;  %v232_v13 = vld [vmem:[%s4433_s5 + $0x90] sm:$0xff] }
  0x17   :  { %2497 = vmatprep.mubr.msk.f32.mxu0 %vm262_vm2, %v214_v14  ;;  %v32_v14 = vld [vmem:[%s4428_s0 + $0x28] sm:$0xff]  ;;  %v233_v15 = vld [vmem:[%s4433_s5 + $0x98] sm:$0xff]  ;;  %v33_v17 = vld [vmem:[%s4428_s0 + $0x30] sm:$0xff] }
  0x18   :  { %v234_v18 = vld [vmem:[%s4433_s5 + $0xa0] sm:$0xff]  ;;  %v41_v33 = vld [vmem:[%s4428_s0 + $0x70] sm:$0xff]  ;;  %v44_v39 = vld [vmem:[%s4428_s0 + $0x88] sm:$0xff] }
  0x19   :  { %v242_v34 = vld [vmem:[%s4433_s5 + $0xe0] sm:$0xff]  ;;  %v244_v38 = vld [vmem:[%s4433_s5 + $0xf0] sm:$0xff] }
  0xe1   :  { %v2478_v20 = vpop.f32.mrb[0].mxu0 }
  0xe2   :  { %v191_v21 = vadd.f32 %v2478_v20, %v95_v19  ;;  %v185_v22 = vpop.f32.mrb[1].mxu0  ;;  %v235_v20 = vld [vmem:[%s4433_s5 + $0xa8] sm:$0xff] }
  0xe3   :  { %v186_v23 = vadd.f32 %v185_v22, %v95_v19  ;;  %v236_v22 = vld [vmem:[%s4433_s5 + $0xb0] sm:$0xff] }
  0xe5   :  { %v2700_v24 = vpack.c.bf16 %v191_v21, %v186_v23  ;;  %v2481_v25 = vpop.f32.mrb[2].mxu0  ;;  %v35_v21 = vld [vmem:[%s4428_s0 + $0x40] sm:$0xff]  ;;  %v36_v23 = vld [vmem:[%s4428_s0 + $0x48] sm:$0xff] }
  0xe6   :  { %v201_v26 = vadd.f32 %v2481_v25, %v95_v19  ;;  %v195_v27 = vpop.f32.mrb[3].mxu0  ;;  %v37_v25 = vld [vmem:[%s4428_s0 + $0x50] sm:$0xff] }
  0xe7   :  { %v196_v28 = vadd.f32 %v195_v27, %v95_v19  ;;  %2701 = vmatprep.subr.bf16.mxu0 %v2700_v24  ;;  %2784 = vmatprep.subr.bf16.mxu1 %v2700_v24  ;;  %v38_v27 = vld [vmem:[%s4428_s0 + $0x58] sm:$0xff] }
  0xe8   :  { %2703 = vmatpush3.bf16.msra.mxu0 %v2700_v24  ;;  %2787 = vmatpush3.bf16.msra.mxu1 %v2700_v24  ;;  %v237_v24 = vld [vmem:[%s4433_s5 + $0xb8] sm:$0xff] }
  0xe9   :  { %v2704_v29 = vpack.c.bf16 %v201_v26, %v196_v28  ;;  %v2484_v30 = vpop.f32.mrb[4].mxu0  ;;  %v238_v26 = vld [vmem:[%s4433_s5 + $0xc0] sm:$0xff]  ;;  %v239_v28 = vld [vmem:[%s4433_s5 + $0xc8] sm:$0xff] }
  0xea   :  { %v211_v31 = vadd.f32 %v2484_v30, %v95_v19  ;;  %v205_v32 = vpop.f32.mrb[5].mxu0  ;;  %v240_v30 = vld [vmem:[%s4433_s5 + $0xd0] sm:$0xff] }
  0xeb   :  { %v206_v35 = vadd.f32 %v205_v32, %v95_v19  ;;  %2705 = vmatprep.subr.bf16.mxu0 %v2704_v29  ;;  %2785 = vmatprep.subr.bf16.mxu1 %v2704_v29  ;;  %v34_v19 = vld [vmem:[%s4428_s0 + $0x38] sm:$0xff] }
  0xec   :  { %2707 = vmatpush3.bf16.msra.mxu0 %v2704_v29  ;;  %2788 = vmatpush3.bf16.msra.mxu1 %v2704_v29  ;;  %v39_v29 = vld [vmem:[%s4428_s0 + $0x60] sm:$0xff]  ;;  %v241_v32 = vld [vmem:[%s4433_s5 + $0xd8] sm:$0xff] }
  0xed   :  { %v2708_v36 = vpack.c.bf16 %v211_v31, %v206_v35  ;;  %v40_v31 = vld [vmem:[%s4428_s0 + $0x68] sm:$0xff]  ;;  %v42_v35 = vld [vmem:[%s4428_s0 + $0x78] sm:$0xff] }
  0xef   :  { %2709 = vmatprep.subr.bf16.mxu0 %v2708_v36  ;;  %2786 = vmatprep.subr.bf16.mxu1 %v2708_v36 }
  0xf0   :  { %2711 = vmatpush3.bf16.msra.mxu0 %v2708_v36  ;;  %2789 = vmatpush3.bf16.msra.mxu1 %v2708_v36  ;;  %v243_v36 = vld [vmem:[%s4433_s5 + $0xe8] sm:$0xff] }
  0xf1   :  { %2713 = vmatprep.subr.bf16.mxu1 %v2712_v37 }
  0xf3   :  { %2549 = vmatmul.mubr.msk.f32.vlgmr.msra.gmra.mrb[0].mxu1 %vm262_vm2, %v249_v40  ;;  %2498 = vmatmul.mubr.msk.f32.vlgmr.msra.gmra.mrb[6].mxu0 %vm262_vm2, %v215_v41  ;;  %v245_v40 = vld [vmem:[%s4433_s5 + $0xf8] sm:$0xff]  ;;  %v45_v41 = vld [vmem:[%s4428_s0 + $0x90] sm:$0xff] }
  0xf4   :  { %2551 = vmatprep.mubr.msk.f32.mxu1 %vm262_vm2, %v250_v42  ;;  %2715 = vmatpush3.bf16.msra.mxu1 %v2712_v37  ;;  %v43_v37 = vld [vmem:[%s4428_s0 + $0x80] sm:$0xff] }
  0xf5   :  { %2717 = vmatprep.subr.bf16.mxu1 %v2716_v43  ;;  %2500 = vmatprep.mubr.msk.f32.mxu0 %vm262_vm2, %v216_v44  ;;  %v246_v42 = vld [vmem:[%s4433_s5 + $0x100] sm:$0xff]  ;;  %v247_v44 = vld [vmem:[%s4433_s5 + $0x108] sm:$0xff] }
  0xf7   :  { %2552 = vmatmul.mubr.msk.f32.gmra.mrb[2].mxu1 %vm262_vm2, %v251_v45  ;;  %2501 = vmatmul.mubr.msk.f32.gmra.mrb[8].mxu0 %vm262_vm2, %v217_v46  ;;  %v47_v45 = vld [vmem:[%s4428_s0 + $0xa0] sm:$0xff]  ;;  %v48_v46 = vld [vmem:[%s4428_s0 + $0xa8] sm:$0xff] }
  0xf8   :  { %2554 = vmatprep.mubr.msk.f32.mxu1 %vm262_vm2, %v252_v47  ;;  %2719 = vmatpush3.bf16.msra.mxu1 %v2716_v43  ;;  %v46_v43 = vld [vmem:[%s4428_s0 + $0x98] sm:$0xff]  ;;  %v49_v47 = vld [vmem:[%s4428_s0 + $0xb0] sm:$0xff] }
  0xf9   :  { %2577 = vmatprep.subr.msk.mxu1 %vm115_vm1, %v86_v48  ;;  %2503 = vmatprep.mubr.msk.f32.mxu0 %vm262_vm2, %v218_v49  ;;  %v51_v49 = vld [vmem:[%s4428_s0 + $0xc0] sm:$0xff] }
  0xfb   :  { %2555 = vmatmul.mubr.msk.f32.gmra.mrb[4].mxu1 %vm262_vm2, %v253_v50  ;;  %2504 = vmatmul.mubr.msk.f32.gmra.mrb[10].mxu0 %vm262_vm2, %v219_v51  ;;  %v52_v50 = vld [vmem:[%s4428_s0 + $0xc8] sm:$0xff]  ;;  %v53_v51 = vld [vmem:[%s4428_s0 + $0xd0] sm:$0xff] }
  0xfc   :  { %2557 = vmatprep.mubr.msk.f32.mxu1 %vm262_vm2, %v254_v52  ;;  %2578 = vmatpush3.msk.msra.mxu1 %vm115_vm1, %v86_v48  ;;  %v50_v48 = vld [vmem:[%s4428_s0 + $0xb8] sm:$0xff] }
  0xfd   :  { %2506 = vmatprep.mubr.msk.f32.mxu0 %vm262_vm2, %v220_v53  ;;  %v54_v52 = vld [vmem:[%s4428_s0 + $0xd8] sm:$0xff]  ;;  %v55_v53 = vld [vmem:[%s4428_s0 + $0xe0] sm:$0xff] }
  0xff   :  { %2558 = vmatmul.mubr.msk.f32.gmra.mrb[6].mxu1 %vm262_vm2, %v255_v54  ;;  %2507 = vmatmul.mubr.msk.f32.gmra.mrb[12].mxu0 %vm262_vm2, %v221_v55  ;;  %v56_v54 = vld [vmem:[%s4428_s0 + $0xe8] sm:$0xff]  ;;  %v57_v55 = vld [vmem:[%s4428_s0 + $0xf0] sm:$0xff] }
 0x100   :  { %2560 = vmatprep.mubr.msk.f32.mxu1 %vm262_vm2, %v256_v56  ;;  %2509 = vmatprep.mubr.msk.f32.mxu0 %vm262_vm2, %v222_v57  ;;  %v58_v56 = vld [vmem:[%s4428_s0 + $0xf8] sm:$0xff]  ;;  %v59_v57 = vld [vmem:[%s4428_s0 + $0x100] sm:$0xff] }
 0x103   :  { %2561 = vmatmul.mubr.msk.f32.gmra.mrb[8].mxu1 %vm262_vm2, %v257_v58  ;;  %2510 = vmatmul.mubr.msk.f32.gmra.mrb[14].mxu0 %vm262_vm2, %v223_v59  ;;  %v60_v58 = vld [vmem:[%s4428_s0 + $0x108] sm:$0xff]  ;;  %v61_v59 = vld [vmem:[%s4428_s0 + $0x110] sm:$0xff] }
 0x104   :  { %2563 = vmatprep.mubr.msk.f32.mxu1 %vm262_vm2, %v258_v60  ;;  %2512 = vmatprep.mubr.msk.f32.mxu0 %vm262_vm2, %v224_v61  ;;  %v62_v60 = vld [vmem:[%s4428_s0 + $0x118] sm:$0xff]  ;;  %v63_v61 = vld [vmem:[%s4428_s0 + $0x120] sm:$0xff] }
 0x107   :  { %2564 = vmatmul.mubr.msk.f32.gmra.mrb[10].mxu1 %vm262_vm2, %v259_v62  ;;  %2513 = vmatmul.mubr.msk.f32.gmra.mrb[16].mxu0 %vm262_vm2, %v225_v63  ;;  %v64_v62 = vld [vmem:[%s4428_s0 + $0x128] sm:$0xff]  ;;  %v65_v63 = vld [vmem:[%s4428_s0 + $0x130] sm:$0xff] }
 0x108   :  { %2566 = vmatprep.mubr.msk.f32.mxu1 %vm262_vm2, %v260_v0  ;;  %2515 = vmatprep.mubr.msk.f32.mxu0 %vm262_vm2, %v226_v1  ;;  %v66_v0 = vld [vmem:[%s4428_s0 + $0x138] sm:$0xff]  ;;  %v67_v1 = vld [vmem:[%s4428_s0 + $0x140] sm:$0xff] }
 0x10b   :  { %2567 = vmatmul.mubr.msk.f32.gmra.mrb[12].mxu1 %vm262_vm2, %v261_v2  ;;  %2516 = vmatmul.mubr.msk.f32.gmra.mrb[18].mxu0 %vm262_vm2, %v227_v3  ;;  %v68_v2 = vld [vmem:[%s4428_s0 + $0x148] sm:$0xff]  ;;  %v69_v3 = vld [vmem:[%s4428_s0 + $0x150] sm:$0xff] }
 0x10c   :  { %2579 = vmatprep.mubr.msk.f32.mxu1 %vm96_vm0, %v27_v4  ;;  %2518 = vmatprep.mubr.msk.f32.mxu0 %vm262_vm2, %v228_v5  ;;  %v70_v4 = vld [vmem:[%s4428_s0 + $0x158] sm:$0xff]  ;;  %v71_v5 = vld [vmem:[%s4428_s0 + $0x160] sm:$0xff] }
 0x10f   :  { %2580 = vmatmul.mubr.msk.f32.vlgmr.msra.gmra.mrb[14].mxu1 %vm96_vm0, %v28_v6  ;;  %2519 = vmatmul.mubr.msk.f32.gmra.mrb[20].mxu0 %vm262_vm2, %v229_v7  ;;  %v72_v6 = vld [vmem:[%s4428_s0 + $0x168] sm:$0xff]  ;;  %v73_v7 = vld [vmem:[%s4428_s0 + $0x170] sm:$0xff] }
 0x110   :  { %2582 = vmatprep.mubr.msk.f32.mxu1 %vm96_vm0, %v29_v8  ;;  %2521 = vmatprep.mubr.msk.f32.mxu0 %vm262_vm2, %v230_v9  ;;  %v74_v8 = vld [vmem:[%s4428_s0 + $0x178] sm:$0xff] }
 0x113   :  { %2583 = vmatmul.mubr.msk.f32.gmra.mrb[16].mxu1 %vm96_vm0, %v30_v10  ;;  %2522 = vmatmul.mubr.msk.f32.gmra.mrb[22].mxu0 %vm262_vm2, %v231_v11 }
 0x114   :  { %2585 = vmatprep.mubr.msk.f32.mxu1 %vm96_vm0, %v31_v12  ;;  %2524 = vmatprep.mubr.msk.f32.mxu0 %vm262_vm2, %v232_v13 }
 0x117   :  { %2586 = vmatmul.mubr.msk.f32.gmra.mrb[18].mxu1 %vm96_vm0, %v32_v14  ;;  %2525 = vmatmul.mubr.msk.f32.gmra.mrb[24].mxu0 %vm262_vm2, %v233_v15 }
 0x118   :  { %2588 = vmatprep.mubr.msk.f32.mxu1 %vm96_vm0, %v33_v17  ;;  %2527 = vmatprep.mubr.msk.f32.mxu0 %vm262_vm2, %v234_v18 }
 0x11b   :  { %2589 = vmatmul.mubr.msk.f32.gmra.mrb[20].mxu1 %vm96_vm0, %v34_v19  ;;  %2528 = vmatmul.mubr.msk.f32.gmra.mrb[26].mxu0 %vm262_vm2, %v235_v20 }
 0x11c   :  { %2591 = vmatprep.mubr.msk.f32.mxu1 %vm96_vm0, %v35_v21  ;;  %2530 = vmatprep.mubr.msk.f32.mxu0 %vm262_vm2, %v236_v22 }
 0x11f   :  { %2592 = vmatmul.mubr.msk.f32.gmra.mrb[22].mxu1 %vm96_vm0, %v36_v23  ;;  %2531 = vmatmul.mubr.msk.f32.gmra.mrb[28].mxu0 %vm262_vm2, %v237_v24 }
 0x120   :  { %2594 = vmatprep.mubr.msk.f32.mxu1 %vm96_vm0, %v37_v25  ;;  %2533 = vmatprep.mubr.msk.f32.mxu0 %vm262_vm2, %v238_v26 }
 0x123   :  { %2595 = vmatmul.mubr.msk.f32.gmra.mrb[24].mxu1 %vm96_vm0, %v38_v27  ;;  %2534 = vmatmul.mubr.msk.f32.gmra.mrb[30].mxu0 %vm262_vm2, %v239_v28 }
 0x124   :  { %2597 = vmatprep.mubr.msk.f32.mxu1 %vm96_vm0, %v39_v29  ;;  %2536 = vmatprep.mubr.msk.f32.mxu0 %vm262_vm2, %v240_v30 }
 0x127   :  { %2598 = vmatmul.mubr.msk.f32.gmra.mrb[26].mxu1 %vm96_vm0, %v40_v31  ;;  %2537 = vmatmul.mubr.msk.f32.gmra.mrb[32].mxu0 %vm262_vm2, %v241_v32 }
 0x128   :  { %2600 = vmatprep.mubr.msk.f32.mxu1 %vm96_vm0, %v41_v33  ;;  %2539 = vmatprep.mubr.msk.f32.mxu0 %vm262_vm2, %v242_v34 }
 0x12b   :  { %2601 = vmatmul.mubr.msk.f32.gmra.mrb[28].mxu1 %vm96_vm0, %v42_v35  ;;  %2540 = vmatmul.mubr.msk.f32.gmra.mrb[34].mxu0 %vm262_vm2, %v243_v36 }
 0x12c   :  { %2603 = vmatprep.mubr.msk.f32.mxu1 %vm96_vm0, %v43_v37  ;;  %2542 = vmatprep.mubr.msk.f32.mxu0 %vm262_vm2, %v244_v38 }
 0x12f   :  { %2604 = vmatmul.mubr.msk.f32.gmra.mrb[30].mxu1 %vm96_vm0, %v44_v39  ;;  %2543 = vmatmul.mubr.msk.f32.gmra.mrb[36].mxu0 %vm262_vm2, %v245_v40 }
 0x130   :  { %2606 = vmatprep.mubr.msk.f32.mxu1 %vm96_vm0, %v45_v41  ;;  %2545 = vmatprep.mubr.msk.f32.mxu0 %vm262_vm2, %v246_v42 }
 0x133   :  { %2607 = vmatmul.mubr.msk.f32.gmra.mrb[32].mxu1 %vm96_vm0, %v46_v43  ;;  %2546 = vmatmul.mubr.msk.f32.gmra.mrb[38].mxu0 %vm262_vm2, %v247_v44 }
 0x134   :  { %2609 = vmatprep.mubr.msk.f32.mxu1 %vm96_vm0, %v47_v45 }
 0x137   :  { %2610 = vmatmul.mubr.msk.f32.gmra.mrb[34].mxu1 %vm96_vm0, %v48_v46 }
 0x138   :  { %2612 = vmatprep.mubr.msk.f32.mxu1 %vm96_vm0, %v49_v47 }
 0x13b   :  { %2613 = vmatmul.mubr.msk.f32.gmra.mrb[36].mxu1 %vm96_vm0, %v50_v48 }
 0x13c   :  { %2615 = vmatprep.mubr.msk.f32.mxu1 %vm96_vm0, %v51_v49 }
 0x13f   :  { %2616 = vmatmul.mubr.msk.f32.gmra.mrb[38].mxu1 %vm96_vm0, %v52_v50 }
 0x140   :  { %2618 = vmatprep.mubr.msk.f32.mxu1 %vm96_vm0, %v53_v51 }
 0x143   :  { %2619 = vmatmul.mubr.msk.f32.gmra.mrb[40].mxu1 %vm96_vm0, %v54_v52 }
 0x144   :  { %2621 = vmatprep.mubr.msk.f32.mxu1 %vm96_vm0, %v55_v53 }
 0x147   :  { %2622 = vmatmul.mubr.msk.f32.gmra.mrb[42].mxu1 %vm96_vm0, %v56_v54 }
 0x148   :  { %2624 = vmatprep.mubr.msk.f32.mxu1 %vm96_vm0, %v57_v55 }
 0x14b   :  { %2625 = vmatmul.mubr.msk.f32.gmra.mrb[44].mxu1 %vm96_vm0, %v58_v56 }
 0x14c   :  { %2627 = vmatprep.mubr.msk.f32.mxu1 %vm96_vm0, %v59_v57 }
 0x14f   :  { %2628 = vmatmul.mubr.msk.f32.gmra.mrb[46].mxu1 %vm96_vm0, %v60_v58 }
 0x150   :  { %2630 = vmatprep.mubr.msk.f32.mxu1 %vm96_vm0, %v61_v59 }
 0x153   :  { %2631 = vmatmul.mubr.msk.f32.gmra.mrb[0].mxu1 %vm96_vm0, %v62_v60 }
 0x154   :  { %2633 = vmatprep.mubr.msk.f32.mxu1 %vm96_vm0, %v63_v61 }
 0x157   :  { %2634 = vmatmul.mubr.msk.f32.gmra.mrb[2].mxu1 %vm96_vm0, %v64_v62 }
 0x158   :  { %2636 = vmatprep.mubr.msk.f32.mxu1 %vm96_vm0, %v65_v63 }
 0x15b   :  { %2637 = vmatmul.mubr.msk.f32.gmra.mrb[4].mxu1 %vm96_vm0, %v66_v0 }
 0x15c   :  { %2639 = vmatprep.mubr.msk.f32.mxu1 %vm96_vm0, %v67_v1 }
 0x15f   :  { %2640 = vmatmul.mubr.msk.f32.gmra.mrb[6].mxu1 %vm96_vm0, %v68_v2 }
 0x160   :  { %2642 = vmatprep.mubr.msk.f32.mxu1 %vm96_vm0, %v69_v3 }
 0x163   :  { %2643 = vmatmul.mubr.msk.f32.gmra.mrb[8].mxu1 %vm96_vm0, %v70_v4 }
 0x164   :  { %2645 = vmatprep.mubr.msk.f32.mxu1 %vm96_vm0, %v71_v5 }
 0x167   :  { %2646 = vmatmul.mubr.msk.f32.gmra.mrb[10].mxu1 %vm96_vm0, %v72_v6 }
 0x168   :  { %2648 = vmatprep.mubr.msk.f32.mxu1 %vm96_vm0, %v73_v7 }
 0x16b   :  { %2649 = vmatmul.mubr.msk.f32.gmra.mrb[12].mxu1 %vm96_vm0, %v74_v8 }
 0x1c6   :  { %v2499_v9 = vpop.f32.mrb[6].mxu0 }
 0x1c7   :  { %v473_v10 = vpop.f32.mrb[7].mxu0 }
 0x1ca   :  { %v2502_v11 = vpop.f32.mrb[8].mxu0 }
 0x1cb   :  { %v483_v12 = vpop.f32.mrb[9].mxu0 }
 0x1ce   :  { %v2505_v13 = vpop.f32.mrb[10].mxu0 }
 0x1cf   :  { %v493_v14 = vpop.f32.mrb[11].mxu0 }
 0x1d2   :  { %v2508_v15 = vpop.f32.mrb[12].mxu0 }
 0x1d3   :  { %v503_v17 = vpop.f32.mrb[13].mxu0 }
 0x1d6   :  { %v2511_v18 = vpop.f32.mrb[14].mxu0 }
 0x1d7   :  { %v513_v19 = vpop.f32.mrb[15].mxu0 }
 0x1da   :  { %v2514_v20 = vpop.f32.mrb[16].mxu0 }
 0x1db   :  { %v3453_v21 = vpop.f32.mrb[17].mxu0 }
 0x1de   :  { %v3455_v22 = vpop.f32.mrb[18].mxu0 }
 0x1df   :  { %v3457_v23 = vpop.f32.mrb[19].mxu0 }
 0x1e2   :  { %v2581_v24 = vpop.f32.mrb[14].mxu1  ;;  %v3459_v25 = vpop.f32.mrb[20].mxu0 }
 0x1e3   :  { %v3461_v26 = vadd.f32 %v2581_v24, %v2499_v9  ;;  %v925_v27 = vpop.f32.mrb[15].mxu1  ;;  %v3463_v28 = vpop.f32.mrb[21].mxu0 }
 0x1e4   :  { %v3465_v29 = vadd.f32 %v925_v27, %v473_v10 }
 0x1e5   :  { %v1165_v30 = vmax.f32 %v3461_v26, 0.0 }
 0x1e6   :  { %v2584_v31 = vpop.f32.mrb[16].mxu1  ;;  %v3468_v32 = vpop.f32.mrb[22].mxu0  ;;  %v1164_v33 = vmax.f32 %v3465_v29, 0.0 }
 0x1e7   :  { %v3471_v34 = vadd.f32 %v2584_v31, %v2502_v11  ;;  %v935_v35 = vpop.f32.mrb[17].mxu1  ;;  %v1216_v36 = vsel %vm1212_vm3, %v1165_v30, 0.0  ;;  %v3476_v37 = vpop.f32.mrb[23].mxu0 }
 0x1e8   :  { %v3478_v38 = vadd.f32 %v935_v35, %v483_v12  ;;  %1217 = vadd.xlane.f32.xlu1 %v1216_v36  ;;  %v1213_v45 = vsel %vm1212_vm3, %v1164_v33, 0.0 }
 0x1e9   :  { %v4478_v42 = vmax.f32 %v3471_v34, 0.0 }
 0x1ea   :  { %v1166_v39 = vmax.f32 %v3478_v38, 0.0  ;;  %v2587_v40 = vpop.f32.mrb[18].mxu1  ;;  %v3481_v41 = vpop.f32.mrb[24].mxu0 }
 0x1eb   :  { %v3484_v43 = vadd.f32 %v2587_v40, %v2505_v13  ;;  %v945_v44 = vpop.f32.mrb[19].mxu1  ;;  %v3489_v46 = vpop.f32.mrb[25].mxu0  ;;  %v1222_v55 = vsel %vm1212_vm3, %v4478_v42, 0.0 }
 0x1ec   :  { %v3491_v47 = vadd.f32 %v945_v44, %v493_v14  ;;  %1214 = vadd.xlane.f32.xlu1 %v1213_v45  ;;  %v1219_v48 = vsel %vm1212_vm3, %v1166_v39, 0.0 }
 0x1ed   :  { %1220 = vadd.xlane.f32.xlu0 %v1219_v48  ;;  %v4476_v52 = vmax.f32 %v3484_v43, 0.0 }
 0x1ee   :  { %v4477_v49 = vmax.f32 %v3491_v47, 0.0  ;;  %v2590_v50 = vpop.f32.mrb[20].mxu1  ;;  %v3497_v51 = vpop.f32.mrb[26].mxu0  ;;  %v4493_v38 = vmax.f32 %v3491_v47, 0.0 }
 0x1ef   :  { %v3500_v53 = vadd.f32 %v2590_v50, %v2508_v15  ;;  %v955_v54 = vpop.f32.mrb[21].mxu1  ;;  %v3505_v56 = vpop.f32.mrb[27].mxu0  ;;  %v1228_v1 = vsel %vm1212_vm3, %v4476_v52, 0.0 }
 0x1f0   :  { %v3507_v57 = vadd.f32 %v955_v54, %v503_v17  ;;  %1223 = vadd.xlane.f32.xlu1 %v1222_v55  ;;  %v1225_v58 = vsel %vm1212_vm3, %v4477_v49, 0.0 }
 0x1f1   :  { %1226 = vadd.xlane.f32.xlu0 %v1225_v58  ;;  %v4469_v62 = vmax.f32 %v3500_v53, 0.0 }
 0x1f2   :  { %v4472_v59 = vmax.f32 %v3507_v57, 0.0  ;;  %v2593_v60 = vpop.f32.mrb[22].mxu1  ;;  %v3513_v61 = vpop.f32.mrb[28].mxu0 }
 0x1f3   :  { %v3516_v63 = vadd.f32 %v2593_v60, %v2511_v18  ;;  %v965_v0 = vpop.f32.mrb[23].mxu1  ;;  %v3521_v2 = vpop.f32.mrb[29].mxu0  ;;  %v1234_v11 = vsel %vm1212_vm3, %v4469_v62, 0.0 }
 0x1f4   :  { %v3523_v3 = vadd.f32 %v965_v0, %v513_v19  ;;  %1229 = vadd.xlane.f32.xlu1 %v1228_v1  ;;  %v1231_v4 = vsel %vm1212_vm3, %v4472_v59, 0.0 }
 0x1f5   :  { %1232 = vadd.xlane.f32.xlu0 %v1231_v4  ;;  %v4465_v8 = vmax.f32 %v3516_v63, 0.0 }
 0x1f6   :  { %v4468_v5 = vmax.f32 %v3523_v3, 0.0  ;;  %v2596_v6 = vpop.f32.mrb[24].mxu1  ;;  %v3529_v7 = vpop.f32.mrb[30].mxu0 }
 0x1f7   :  { %v3532_v9 = vadd.f32 %v2596_v6, %v2514_v20  ;;  %v975_v10 = vpop.f32.mrb[25].mxu1  ;;  %v3537_v12 = vpop.f32.mrb[31].mxu0 }
 0x1f8   :  { %v3540_v13 = vadd.f32 %v975_v10, %v3453_v21  ;;  %1235 = vadd.xlane.f32.xlu1 %v1234_v11  ;;  %v1237_v14 = vsel %vm1212_vm3, %v4468_v5, 0.0  ;;  %v1240_v21 = vsel %vm1212_vm3, %v4465_v8, 0.0 }
 0x1f9   :  { %1238 = vadd.xlane.f32.xlu0 %v1237_v14  ;;  %v4461_v19 = vmax.f32 %v3532_v9, 0.0 }
 0x1fa   :  { %v4464_v15 = vmax.f32 %v3540_v13, 0.0  ;;  %v2599_v17 = vpop.f32.mrb[26].mxu1  ;;  %v3546_v18 = vpop.f32.mrb[32].mxu0 }
 0x1fb   :  { %v3550_v20 = vadd.f32 %v2599_v17, %v3455_v22  ;;  %v985_v24 = vpop.f32.mrb[27].mxu1  ;;  %v3555_v27 = vpop.f32.mrb[33].mxu0 }
 0x1fc   :  { %v3558_v31 = vadd.f32 %v985_v24, %v3457_v23  ;;  %1241 = vadd.xlane.f32.xlu1 %v1240_v21  ;;  %v1243_v35 = vsel %vm1212_vm3, %v4464_v15, 0.0  ;;  %v1246_v23 = vsel %vm1212_vm3, %v4461_v19, 0.0 }
 0x1fd   :  { %1244 = vadd.xlane.f32.xlu0 %v1243_v35  ;;  %v4457_v44 = vmax.f32 %v3550_v20, 0.0 }
 0x1fe   :  { %v4460_v36 = vmax.f32 %v3558_v31, 0.0  ;;  %v2602_v22 = vpop.f32.mrb[28].mxu1  ;;  %v3564_v40 = vpop.f32.mrb[34].mxu0 }
 0x1ff   :  { %v3568_v45 = vadd.f32 %v2602_v22, %v3459_v25  ;;  %v995_v48 = vpop.f32.mrb[29].mxu1  ;;  %v3573_v50 = vpop.f32.mrb[35].mxu0 }
 0x200   :  { %v3576_v54 = vadd.f32 %v995_v48, %v3463_v28  ;;  %1247 = vadd.xlane.f32.xlu1 %v1246_v23  ;;  %v1249_v55 = vsel %vm1212_vm3, %v4460_v36, 0.0  ;;  %v1252_v28 = vsel %vm1212_vm3, %v4457_v44, 0.0 }
 0x201   :  { %1250 = vadd.xlane.f32.xlu0 %v1249_v55  ;;  %v4454_v0 = vmax.f32 %v3568_v45, 0.0 }
 0x202   :  { %v4456_v58 = vmax.f32 %v3576_v54, 0.0  ;;  %v2605_v25 = vpop.f32.mrb[30].mxu1  ;;  %v3582_v60 = vpop.f32.mrb[36].mxu0 }
 0x203   :  { %v3586_v1 = vadd.f32 %v2605_v25, %v3468_v32  ;;  %v1005_v4 = vpop.f32.mrb[31].mxu1  ;;  %v3591_v6 = vpop.f32.mrb[37].mxu0  ;;  %v1258_v21 = vsel %vm1212_vm3, %v4454_v0, 0.0 }
 0x204   :  { %v3594_v10 = vadd.f32 %v1005_v4, %v3476_v37  ;;  %1253 = vadd.xlane.f32.xlu1 %v1252_v28  ;;  %v1255_v11 = vsel %vm1212_vm3, %v4456_v58, 0.0 }
 0x205   :  { %v4451_v14 = vmax.f32 %v3586_v1, 0.0  ;;  %1256 = vadd.xlane.f32.xlu0 %v1255_v11 }
 0x206   :  { %v2608_v32 = vpop.f32.mrb[32].mxu1  ;;  %v3600_v17 = vpop.f32.mrb[38].mxu0  ;;  %v4436_v48 = vmax.f32 %v3594_v10, 0.0 }
 0x207   :  { %v3603_v24 = vadd.f32 %v2608_v32, %v3481_v41  ;;  %v1015_v37 = vpop.f32.mrb[33].mxu1  ;;  %v1264_v35 = vsel %vm1212_vm3, %v4451_v14, 0.0  ;;  %v3611_v22 = vpop.f32.mrb[39].mxu0 }
 0x208   :  { %1259 = vadd.xlane.f32.xlu1 %v1258_v21  ;;  %v3615_v23 = vadd.f32 %v1015_v37, %v3489_v46  ;;  %v1261_v46 = vsel %vm1212_vm3, %v4436_v48, 0.0 }
 0x209   :  { %v4437_v41 = vmax.f32 %v3603_v24, 0.0  ;;  %1265 = vadd.xlane.f32.xlu0 %v1264_v35 }
 0x20a   :  { %v4438_v55 = vmax.f32 %v3615_v23, 0.0  ;;  %v2611_v25 = vpop.f32.mrb[34].mxu1 }
 0x20b   :  { %v3620_v4 = vadd.f32 %v2611_v25, %v3497_v51  ;;  %v1270_v28 = vsel %vm1212_vm3, %v4437_v41, 0.0  ;;  %v1025_v11 = vpop.f32.mrb[35].mxu1 }
 0x20c   :  { %1271 = vadd.xlane.f32.xlu1 %v1270_v28  ;;  %v3626_v32 = vadd.f32 %v1025_v11, %v3505_v56  ;;  %v1267_v35 = vsel %vm1212_vm3, %v4438_v55, 0.0 }
 0x20d   :  { %v4439_v21 = vmax.f32 %v3620_v4, 0.0  ;;  %1262 = vadd.xlane.f32.xlu0 %v1261_v46 }
 0x20e   :  { %v4440_v37 = vmax.f32 %v3626_v32, 0.0  ;;  %v2614_v51 = vpop.f32.mrb[36].mxu1 }
 0x20f   :  { %v3637_v25 = vadd.f32 %v2614_v51, %v3513_v61  ;;  %v1276_v56 = vsel %vm1212_vm3, %v4439_v21, 0.0  ;;  %v1035_v28 = vpop.f32.mrb[37].mxu1 }
 0x210   :  { %1277 = vadd.xlane.f32.xlu1 %v1276_v56  ;;  %v3643_v11 = vadd.f32 %v1035_v28, %v3521_v2  ;;  %v1273_v61 = vsel %vm1212_vm3, %v4440_v37, 0.0 }
 0x211   :  { %v4441_v46 = vmax.f32 %v3637_v25, 0.0  ;;  %1268 = vadd.xlane.f32.xlu0 %v1267_v35 }
 0x212   :  { %v4442_v48 = vmax.f32 %v3643_v11, 0.0  ;;  %v2617_v41 = vpop.f32.mrb[38].mxu1 }
 0x213   :  { %v3651_v51 = vadd.f32 %v2617_v41, %v3529_v7  ;;  %v1282_v56 = vsel %vm1212_vm3, %v4441_v46, 0.0  ;;  %v1045_v55 = vpop.f32.mrb[39].mxu1 }
 0x214   :  { %1283 = vadd.xlane.f32.xlu1 %v1282_v56  ;;  %v3657_v2 = vadd.f32 %v1045_v55, %v3537_v12  ;;  %v1279_v7 = vsel %vm1212_vm3, %v4442_v48, 0.0 }
 0x215   :  { %v4443_v35 = vmax.f32 %v3651_v51, 0.0  ;;  %1274 = vadd.xlane.f32.xlu0 %v1273_v61 }
 0x216   :  { %v4444_v28 = vmax.f32 %v3657_v2, 0.0  ;;  %v2620_v21 = vpop.f32.mrb[40].mxu1 }
 0x217   :  { %v3665_v41 = vadd.f32 %v2620_v21, %v3546_v18  ;;  %v1288_v56 = vsel %vm1212_vm3, %v4443_v35, 0.0  ;;  %v1055_v37 = vpop.f32.mrb[41].mxu1 }
 0x218   :  { %1289 = vadd.xlane.f32.xlu1 %v1288_v56  ;;  %v3671_v12 = vadd.f32 %v1055_v37, %v3555_v27  ;;  %v1285_v18 = vsel %vm1212_vm3, %v4444_v28, 0.0 }
 0x219   :  { %v4445_v55 = vmax.f32 %v3665_v41, 0.0  ;;  %1280 = vadd.xlane.f32.xlu0 %v1279_v7 }
 0x21a   :  { %v4446_v61 = vmax.f32 %v3671_v12, 0.0  ;;  %v2623_v46 = vpop.f32.mrb[42].mxu1 }
 0x21b   :  { %v3679_v21 = vadd.f32 %v2623_v46, %v3564_v40  ;;  %v1294_v56 = vsel %vm1212_vm3, %v4445_v55, 0.0  ;;  %v1065_v48 = vpop.f32.mrb[43].mxu1 }
 0x21c   :  { %1295 = vadd.xlane.f32.xlu1 %v1294_v56  ;;  %v3685_v27 = vadd.f32 %v1065_v48, %v3573_v50  ;;  %v1291_v40 = vsel %vm1212_vm3, %v4446_v61, 0.0 }
 0x21d   :  { %v4447_v37 = vmax.f32 %v3679_v21, 0.0  ;;  %1286 = vadd.xlane.f32.xlu0 %v1285_v18 }
 0x21e   :  { %v4448_v7 = vmax.f32 %v3685_v27, 0.0  ;;  %v2626_v35 = vpop.f32.mrb[44].mxu1 }
 0x21f   :  { %v3693_v46 = vadd.f32 %v2626_v35, %v3582_v60  ;;  %v1300_v56 = vsel %vm1212_vm3, %v4447_v37, 0.0  ;;  %v1075_v28 = vpop.f32.mrb[45].mxu1 }
 0x220   :  { %1301 = vadd.xlane.f32.xlu1 %v1300_v56  ;;  %v3699_v50 = vadd.f32 %v1075_v28, %v3591_v6  ;;  %v1297_v60 = vsel %vm1212_vm3, %v4448_v7, 0.0 }
 0x221   :  { %v4449_v48 = vmax.f32 %v3693_v46, 0.0  ;;  %1292 = vadd.xlane.f32.xlu0 %v1291_v40 }
 0x222   :  { %v4450_v18 = vmax.f32 %v3699_v50, 0.0  ;;  %v2629_v55 = vpop.f32.mrb[46].mxu1 }
 0x223   :  { %v3707_v35 = vadd.f32 %v2629_v55, %v3600_v17  ;;  %v1306_v56 = vsel %vm1212_vm3, %v4449_v48, 0.0  ;;  %v1085_v61 = vpop.f32.mrb[47].mxu1 }
 0x224   :  { %1307 = vadd.xlane.f32.xlu1 %v1306_v56  ;;  %v3713_v6 = vadd.f32 %v1085_v61, %v3611_v22  ;;  %v1303_v17 = vsel %vm1212_vm3, %v4450_v18, 0.0 }
 0x225   :  { %v4452_v28 = vmax.f32 %v3707_v35, 0.0  ;;  %1298 = vadd.xlane.f32.xlu0 %v1297_v60 }
 0x226   :  { %v3716_v40 = vpop.f32.mrb[0].mxu1  ;;  %v4453_v37 = vmax.f32 %v3713_v6, 0.0 }
 0x227   :  { %v4455_v55 = vmax.f32 %v3716_v40, 0.0  ;;  %v3723_v7 = vpop.f32.mrb[1].mxu1  ;;  %v1312_v22 = vsel %vm1212_vm3, %v4452_v28, 0.0 }
 0x228   :  { %1313 = vadd.xlane.f32.xlu1 %v1312_v22  ;;  %v1309_v60 = vsel %vm1212_vm3, %v4453_v37, 0.0  ;;  %v4459_v14 = vmax.f32 %v3723_v7, 0.0 }
 0x229   :  { %1304 = vadd.xlane.f32.xlu0 %v1303_v17  ;;  %v1318_v18 = vsel %vm1212_vm3, %v4455_v55, 0.0 }
 0x22a   :  { %v3728_v61 = vpop.f32.mrb[2].mxu1  ;;  %v1315_v55 = vsel %vm1212_vm3, %v4459_v14, 0.0 }
 0x22b   :  { %v4458_v56 = vmax.f32 %v3728_v61, 0.0  ;;  %v3734_v48 = vpop.f32.mrb[3].mxu1 }
 0x22c   :  { %1319 = vadd.xlane.f32.xlu1 %v1318_v18  ;;  %v4463_v0 = vmax.f32 %v3734_v48, 0.0 }
 0x22d   :  { %1310 = vadd.xlane.f32.xlu0 %v1309_v60  ;;  %v1324_v37 = vsel %vm1212_vm3, %v4458_v56, 0.0 }
 0x22e   :  { %v3740_v22 = vpop.f32.mrb[4].mxu1 }
 0x22f   :  { %v4462_v17 = vmax.f32 %v3740_v22, 0.0  ;;  %v3743_v28 = vpop.f32.mrb[5].mxu1 }
 0x230   :  { %1325 = vadd.xlane.f32.xlu1 %v1324_v37  ;;  %v4467_v56 = vmax.f32 %v3743_v28, 0.0  ;;  %v1321_v37 = vsel %vm1212_vm3, %v4463_v0, 0.0 }
 0x231   :  { %1316 = vadd.xlane.f32.xlu0 %v1315_v55  ;;  %v1330_v44 = vsel %vm1212_vm3, %v4462_v17, 0.0 }
 0x232   :  { %v3752_v18 = vpop.f32.mrb[6].mxu1 }
 0x233   :  { %v4466_v60 = vmax.f32 %v3752_v18, 0.0  ;;  %v3755_v58 = vpop.f32.mrb[7].mxu1 }
 0x234   :  { %1331 = vadd.xlane.f32.xlu1 %v1330_v44  ;;  %v4471_v17 = vmax.f32 %v3755_v58, 0.0  ;;  %v1327_v44 = vsel %vm1212_vm3, %v4467_v56, 0.0 }
 0x235   :  { %1322 = vadd.xlane.f32.xlu0 %v1321_v37  ;;  %v1336_v19 = vsel %vm1212_vm3, %v4466_v60, 0.0 }
 0x236   :  { %v3764_v14 = vpop.f32.mrb[8].mxu1 }
 0x237   :  { %v4470_v55 = vmax.f32 %v3764_v14, 0.0  ;;  %v3767_v36 = vpop.f32.mrb[9].mxu1 }
 0x238   :  { %1337 = vadd.xlane.f32.xlu1 %v1336_v19  ;;  %v4474_v60 = vmax.f32 %v3767_v36, 0.0  ;;  %v1333_v19 = vsel %vm1212_vm3, %v4471_v17, 0.0 }
 0x239   :  { %1328 = vadd.xlane.f32.xlu0 %v1327_v44  ;;  %v1342_v8 = vsel %vm1212_vm3, %v4470_v55, 0.0 }
 0x23a   :  { %v3776_v0 = vpop.f32.mrb[10].mxu1 }
 0x23b   :  { %v4473_v37 = vmax.f32 %v3776_v0, 0.0  ;;  %v3779_v15 = vpop.f32.mrb[11].mxu1 }
 0x23c   :  { %1343 = vadd.xlane.f32.xlu1 %v1342_v8  ;;  %v4480_v55 = vmax.f32 %v3779_v15, 0.0  ;;  %v1339_v8 = vsel %vm1212_vm3, %v4474_v60, 0.0 }
 0x23d   :  { %1334 = vadd.xlane.f32.xlu0 %v1333_v19  ;;  %v1348_v62 = vsel %vm1212_vm3, %v4473_v37, 0.0 }
 0x23e   :  { %v3788_v56 = vpop.f32.mrb[12].mxu1  ;;  %v1345_v59 = vsel %vm1212_vm3, %v4480_v55, 0.0 }
 0x23f   :  { %v4475_v44 = vmax.f32 %v3788_v56, 0.0  ;;  %v3791_v5 = vpop.f32.mrb[13].mxu1 }
 0x240   :  { %1349 = vadd.xlane.f32.xlu1 %v1348_v62  ;;  %v4479_v17 = vmax.f32 %v3791_v5, 0.0 }
 0x241   :  { %1340 = vadd.xlane.f32.xlu0 %v1339_v8  ;;  %v1354_v19 = vsel %vm1212_vm3, %v4475_v44, 0.0 }
 0x242   :  { %v1351_v62 = vsel %vm1212_vm3, %v4479_v17, 0.0 }
 0x244   :  { %1355 = vadd.xlane.f32.xlu1 %v1354_v19 }
 0x245   :  { %1346 = vadd.xlane.f32.xlu0 %v1345_v59 }
 0x249   :  { %1352 = vadd.xlane.f32.xlu0 %v1351_v62 }
 0x275   :  { %v1218_v37 = vpop.xlane.xlu1 %1217 }
 0x276   :  { %v1359_v60 = vmul.f32 0.03125, %v1218_v37 }
 0x278   :  { %v3812_v8 = vsub.f32 %v1165_v30, %v1359_v60 }
 0x279   :  { %v1215_v44 = vpop.xlane.xlu1 %1214 }
 0x27a   :  { %v1358_v52 = vmul.f32 0.03125, %v1215_v44  ;;  %v1221_v49 = vpop.xlane.xlu0 %1220  ;;  %v1455_v19 = vmul.f32 %v3812_v8, %v3812_v8 }
 0x27b   :  { %v1360_v42 = vmul.f32 0.03125, %v1221_v49  ;;  %v4492_v49 = vmax.f32 %v3471_v34, 0.0  ;;  %v4494_v34 = vmax.f32 %v3484_v43, 0.0 }
 0x27c   :  { %v3818_v59 = vsub.f32 %v1164_v33, %v1358_v52  ;;  %v1505_v17 = vsel %vm1212_vm3, %v1455_v19, 0.0 }
 0x27d   :  { %v3823_v37 = vsub.f32 %v1166_v39, %v1360_v42  ;;  %1506 = vadd.xlane.f32.xlu1 %v1505_v17  ;;  %v1224_v26 = vpop.xlane.xlu1 %1223 }
 0x27e   :  { %v1361_v30 = vmul.f32 0.03125, %v1224_v26  ;;  %v1227_v60 = vpop.xlane.xlu0 %1226  ;;  %v1454_v44 = vmul.f32 %v3818_v59, %v3818_v59 }
 0x27f   :  { %v1362_v62 = vmul.f32 0.03125, %v1227_v60  ;;  %v1456_v33 = vmul.f32 %v3823_v37, %v3823_v37 }
 0x280   :  { %v3829_v55 = vsub.f32 %v4492_v49, %v1361_v30  ;;  %v1502_v29 = vsel %vm1212_vm3, %v1454_v44, 0.0 }
 0x281   :  { %v3836_v39 = vsub.f32 %v4493_v38, %v1362_v62  ;;  %1503 = vadd.xlane.f32.xlu0 %v1502_v29  ;;  %v1230_v42 = vpop.xlane.xlu1 %1229  ;;  %v1508_v60 = vsel %vm1212_vm3, %v1456_v33, 0.0  ;;  %v4495_v62 = vmax.f32 %v3507_v57, 0.0  ;;  %v4496_v33 = vmax.f32 %v3500_v53, 0.0 }
 0x282   :  { %v1363_v52 = vmul.f32 0.03125, %v1230_v42  ;;  %v1233_v17 = vpop.xlane.xlu0 %1232  ;;  %v1457_v19 = vmul.f32 %v3829_v55, %v3829_v55 }
 0x283   :  { %v1364_v26 = vmul.f32 0.03125, %v1233_v17  ;;  %v1458_v47 = vmul.f32 %v3836_v39, %v3836_v39 }
 0x284   :  { %v3842_v30 = vsub.f32 %v4494_v34, %v1363_v52  ;;  %v1511_v44 = vsel %vm1212_vm3, %v1457_v19, 0.0 }
 0x285   :  { %v3850_v49 = vsub.f32 %v4495_v62, %v1364_v26  ;;  %1509 = vadd.xlane.f32.xlu0 %v1508_v60  ;;  %1512 = vadd.xlane.f32.xlu1 %v1511_v44  ;;  %v1236_v29 = vpop.xlane.xlu1 %1235  ;;  %v1514_v19 = vsel %vm1212_vm3, %v1458_v47, 0.0  ;;  %v4497_v26 = vmax.f32 %v3523_v3, 0.0  ;;  %v4498_v47 = vmax.f32 %v3516_v63, 0.0 }
 0x286   :  { %v1365_v38 = vmul.f32 0.03125, %v1236_v29  ;;  %v1239_v42 = vpop.xlane.xlu0 %1238  ;;  %v1459_v43 = vmul.f32 %v3842_v30, %v3842_v30 }
 0x287   :  { %v1366_v52 = vmul.f32 0.03125, %v1239_v42  ;;  %v1460_v57 = vmul.f32 %v3850_v49, %v3850_v49 }
 0x288   :  { %v3856_v17 = vsub.f32 %v4496_v33, %v1365_v38  ;;  %v1517_v34 = vsel %vm1212_vm3, %v1459_v43, 0.0 }
 0x289   :  { %v3864_v60 = vsub.f32 %v4497_v26, %v1366_v52  ;;  %1515 = vadd.xlane.f32.xlu0 %v1514_v19  ;;  %1518 = vadd.xlane.f32.xlu1 %v1517_v34  ;;  %v1242_v44 = vpop.xlane.xlu1 %1241  ;;  %v1520_v43 = vsel %vm1212_vm3, %v1460_v57, 0.0  ;;  %v4499_v52 = vmax.f32 %v3540_v13, 0.0  ;;  %v4500_v57 = vmax.f32 %v3532_v9, 0.0 }
 0x28a   :  { %v1367_v62 = vmul.f32 0.03125, %v1242_v44  ;;  %v1245_v29 = vpop.xlane.xlu0 %1244  ;;  %v1461_v53 = vmul.f32 %v3856_v17, %v3856_v17 }
 0x28b   :  { %v1368_v38 = vmul.f32 0.03125, %v1245_v29  ;;  %v1462_v3 = vmul.f32 %v3864_v60, %v3864_v60 }
 0x28c   :  { %v3870_v42 = vsub.f32 %v4498_v47, %v1367_v62  ;;  %v1523_v33 = vsel %vm1212_vm3, %v1461_v53, 0.0 }
 0x28d   :  { %v3878_v19 = vsub.f32 %v4499_v52, %v1368_v38  ;;  %1521 = vadd.xlane.f32.xlu0 %v1520_v43  ;;  %1524 = vadd.xlane.f32.xlu1 %v1523_v33  ;;  %v1248_v34 = vpop.xlane.xlu1 %1247  ;;  %v1526_v53 = vsel %vm1212_vm3, %v1462_v3, 0.0  ;;  %v4501_v38 = vmax.f32 %v3558_v31, 0.0  ;;  %v4502_v3 = vmax.f32 %v3550_v20, 0.0 }
 0x28e   :  { %v1369_v26 = vmul.f32 0.03125, %v1248_v34  ;;  %v1251_v44 = vpop.xlane.xlu0 %1250  ;;  %v1463_v63 = vmul.f32 %v3870_v42, %v3870_v42 }
 0x28f   :  { %v1370_v62 = vmul.f32 0.03125, %v1251_v44  ;;  %v1464_v13 = vmul.f32 %v3878_v19, %v3878_v19 }
 0x290   :  { %v3884_v29 = vsub.f32 %v4500_v57, %v1369_v26  ;;  %v1529_v47 = vsel %vm1212_vm3, %v1463_v63, 0.0 }
 0x291   :  { %v3892_v43 = vsub.f32 %v4501_v38, %v1370_v62  ;;  %1527 = vadd.xlane.f32.xlu0 %v1526_v53  ;;  %1530 = vadd.xlane.f32.xlu1 %v1529_v47  ;;  %v1254_v33 = vpop.xlane.xlu1 %1253  ;;  %v1532_v63 = vsel %vm1212_vm3, %v1464_v13, 0.0  ;;  %v4503_v62 = vmax.f32 %v3576_v54, 0.0  ;;  %v4504_v13 = vmax.f32 %v3568_v45, 0.0 }
 0x292   :  { %v1371_v52 = vmul.f32 0.03125, %v1254_v33  ;;  %v1257_v34 = vpop.xlane.xlu0 %1256  ;;  %v1465_v9 = vmul.f32 %v3884_v29, %v3884_v29 }
 0x293   :  { %v1372_v26 = vmul.f32 0.03125, %v1257_v34  ;;  %v1466_v31 = vmul.f32 %v3892_v43, %v3892_v43 }
 0x294   :  { %v3898_v44 = vsub.f32 %v4502_v3, %v1371_v52  ;;  %v1535_v57 = vsel %vm1212_vm3, %v1465_v9, 0.0 }
 0x295   :  { %v3906_v53 = vsub.f32 %v4503_v62, %v1372_v26  ;;  %1533 = vadd.xlane.f32.xlu0 %v1532_v63  ;;  %1536 = vadd.xlane.f32.xlu1 %v1535_v57  ;;  %v1260_v47 = vpop.xlane.xlu1 %1259  ;;  %v1538_v9 = vsel %vm1212_vm3, %v1466_v31, 0.0  ;;  %v4505_v26 = vmax.f32 %v3586_v1, 0.0  ;;  %v4506_v31 = vmax.f32 %v3603_v24, 0.0 }
 0x296   :  { %v1373_v38 = vmul.f32 0.03125, %v1260_v47  ;;  %v1266_v33 = vpop.xlane.xlu0 %1265  ;;  %v1467_v20 = vmul.f32 %v3898_v44, %v3898_v44 }
 0x297   :  { %v1375_v52 = vmul.f32 0.03125, %v1266_v33  ;;  %v1468_v54 = vmul.f32 %v3906_v53, %v3906_v53 }
 0x298   :  { %v3912_v34 = vsub.f32 %v4504_v13, %v1373_v38  ;;  %v1541_v3 = vsel %vm1212_vm3, %v1467_v20, 0.0 }
 0x299   :  { %v3920_v63 = vsub.f32 %v4505_v26, %v1375_v52  ;;  %1539 = vadd.xlane.f32.xlu0 %v1538_v9  ;;  %1542 = vadd.xlane.f32.xlu1 %v1541_v3  ;;  %v1272_v57 = vpop.xlane.xlu1 %1271  ;;  %v1544_v20 = vsel %vm1212_vm3, %v1468_v54, 0.0  ;;  %v4507_v52 = vmax.f32 %v3594_v10, 0.0  ;;  %v4508_v54 = vmax.f32 %v3620_v4, 0.0 }
 0x29a   :  { %v1377_v62 = vmul.f32 0.03125, %v1272_v57  ;;  %v1263_v47 = vpop.xlane.xlu0 %1262  ;;  %v1469_v45 = vmul.f32 %v3912_v34, %v3912_v34 }
 0x29b   :  { %v1374_v38 = vmul.f32 0.03125, %v1263_v47  ;;  %v1471_v1 = vmul.f32 %v3920_v63, %v3920_v63 }
 0x29c   :  { %v3926_v33 = vsub.f32 %v4506_v31, %v1377_v62  ;;  %v1547_v13 = vsel %vm1212_vm3, %v1469_v45, 0.0 }
 0x29d   :  { %v3934_v9 = vsub.f32 %v4507_v52, %v1374_v38  ;;  %1545 = vadd.xlane.f32.xlu0 %v1544_v20  ;;  %1548 = vadd.xlane.f32.xlu1 %v1547_v13  ;;  %v1278_v3 = vpop.xlane.xlu1 %1277  ;;  %v1553_v45 = vsel %vm1212_vm3, %v1471_v1, 0.0  ;;  %v4509_v38 = vmax.f32 %v3615_v23, 0.0  ;;  %v4510_v1 = vmax.f32 %v3637_v25, 0.0 }
 0x29e   :  { %v1379_v26 = vmul.f32 0.03125, %v1278_v3  ;;  %v1269_v57 = vpop.xlane.xlu0 %1268  ;;  %v1473_v10 = vmul.f32 %v3926_v33, %v3926_v33 }
 0x29f   :  { %v1376_v47 = vmul.f32 0.03125, %v1269_v57  ;;  %v1470_v24 = vmul.f32 %v3934_v9, %v3934_v9 }
 0x2a0   :  { %v3940_v62 = vsub.f32 %v4508_v54, %v1379_v26  ;;  %v1559_v54 = vsel %vm1212_vm3, %v1473_v10, 0.0  ;;  %v4512_v10 = vmax.f32 %v3651_v51, 0.0 }
 0x2a1   :  { %v3947_v31 = vsub.f32 %v4509_v38, %v1376_v47  ;;  %1554 = vadd.xlane.f32.xlu1 %v1553_v45  ;;  %v1284_v20 = vpop.xlane.xlu1 %1283  ;;  %v1550_v13 = vsel %vm1212_vm3, %v1470_v24, 0.0  ;;  %v4511_v47 = vmax.f32 %v3626_v32, 0.0 }
 0x2a2   :  { %v1381_v52 = vmul.f32 0.03125, %v1284_v20  ;;  %v1275_v3 = vpop.xlane.xlu0 %1274  ;;  %1551 = vadd.xlane.f32.xlu0 %v1550_v13  ;;  %v1475_v23 = vmul.f32 %v3940_v62, %v3940_v62 }
 0x2a3   :  { %v1378_v57 = vmul.f32 0.03125, %v1275_v3  ;;  %v1472_v4 = vmul.f32 %v3947_v31, %v3947_v31 }
 0x2a4   :  { %v3954_v26 = vsub.f32 %v4510_v1, %v1381_v52  ;;  %v1565_v1 = vsel %vm1212_vm3, %v1475_v23, 0.0  ;;  %v4514_v23 = vmax.f32 %v3665_v41, 0.0 }
 0x2a5   :  { %v3961_v45 = vsub.f32 %v4511_v47, %v1378_v57  ;;  %1560 = vadd.xlane.f32.xlu1 %v1559_v54  ;;  %v1290_v24 = vpop.xlane.xlu1 %1289  ;;  %v1556_v38 = vsel %vm1212_vm3, %v1472_v4, 0.0  ;;  %v4513_v57 = vmax.f32 %v3643_v11, 0.0 }
 0x2a6   :  { %v1383_v20 = vmul.f32 0.03125, %v1290_v24  ;;  %v1281_v13 = vpop.xlane.xlu0 %1280  ;;  %1557 = vadd.xlane.f32.xlu0 %v1556_v38  ;;  %v1477_v32 = vmul.f32 %v3954_v26, %v3954_v26 }
 0x2a7   :  { %v1380_v3 = vmul.f32 0.03125, %v1281_v13  ;;  %v1474_v25 = vmul.f32 %v3961_v45, %v3961_v45 }
 0x2a8   :  { %v3968_v52 = vsub.f32 %v4512_v10, %v1383_v20  ;;  %v1571_v10 = vsel %vm1212_vm3, %v1477_v32, 0.0  ;;  %v4516_v32 = vmax.f32 %v3679_v21, 0.0 }
 0x2a9   :  { %v3975_v54 = vsub.f32 %v4513_v57, %v1380_v3  ;;  %1566 = vadd.xlane.f32.xlu1 %v1565_v1  ;;  %v1296_v4 = vpop.xlane.xlu1 %1295  ;;  %v1562_v47 = vsel %vm1212_vm3, %v1474_v25, 0.0  ;;  %v4515_v3 = vmax.f32 %v3657_v2, 0.0 }
 0x2aa   :  { %v1385_v24 = vmul.f32 0.03125, %v1296_v4  ;;  %v1287_v38 = vpop.xlane.xlu0 %1286  ;;  %1563 = vadd.xlane.f32.xlu0 %v1562_v47  ;;  %v1479_v11 = vmul.f32 %v3968_v52, %v3968_v52 }
 0x2ab   :  { %v1382_v13 = vmul.f32 0.03125, %v1287_v38  ;;  %v1476_v51 = vmul.f32 %v3975_v54, %v3975_v54 }
 0x2ac   :  { %v3982_v20 = vsub.f32 %v4514_v23, %v1385_v24  ;;  %v1577_v23 = vsel %vm1212_vm3, %v1479_v11, 0.0  ;;  %v4518_v11 = vmax.f32 %v3693_v46, 0.0 }
 0x2ad   :  { %v3989_v1 = vsub.f32 %v4515_v3, %v1382_v13  ;;  %1572 = vadd.xlane.f32.xlu1 %v1571_v10  ;;  %v1302_v25 = vpop.xlane.xlu1 %1301  ;;  %v1568_v57 = vsel %vm1212_vm3, %v1476_v51, 0.0  ;;  %v4517_v13 = vmax.f32 %v3671_v12, 0.0 }
 0x2ae   :  { %v1387_v4 = vmul.f32 0.03125, %v1302_v25  ;;  %v1293_v47 = vpop.xlane.xlu0 %1292  ;;  %1569 = vadd.xlane.f32.xlu0 %v1568_v57  ;;  %v1481_v2 = vmul.f32 %v3982_v20, %v3982_v20 }
 0x2af   :  { %v1384_v38 = vmul.f32 0.03125, %v1293_v47  ;;  %v1478_v41 = vmul.f32 %v3989_v1, %v3989_v1 }
 0x2b0   :  { %v3996_v24 = vsub.f32 %v4516_v32, %v1387_v4  ;;  %v1583_v32 = vsel %vm1212_vm3, %v1481_v2, 0.0  ;;  %v4520_v2 = vmax.f32 %v3707_v35, 0.0 }
 0x2b1   :  { %v4003_v10 = vsub.f32 %v4517_v13, %v1384_v38  ;;  %1578 = vadd.xlane.f32.xlu1 %v1577_v23  ;;  %v1308_v51 = vpop.xlane.xlu1 %1307  ;;  %v1574_v3 = vsel %vm1212_vm3, %v1478_v41, 0.0  ;;  %v4519_v38 = vmax.f32 %v3685_v27, 0.0 }
 0x2b2   :  { %v1389_v25 = vmul.f32 0.03125, %v1308_v51  ;;  %v1299_v57 = vpop.xlane.xlu0 %1298  ;;  %1575 = vadd.xlane.f32.xlu0 %v1574_v3  ;;  %v1483_v12 = vmul.f32 %v3996_v24, %v3996_v24 }
 0x2b3   :  { %v1386_v47 = vmul.f32 0.03125, %v1299_v57  ;;  %v1480_v21 = vmul.f32 %v4003_v10, %v4003_v10 }
 0x2b4   :  { %v4010_v4 = vsub.f32 %v4518_v11, %v1389_v25  ;;  %v1589_v11 = vsel %vm1212_vm3, %v1483_v12, 0.0  ;;  %v4522_v12 = vmax.f32 %v3716_v40, 0.0 }
 0x2b5   :  { %v4017_v23 = vsub.f32 %v4519_v38, %v1386_v47  ;;  %1584 = vadd.xlane.f32.xlu1 %v1583_v32  ;;  %v1314_v41 = vpop.xlane.xlu1 %1313  ;;  %v1580_v13 = vsel %vm1212_vm3, %v1480_v21, 0.0  ;;  %v4521_v47 = vmax.f32 %v3699_v50, 0.0 }
 0x2b6   :  { %v1391_v51 = vmul.f32 0.03125, %v1314_v41  ;;  %v1305_v3 = vpop.xlane.xlu0 %1304  ;;  %1581 = vadd.xlane.f32.xlu0 %v1580_v13  ;;  %v1485_v27 = vmul.f32 %v4010_v4, %v4010_v4 }
 0x2b7   :  { %v1388_v57 = vmul.f32 0.03125, %v1305_v3  ;;  %v1482_v46 = vmul.f32 %v4017_v23, %v4017_v23 }
 0x2b8   :  { %v4024_v25 = vsub.f32 %v4520_v2, %v1391_v51  ;;  %v1595_v2 = vsel %vm1212_vm3, %v1485_v27, 0.0  ;;  %v4524_v27 = vmax.f32 %v3728_v61, 0.0 }
 0x2b9   :  { %v4031_v32 = vsub.f32 %v4521_v47, %v1388_v57  ;;  %1590 = vadd.xlane.f32.xlu1 %v1589_v11  ;;  %v1320_v21 = vpop.xlane.xlu1 %1319  ;;  %v1586_v38 = vsel %vm1212_vm3, %v1482_v46, 0.0  ;;  %v4523_v57 = vmax.f32 %v3713_v6, 0.0 }
 0x2ba   :  { %v1393_v41 = vmul.f32 0.03125, %v1320_v21  ;;  %v1311_v13 = vpop.xlane.xlu0 %1310  ;;  %1587 = vadd.xlane.f32.xlu0 %v1586_v38  ;;  %v1487_v50 = vmul.f32 %v4024_v25, %v4024_v25 }
 0x2bb   :  { %v1390_v3 = vmul.f32 0.03125, %v1311_v13  ;;  %v1484_v35 = vmul.f32 %v4031_v32, %v4031_v32 }
 0x2bc   :  { %v4038_v51 = vsub.f32 %v4522_v12, %v1393_v41  ;;  %v1601_v12 = vsel %vm1212_vm3, %v1487_v50, 0.0  ;;  %v4526_v50 = vmax.f32 %v3740_v22, 0.0 }
 0x2bd   :  { %v4045_v11 = vsub.f32 %v4523_v57, %v1390_v3  ;;  %1596 = vadd.xlane.f32.xlu1 %v1595_v2  ;;  %v1326_v46 = vpop.xlane.xlu1 %1325  ;;  %v1592_v47 = vsel %vm1212_vm3, %v1484_v35, 0.0  ;;  %v4525_v3 = vmax.f32 %v3723_v7, 0.0 }
 0x2be   :  { %v1395_v21 = vmul.f32 0.03125, %v1326_v46  ;;  %v1317_v38 = vpop.xlane.xlu0 %1316  ;;  %1593 = vadd.xlane.f32.xlu0 %v1592_v47  ;;  %v1489_v6 = vmul.f32 %v4038_v51, %v4038_v51 }
 0x2bf   :  { %v1392_v13 = vmul.f32 0.03125, %v1317_v38  ;;  %v1486_v40 = vmul.f32 %v4045_v11, %v4045_v11 }
 0x2c0   :  { %v4052_v41 = vsub.f32 %v4524_v27, %v1395_v21  ;;  %v1607_v27 = vsel %vm1212_vm3, %v1489_v6, 0.0  ;;  %v4530_v6 = vmax.f32 %v3752_v18, 0.0 }
 0x2c1   :  { %v4059_v2 = vsub.f32 %v4525_v3, %v1392_v13  ;;  %1602 = vadd.xlane.f32.xlu1 %v1601_v12  ;;  %v1332_v35 = vpop.xlane.xlu1 %1331  ;;  %v1598_v57 = vsel %vm1212_vm3, %v1486_v40, 0.0  ;;  %v4528_v13 = vmax.f32 %v3734_v48, 0.0 }
 0x2c2   :  { %v1397_v46 = vmul.f32 0.03125, %v1332_v35  ;;  %v1323_v47 = vpop.xlane.xlu0 %1322  ;;  %1599 = vadd.xlane.f32.xlu0 %v1598_v57  ;;  %v1491_v7 = vmul.f32 %v4052_v41, %v4052_v41 }
 0x2c3   :  { %v1394_v38 = vmul.f32 0.03125, %v1323_v47  ;;  %v1488_v61 = vmul.f32 %v4059_v2, %v4059_v2 }
 0x2c4   :  { %v4066_v21 = vsub.f32 %v4526_v50, %v1397_v46  ;;  %v1613_v50 = vsel %vm1212_vm3, %v1491_v7, 0.0  ;;  %v4534_v7 = vmax.f32 %v3764_v14, 0.0 }
 0x2c5   :  { %v4073_v12 = vsub.f32 %v4528_v13, %v1394_v38  ;;  %1608 = vadd.xlane.f32.xlu1 %v1607_v27  ;;  %v1338_v40 = vpop.xlane.xlu1 %1337  ;;  %v1604_v3 = vsel %vm1212_vm3, %v1488_v61, 0.0  ;;  %v4532_v38 = vmax.f32 %v3743_v28, 0.0 }
 0x2c6   :  { %4527 = vst [vmem:[#allocation5_spill] sm:$0xff] %v4066_v21  ;;  %v1399_v35 = vmul.f32 0.03125, %v1338_v40  ;;  %v1329_v57 = vpop.xlane.xlu0 %1328  ;;  %1605 = vadd.xlane.f32.xlu0 %v1604_v3  ;;  %v1493_v48 = vmul.f32 %v4066_v21, %v4066_v21 }
 0x2c7   :  { %4529 = vst [vmem:[#allocation6_spill] sm:$0xff] %v4073_v12  ;;  %v1396_v47 = vmul.f32 0.03125, %v1329_v57  ;;  %v1490_v22 = vmul.f32 %v4073_v12, %v4073_v12 }
 0x2c8   :  { %v4080_v46 = vsub.f32 %v4530_v6, %v1399_v35  ;;  %v1619_v6 = vsel %vm1212_vm3, %v1493_v48, 0.0  ;;  %v4538_v48 = vmax.f32 %v3776_v0, 0.0 }
 0x2c9   :  { %v4087_v27 = vsub.f32 %v4532_v38, %v1396_v47  ;;  %1614 = vadd.xlane.f32.xlu1 %v1613_v50  ;;  %v1344_v61 = vpop.xlane.xlu1 %1343  ;;  %v1610_v13 = vsel %vm1212_vm3, %v1490_v22, 0.0  ;;  %v4536_v47 = vmax.f32 %v3755_v58, 0.0 }
 0x2ca   :  { %4531 = vst [vmem:[#allocation7_spill] sm:$0xff] %v4080_v46  ;;  %v1401_v40 = vmul.f32 0.03125, %v1344_v61  ;;  %v1335_v3 = vpop.xlane.xlu0 %1334  ;;  %1611 = vadd.xlane.f32.xlu0 %v1610_v13  ;;  %v1495_v28 = vmul.f32 %v4080_v46, %v4080_v46 }
 0x2cb   :  { %4533 = vst [vmem:[#allocation8_spill] sm:$0xff] %v4087_v27  ;;  %v1398_v57 = vmul.f32 0.03125, %v1335_v3  ;;  %v1492_v18 = vmul.f32 %v4087_v27, %v4087_v27 }
 0x2cc   :  { %v4094_v35 = vsub.f32 %v4534_v7, %v1401_v40  ;;  %v1625_v7 = vsel %vm1212_vm3, %v1495_v28, 0.0  ;;  %v4542_v28 = vmax.f32 %v3788_v56, 0.0 }
 0x2cd   :  { %v4101_v50 = vsub.f32 %v4536_v47, %v1398_v57  ;;  %1620 = vadd.xlane.f32.xlu1 %v1619_v6  ;;  %v1350_v22 = vpop.xlane.xlu1 %1349  ;;  %v1616_v38 = vsel %vm1212_vm3, %v1492_v18, 0.0  ;;  %v4540_v57 = vmax.f32 %v3767_v36, 0.0 }
 0x2ce   :  { %4535 = vst [vmem:[#allocation9_spill] sm:$0xff] %v4094_v35  ;;  %v1403_v61 = vmul.f32 0.03125, %v1350_v22  ;;  %v1341_v13 = vpop.xlane.xlu0 %1340  ;;  %1617 = vadd.xlane.f32.xlu0 %v1616_v38  ;;  %v1497_v58 = vmul.f32 %v4094_v35, %v4094_v35 }
 0x2cf   :  { %4537 = vst [vmem:[#allocation10_spill] sm:$0xff] %v4101_v50  ;;  %v1400_v3 = vmul.f32 0.03125, %v1341_v13  ;;  %v1494_v14 = vmul.f32 %v4101_v50, %v4101_v50 }
 0x2d0   :  { %v4108_v40 = vsub.f32 %v4538_v48, %v1403_v61  ;;  %v1631_v48 = vsel %vm1212_vm3, %v1497_v58, 0.0 }
 0x2d1   :  { %v4115_v6 = vsub.f32 %v4540_v57, %v1400_v3  ;;  %1626 = vadd.xlane.f32.xlu1 %v1625_v7  ;;  %v1356_v18 = vpop.xlane.xlu1 %1355  ;;  %v1622_v47 = vsel %vm1212_vm3, %v1494_v14, 0.0  ;;  %v4544_v3 = vmax.f32 %v3779_v15, 0.0 }
 0x2d2   :  { %4539 = vst [vmem:[#allocation11_spill] sm:$0xff] %v4108_v40  ;;  %v1405_v22 = vmul.f32 0.03125, %v1356_v18  ;;  %v1347_v38 = vpop.xlane.xlu0 %1346  ;;  %1623 = vadd.xlane.f32.xlu0 %v1622_v47  ;;  %v1499_v36 = vmul.f32 %v4108_v40, %v4108_v40 }
 0x2d3   :  { %4541 = vst [vmem:[#allocation12_spill] sm:$0xff] %v4115_v6  ;;  %v1402_v13 = vmul.f32 0.03125, %v1347_v38  ;;  %v1496_v0 = vmul.f32 %v4115_v6, %v4115_v6 }
 0x2d4   :  { %v4122_v61 = vsub.f32 %v4542_v28, %v1405_v22  ;;  %v1637_v47 = vsel %vm1212_vm3, %v1499_v36, 0.0  ;;  %v4546_v22 = vmax.f32 %v3791_v5, 0.0 }
 0x2d5   :  { %v4129_v7 = vsub.f32 %v4544_v3, %v1402_v13  ;;  %1632 = vadd.xlane.f32.xlu1 %v1631_v48  ;;  %v1628_v14 = vsel %vm1212_vm3, %v1496_v0, 0.0  ;;  %v1943_v48 = vld [vmem:[%s4434_s6 + $0x8] sm:$0xff] }
 0x2d6   :  { %4543 = vst [vmem:[#allocation13_spill] sm:$0xff] %v4122_v61  ;;  %v1353_v57 = vpop.xlane.xlu0 %1352  ;;  %1629 = vadd.xlane.f32.xlu0 %v1628_v14  ;;  %v1501_v58 = vmul.f32 %v4122_v61, %v4122_v61  ;;  %2024 = vmatprep.mubr.f32.mxu0 %v1943_v48 }
 0x2d7   :  { %4545 = vst [vmem:[#allocation14_spill] sm:$0xff] %v4129_v7  ;;  %v1404_v18 = vmul.f32 0.03125, %v1353_v57  ;;  %v1498_v56 = vmul.f32 %v4129_v7, %v4129_v7 }
 0x2d8   :  { %v1643_v0 = vsel %vm1212_vm3, %v1501_v58, 0.0 }
 0x2d9   :  { %v4139_v38 = vsub.f32 %v4546_v22, %v1404_v18  ;;  %1638 = vadd.xlane.f32.xlu1 %v1637_v47  ;;  %v1634_v15 = vsel %vm1212_vm3, %v1498_v56, 0.0 }
 0x2da   :  { %1635 = vadd.xlane.f32.xlu0 %v1634_v15 }
 0x2db   :  { %4547 = vst [vmem:[#allocation15_spill] sm:$0xff] %v4139_v38  ;;  %v1500_v13 = vmul.f32 %v4139_v38, %v4139_v38 }
 0x2dd   :  { %1644 = vadd.xlane.f32.xlu1 %v1643_v0  ;;  %v1640_v28 = vsel %vm1212_vm3, %v1500_v13, 0.0 }
 0x2de   :  { %1641 = vadd.xlane.f32.xlu0 %v1640_v28 }
 0x30a   :  { %v1507_v5 = vpop.xlane.xlu1 %1506 }
 0x30b   :  { %v1647_v14 = vmul.f32 0.03125, %v1507_v5 }
 0x30d   :  { %v1695_v47 = vadd.f32 1e-05, %v1647_v14 }
 0x30e   :  { %v1504_v36 = vpop.xlane.xlu0 %1503 }
 0x30f   :  { %v1646_v3 = vmul.f32 0.03125, %v1504_v36 }
 0x311   :  { %v1694_v56 = vadd.f32 1e-05, %v1646_v3 }
 0x312   :  { %v1510_v57 = vpop.xlane.xlu0 %1509  ;;  %v1513_v18 = vpop.xlane.xlu1 %1512 }
 0x313   :  { %2841 = vrsqrt.f32 %v1694_v56  ;;  %v1648_v58 = vmul.f32 0.03125, %v1510_v57  ;;  %v1649_v28 = vmul.f32 0.03125, %v1513_v18  ;;  %v1840_v56 = vsub.s32 1, %v3054_v16 }
 0x314   :  { %2843 = vrsqrt.f32 %v1695_v47 }
 0x315   :  { %v1696_v61 = vadd.f32 1e-05, %v1648_v58  ;;  %v1697_v6 = vadd.f32 1e-05, %v1649_v28  ;;  %v1892_v58 = vsub.s32 2, %v3054_v16 }
 0x316   :  { %v1516_v22 = vpop.xlane.xlu0 %1515  ;;  %v1519_v15 = vpop.xlane.xlu1 %1518 }
 0x317   :  { %v1650_v38 = vmul.f32 0.03125, %v1516_v22  ;;  %v1651_v7 = vmul.f32 0.03125, %v1519_v15  ;;  %2845 = vrsqrt.f32 %v1696_v61  ;;  %v2937_v61 = vld [vmem:[%s4432_s4] sm:$0x7] }
 0x318   :  { %2847 = vrsqrt.f32 %v1697_v6 }
 0x319   :  { %v1698_v35 = vadd.f32 1e-05, %v1650_v38  ;;  %v1699_v3 = vadd.f32 1e-05, %v1651_v7  ;;  %v4155_v7 = vrot.slane %v2937_v61, %v1840_v56 }
 0x31a   :  { %v1522_v13 = vpop.xlane.xlu0 %1521  ;;  %v1525_v0 = vpop.xlane.xlu1 %1524 }
 0x31b   :  { %v1652_v36 = vmul.f32 0.03125, %v1522_v13  ;;  %v1653_v5 = vmul.f32 0.03125, %v1525_v0  ;;  %2849 = vrsqrt.f32 %v1698_v35 }
 0x31c   :  { %2851 = vrsqrt.f32 %v1699_v3 }
 0x31d   :  { %v2842_v50 = vpop.eup %2841  ;;  %v1700_v57 = vadd.f32 1e-05, %v1652_v36  ;;  %v1701_v18 = vadd.f32 1e-05, %v1653_v5  ;;  %v4159_v36 = vrot.slane %v2937_v61, %v1892_v58 }
 0x31e   :  { %v1528_v48 = vpop.xlane.xlu0 %1527  ;;  %v1531_v40 = vpop.xlane.xlu1 %1530  ;;  %v1790_v22 = vmul.f32 %v2842_v50, %v3818_v59 }
 0x31f   :  { %v2844_v47 = vpop.eup %2843  ;;  %v1654_v15 = vmul.f32 0.03125, %v1528_v48  ;;  %2853 = vrsqrt.f32 %v1700_v57  ;;  %v1655_v0 = vmul.f32 0.03125, %v1531_v40 }
 0x320   :  { %v1791_v6 = vmul.f32 %v2844_v47, %v3812_v8  ;;  %2855 = vrsqrt.f32 %v1701_v18  ;;  %v1842_v35 = vmul.f32 %v4155_v7, %v1790_v22 }
 0x321   :  { %v1702_v28 = vadd.f32 1e-05, %v1654_v15  ;;  %v1703_v5 = vadd.f32 1e-05, %v1655_v0  ;;  %v2846_v27 = vpop.eup %2845 }
 0x322   :  { %v1534_v14 = vpop.xlane.xlu0 %1533  ;;  %v1537_v46 = vpop.xlane.xlu1 %1536  ;;  %v1843_v3 = vmul.f32 %v4155_v7, %v1791_v6  ;;  %v4163_v8 = vadd.f32 %v4159_v36, %v1842_v35  ;;  %v1792_v58 = vmul.f32 %v2846_v27, %v3823_v37 }
 0x323   :  { %v1656_v59 = vmul.f32 0.03125, %v1534_v14  ;;  %v1657_v50 = vmul.f32 0.03125, %v1537_v46  ;;  %v2848_v56 = vpop.eup %2847  ;;  %2857 = vrsqrt.f32 %v1702_v28 }
 0x324   :  { %2859 = vrsqrt.f32 %v1703_v5  ;;  %v4166_v22 = vadd.f32 %v4159_v36, %v1843_v3  ;;  %v1793_v61 = vmul.f32 %v2848_v56, %v3829_v55 }
 0x325   :  { %v1704_v21 = vadd.f32 1e-05, %v1656_v59  ;;  %v1705_v40 = vadd.f32 1e-05, %v1657_v50  ;;  %v2850_v47 = vpop.eup %2849 }
 0x326   :  { %v1540_v13 = vpop.xlane.xlu0 %1539  ;;  %v1543_v38 = vpop.xlane.xlu1 %1542  ;;  %v1794_v3 = vmul.f32 %v2850_v47, %v3836_v39  ;;  %v1845_v56 = vmul.f32 %v4155_v7, %v1793_v61 }
 0x327   :  { %v1658_v57 = vmul.f32 0.03125, %v1540_v13  ;;  %v2852_v15 = vpop.eup %2851  ;;  %2861 = vrsqrt.f32 %v1704_v21  ;;  %v2722_v13 = vpack.c.bf16 %v4166_v22, %v4163_v8  ;;  %v1659_v50 = vmul.f32 0.03125, %v1543_v38 }
 0x328   :  { %2863 = vrsqrt.f32 %v1705_v40  ;;  %v1795_v12 = vmul.f32 %v2852_v15, %v3842_v30  ;;  %v1844_v21 = vmul.f32 %v4155_v7, %v1792_v58 }
 0x329   :  { %v2854_v0 = vpop.eup %2853  ;;  %v1706_v35 = vadd.f32 1e-05, %v1658_v57 }
 0x32a   :  { %v1546_v16 = vpop.xlane.xlu0 %1545  ;;  %v1549_v48 = vpop.xlane.xlu1 %1548  ;;  %v1847_v58 = vmul.f32 %v4155_v7, %v1795_v12 }
 0x32b   :  { %v2856_v59 = vpop.eup %2855  ;;  %v1660_v38 = vmul.f32 0.03125, %v1546_v16  ;;  %v1661_v39 = vmul.f32 0.03125, %v1549_v48 }
 0x32c   :  { %v1797_v40 = vmul.f32 %v2856_v59, %v3856_v17  ;;  %v4184_v17 = vadd.f32 %v4159_v36, %v1845_v56  ;;  %v4193_v56 = vadd.f32 %v4159_v36, %v1847_v58 }
 0x32d   :  { %v2858_v15 = vpop.eup %2857  ;;  %v1708_v48 = vadd.f32 1e-05, %v1660_v38 }
 0x32e   :  { %v1555_v14 = vpop.xlane.xlu1 %1554  ;;  %v2860_v16 = vpop.eup %2859 }
 0x32f   :  { %v1663_v46 = vmul.f32 0.03125, %v1555_v14  ;;  %v1552_v18 = vpop.xlane.xlu0 %1551 }
 0x330   :  { %v1662_v6 = vmul.f32 0.03125, %v1552_v18  ;;  %v1707_v18 = vadd.f32 1e-05, %v1659_v50  ;;  %v1798_v50 = vmul.f32 %v2858_v15, %v3864_v60 }
 0x331   :  { %v1711_v28 = vadd.f32 1e-05, %v1663_v46  ;;  %v1796_v46 = vmul.f32 %v2854_v0, %v3850_v49  ;;  %v4181_v49 = vadd.f32 %v4159_v36, %v1844_v21 }
 0x332   :  { %v1710_v5 = vadd.f32 1e-05, %v1662_v6  ;;  %v1561_v14 = vpop.xlane.xlu1 %1560 }
 0x333   :  { %2865 = vrsqrt.f32 %v1711_v28  ;;  %v1665_v37 = vmul.f32 0.03125, %v1561_v14  ;;  %v1558_v55 = vpop.xlane.xlu0 %1557  ;;  %v1848_v59 = vmul.f32 %v4155_v7, %v1796_v46  ;;  %v1709_v14 = vadd.f32 1e-05, %v1661_v39 }
 0x334   :  { %2867 = vrsqrt.f32 %v1710_v5  ;;  %v1664_v27 = vmul.f32 0.03125, %v1558_v55  ;;  %v1846_v5 = vmul.f32 %v4155_v7, %v1794_v3  ;;  %v1799_v46 = vmul.f32 %v2860_v16, %v3870_v42 }
 0x335   :  { %v1713_v57 = vadd.f32 1e-05, %v1665_v37  ;;  %2869 = vrsqrt.f32 %v1706_v35  ;;  %v1849_v35 = vmul.f32 %v4155_v7, %v1797_v40  ;;  %v2862_v37 = vpop.eup %2861  ;;  %v2726_v60 = vpack.c.bf16 %v4184_v17, %v4181_v49 }
 0x336   :  { %v1712_v47 = vadd.f32 1e-05, %v1664_v27  ;;  %v1567_v30 = vpop.xlane.xlu1 %1566  ;;  %v4190_v21 = vadd.f32 %v4159_v36, %v1846_v5  ;;  %v2864_v38 = vpop.eup %2863  ;;  %v4199_v39 = vadd.f32 %v4159_v36, %v1848_v59 }
 0x337   :  { %2871 = vrsqrt.f32 %v1713_v57  ;;  %v1667_v6 = vmul.f32 0.03125, %v1567_v30  ;;  %v1564_v28 = vpop.xlane.xlu0 %1563 }
 0x338   :  { %2873 = vrsqrt.f32 %v1712_v47  ;;  %v1666_v61 = vmul.f32 0.03125, %v1564_v28  ;;  %v4202_v47 = vadd.f32 %v4159_v36, %v1849_v35  ;;  %v1850_v28 = vmul.f32 %v4155_v7, %v1798_v50 }
 0x339   :  { %v1715_v0 = vadd.f32 1e-05, %v1667_v6  ;;  %2875 = vrsqrt.f32 %v1707_v18  ;;  %v2730_v16 = vpack.c.bf16 %v4193_v56, %v4190_v21  ;;  %v1851_v35 = vmul.f32 %v4155_v7, %v1799_v46 }
 0x33a   :  { %v1714_v12 = vadd.f32 1e-05, %v1666_v61  ;;  %v1573_v3 = vpop.xlane.xlu1 %1572 }
 0x33b   :  { %2877 = vrsqrt.f32 %v1715_v0  ;;  %v1669_v55 = vmul.f32 0.03125, %v1573_v3  ;;  %v1570_v27 = vpop.xlane.xlu0 %1569  ;;  %v2734_v3 = vpack.c.bf16 %v4202_v47, %v4199_v39 }
 0x33c   :  { %2879 = vrsqrt.f32 %v1714_v12  ;;  %v1668_v40 = vmul.f32 0.03125, %v1570_v27 }
 0x33d   :  { %v2866_v57 = vpop.eup %2865  ;;  %2881 = vrsqrt.f32 %v1708_v48  ;;  %v1717_v18 = vadd.f32 1e-05, %v1669_v55 }
 0x33e   :  { %v2868_v30 = vpop.eup %2867  ;;  %2883 = vrsqrt.f32 %v1709_v14  ;;  %v1716_v15 = vadd.f32 1e-05, %v1668_v40  ;;  %v1579_v6 = vpop.xlane.xlu1 %1578  ;;  %v1807_v42 = vmul.f32 %v2866_v57, %v3920_v63  ;;  %v1800_v63 = vmul.f32 %v2862_v37, %v3878_v19 }
 0x33f   :  { %2885 = vrsqrt.f32 %v1717_v18  ;;  %v1671_v5 = vmul.f32 0.03125, %v1579_v6  ;;  %v1576_v58 = vpop.xlane.xlu0 %1575  ;;  %v1806_v61 = vmul.f32 %v2868_v30, %v3934_v9  ;;  %v2870_v48 = vpop.eup %2869  ;;  %v4218_v18 = vadd.f32 %v4159_v36, %v1850_v28 }
 0x340   :  { %2887 = vrsqrt.f32 %v1716_v15  ;;  %v1670_v0 = vmul.f32 0.03125, %v1576_v58  ;;  %v1859_v59 = vmul.f32 %v4155_v7, %v1807_v42 }
 0x341   :  { %v2872_v14 = vpop.eup %2871  ;;  %v1719_v12 = vadd.f32 1e-05, %v1671_v5  ;;  %v1858_v50 = vmul.f32 %v4155_v7, %v1806_v61  ;;  %v4224_v5 = vadd.f32 %v4159_v36, %v1851_v35 }
 0x342   :  { %v2874_v9 = vpop.eup %2873  ;;  %v1718_v55 = vadd.f32 1e-05, %v1670_v0  ;;  %v1585_v27 = vpop.xlane.xlu1 %1584  ;;  %v1911_v40 = vadd.f32 %v4159_v36, %v1859_v59  ;;  %v1809_v57 = vmul.f32 %v2872_v14, %v3926_v33  ;;  %v1801_v33 = vmul.f32 %v2864_v38, %v3884_v29 }
 0x343   :  { %2889 = vrsqrt.f32 %v1719_v12  ;;  %v1673_v46 = vmul.f32 0.03125, %v1585_v27  ;;  %v1582_v30 = vpop.xlane.xlu0 %1581  ;;  %v1910_v19 = vadd.f32 %v4159_v36, %v1858_v50  ;;  %v1808_v37 = vmul.f32 %v2874_v9, %v3947_v31  ;;  %v2876_v15 = vpop.eup %2875 }
 0x344   :  { %2891 = vrsqrt.f32 %v1718_v55  ;;  %v1672_v6 = vmul.f32 0.03125, %v1582_v30  ;;  %v1861_v42 = vmul.f32 %v4155_v7, %v1809_v57  ;;  %v1852_v9 = vmul.f32 %v4155_v7, %v1800_v63 }
 0x345   :  { %v2878_v58 = vpop.eup %2877  ;;  %v1721_v28 = vadd.f32 1e-05, %v1673_v46  ;;  %v2720_v61 = vpack.c.bf16 %v1911_v40, %v1910_v19  ;;  %v1860_v0 = vmul.f32 %v4155_v7, %v1808_v37  ;;  %v2738_v63 = vpack.c.bf16 %v4224_v5, %v4218_v18 }
 0x346   :  { %v2880_v59 = vpop.eup %2879  ;;  %v1720_v14 = vadd.f32 1e-05, %v1672_v6  ;;  %v1591_v12 = vpop.xlane.xlu1 %1590  ;;  %v1913_v31 = vadd.f32 %v4159_v36, %v1861_v42  ;;  %v1811_v50 = vmul.f32 %v2878_v58, %v3940_v62  ;;  %v1802_v42 = vmul.f32 %v2870_v48, %v3892_v43 }
 0x347   :  { %v4231_v55 = vpop.eup %2881  ;;  %2893 = vrsqrt.f32 %v1721_v28  ;;  %v1675_v35 = vmul.f32 0.03125, %v1591_v12  ;;  %v1588_v27 = vpop.xlane.xlu0 %1587  ;;  %2721 = vmatprep.subr.bf16.mxu0 %v2720_v61  ;;  %v1912_v29 = vadd.f32 %v4159_v36, %v1860_v0  ;;  %v1810_v38 = vmul.f32 %v2880_v59, %v3961_v45 }
 0x348   :  { %v4235_v40 = vpop.eup %2883  ;;  %2895 = vrsqrt.f32 %v1720_v14  ;;  %v1674_v57 = vmul.f32 0.03125, %v1588_v27  ;;  %2723 = vmatpush3.bf16.msra.mxu0 %v2722_v13  ;;  %v1863_v62 = vmul.f32 %v4155_v7, %v1811_v50  ;;  %v1853_v45 = vmul.f32 %v4155_v7, %v1801_v33 }
 0x349   :  { %v2886_v46 = vpop.eup %2885  ;;  %v1723_v30 = vadd.f32 1e-05, %v1675_v35  ;;  %v2724_v19 = vpack.c.bf16 %v1913_v31, %v1912_v29  ;;  %v1862_v37 = vmul.f32 %v4155_v7, %v1810_v38  ;;  %v4255_v48 = vadd.f32 %v4159_v36, %v1852_v9 }
 0x34a   :  { %v2888_v6 = vpop.eup %2887  ;;  %v1722_v58 = vadd.f32 1e-05, %v1674_v57  ;;  %v1597_v28 = vpop.xlane.xlu1 %1596  ;;  %v1915_v8 = vadd.f32 %v4159_v36, %v1863_v62  ;;  %v1813_v22 = vmul.f32 %v2886_v46, %v3954_v26  ;;  %v4259_v50 = vadd.f32 %v4159_v36, %v1853_v45 }
 0x34b   :  { %2897 = vrsqrt.f32 %v1723_v30  ;;  %v1677_v13 = vmul.f32 0.03125, %v1597_v28  ;;  %v1594_v61 = vpop.xlane.xlu0 %1593  ;;  %2725 = vmatprep.subr.bf16.mxu0 %v2724_v19  ;;  %v1914_v0 = vadd.f32 %v4159_v36, %v1862_v37  ;;  %v1812_v59 = vmul.f32 %v2888_v6, %v3975_v54 }
 0x34c   :  { %2899 = vrsqrt.f32 %v1722_v58  ;;  %v1676_v14 = vmul.f32 0.03125, %v1594_v61  ;;  %2727 = vmatpush3.bf16.msra.mxu0 %v2726_v60  ;;  %v1865_v43 = vmul.f32 %v4155_v7, %v1813_v22  ;;  %v1803_v35 = vmul.f32 %v2876_v15, %v3898_v44 }
 0x34d   :  { %v2890_v26 = vpop.eup %2889  ;;  %v1725_v33 = vadd.f32 1e-05, %v1677_v13  ;;  %v2728_v12 = vpack.c.bf16 %v1915_v8, %v1914_v0  ;;  %v1864_v31 = vmul.f32 %v4155_v7, %v1812_v59  ;;  %v1854_v15 = vmul.f32 %v4155_v7, %v1802_v42 }
 0x34e   :  { %v2892_v54 = vpop.eup %2891  ;;  %v1724_v27 = vadd.f32 1e-05, %v1676_v14  ;;  %v1603_v29 = vpop.xlane.xlu1 %1602  ;;  %v1917_v49 = vadd.f32 %v4159_v36, %v1865_v43  ;;  %v1815_v17 = vmul.f32 %v2890_v26, %v3968_v52  ;;  %v2742_v37 = vpack.c.bf16 %v4259_v50, %v4255_v48 }
 0x34f   :  { %2901 = vrsqrt.f32 %v1725_v33  ;;  %v1679_v60 = vmul.f32 0.03125, %v1603_v29  ;;  %v1600_v9 = vpop.xlane.xlu0 %1599  ;;  %2729 = vmatprep.subr.bf16.mxu0 %v2728_v12  ;;  %v1916_v38 = vadd.f32 %v4159_v36, %v1864_v31  ;;  %v1814_v57 = vmul.f32 %v2892_v54, %v3989_v1 }
 0x350   :  { %2903 = vrsqrt.f32 %v1724_v27  ;;  %v1678_v62 = vmul.f32 0.03125, %v1600_v9  ;;  %2731 = vmatpush3.bf16.msra.mxu0 %v2730_v16  ;;  %v1867_v44 = vmul.f32 %v4155_v7, %v1815_v17  ;;  %v1855_v56 = vmul.f32 %v4155_v7, %v1803_v35 }
 0x351   :  { %v2894_v46 = vpop.eup %2893  ;;  %v1727_v52 = vadd.f32 1e-05, %v1679_v60  ;;  %v2732_v30 = vpack.c.bf16 %v1917_v49, %v1916_v38  ;;  %v1866_v19 = vmul.f32 %v4155_v7, %v1814_v57  ;;  %v1804_v22 = vmul.f32 %v4231_v55, %v3906_v53 }
 0x352   :  { %v2896_v45 = vpop.eup %2895  ;;  %v1726_v1 = vadd.f32 1e-05, %v1678_v62  ;;  %v1609_v6 = vpop.xlane.xlu1 %1608  ;;  %v1919_v58 = vadd.f32 %v4159_v36, %v1867_v44  ;;  %v1817_v21 = vmul.f32 %v2894_v46, %v3982_v20  ;;  %v1906_v43 = vadd.f32 %v4159_v36, %v1854_v15 }
 0x353   :  { %2905 = vrsqrt.f32 %v1727_v52  ;;  %v1681_v16 = vmul.f32 0.03125, %v1609_v6  ;;  %v1606_v42 = vpop.xlane.xlu0 %1605  ;;  %2733 = vmatprep.subr.bf16.mxu0 %v2732_v30  ;;  %v1918_v28 = vadd.f32 %v4159_v36, %v1866_v19  ;;  %v1816_v8 = vmul.f32 %v2896_v45, %v4003_v10 }
 0x354   :  { %2907 = vrsqrt.f32 %v1726_v1  ;;  %v1680_v13 = vmul.f32 0.03125, %v1606_v42  ;;  %2735 = vmatpush3.bf16.msra.mxu0 %v2734_v3  ;;  %v1869_v20 = vmul.f32 %v4155_v7, %v1817_v21  ;;  %v1805_v10 = vmul.f32 %v4235_v40, %v3912_v34 }
 0x355   :  { %v2898_v61 = vpop.eup %2897  ;;  %v1729_v0 = vadd.f32 1e-05, %v1681_v16  ;;  %v2736_v59 = vpack.c.bf16 %v1919_v58, %v1918_v28  ;;  %v1868_v14 = vmul.f32 %v4155_v7, %v1816_v8  ;;  %v1907_v40 = vadd.f32 %v4159_v36, %v1855_v56 }
 0x356   :  { %v2900_v48 = vpop.eup %2899  ;;  %v1728_v53 = vadd.f32 1e-05, %v1680_v13  ;;  %v1615_v55 = vpop.xlane.xlu1 %1614  ;;  %v1921_v26 = vadd.f32 %v4159_v36, %v1869_v20  ;;  %v1819_v39 = vmul.f32 %v2898_v61, %v3996_v24  ;;  %v1856_v27 = vmul.f32 %v4155_v7, %v1804_v22 }
 0x357   :  { %2909 = vrsqrt.f32 %v1729_v0  ;;  %v1683_v47 = vmul.f32 0.03125, %v1615_v55  ;;  %v1612_v3 = vpop.xlane.xlu0 %1611  ;;  %2737 = vmatprep.subr.bf16.mxu0 %v2736_v59  ;;  %v1920_v33 = vadd.f32 %v4159_v36, %v1868_v14  ;;  %v1818_v12 = vmul.f32 %v2900_v48, %v4017_v23 }
 0x358   :  { %2911 = vrsqrt.f32 %v1728_v53  ;;  %v1682_v31 = vmul.f32 0.03125, %v1612_v3  ;;  %2739 = vmatpush3.bf16.msra.mxu0 %v2738_v63  ;;  %v1871_v34 = vmul.f32 %v4155_v7, %v1819_v39  ;;  %v1857_v18 = vmul.f32 %v4155_v7, %v1805_v10 }
 0x359   :  { %v2902_v50 = vpop.eup %2901  ;;  %v1731_v24 = vadd.f32 1e-05, %v1683_v47  ;;  %v2740_v54 = vpack.c.bf16 %v1921_v26, %v1920_v33  ;;  %v1870_v35 = vmul.f32 %v4155_v7, %v1818_v12  ;;  %v2746_v62 = vpack.c.bf16 %v1907_v40, %v1906_v43  ;;  %v1942_v26 = vld [vmem:[%s4434_s6] sm:$0xff] }
 0x35a   :  { %v2904_v29 = vpop.eup %2903  ;;  %v1730_v49 = vadd.f32 1e-05, %v1682_v31  ;;  %v1621_v23 = vpop.xlane.xlu1 %1620  ;;  %v1923_v17 = vadd.f32 %v4159_v36, %v1871_v34  ;;  %v1821_v60 = vmul.f32 %v2902_v50, %v4010_v4  ;;  %v1908_v30 = vadd.f32 %v4159_v36, %v1856_v27  ;;  %v1946_v12 = vld [vmem:[%s4434_s6 + $0x20] sm:$0xff]  ;;  %v4548_v27 = vld [vmem:[#allocation6_spill] sm:$0xff] }
 0x35b   :  { %2913 = vrsqrt.f32 %v1731_v24  ;;  %v1685_v5 = vmul.f32 0.03125, %v1621_v23  ;;  %v1618_v63 = vpop.xlane.xlu0 %1617  ;;  %2741 = vmatprep.subr.bf16.mxu0 %v2740_v54  ;;  %v1922_v9 = vadd.f32 %v4159_v36, %v1870_v35  ;;  %v1820_v38 = vmul.f32 %v2904_v29, %v4031_v32 }
 0x35c   :  { %2915 = vrsqrt.f32 %v1730_v49  ;;  %v1684_v57 = vmul.f32 0.03125, %v1618_v63  ;;  %2743 = vmatpush3.bf16.msra.mxu0 %v2742_v37  ;;  %v1873_v44 = vmul.f32 %v4155_v7, %v1821_v60  ;;  %v1909_v32 = vadd.f32 %v4159_v36, %v1857_v18  ;;  %v1949_v63 = vld [vmem:[%s4434_s6 + $0x38] sm:$0xff] }
 0x35d   :  { %v2906_v15 = vpop.eup %2905  ;;  %v1733_v46 = vadd.f32 1e-05, %v1685_v5  ;;  %v2744_v52 = vpack.c.bf16 %v1923_v17, %v1922_v9  ;;  %v1872_v4 = vmul.f32 %v4155_v7, %v1820_v38  ;;  %v1945_v17 = vld [vmem:[%s4434_s6 + $0x18] sm:$0xff] }
 0x35e   :  { %v2908_v19 = vpop.eup %2907  ;;  %v1732_v45 = vadd.f32 1e-05, %v1684_v57  ;;  %v1627_v1 = vpop.xlane.xlu1 %1626  ;;  %v1925_v6 = vadd.f32 %v4159_v36, %v1873_v44  ;;  %v1823_v58 = vmul.f32 %v2906_v15, %v4024_v25  ;;  %v2750_v59 = vpack.c.bf16 %v1909_v32, %v1908_v30  ;;  %v4549_v44 = vld [vmem:[#allocation5_spill] sm:$0xff]  ;;  %v4550_v30 = vld [vmem:[#allocation8_spill] sm:$0xff] }
 0x35f   :  { %2917 = vrsqrt.f32 %v1733_v46  ;;  %v1687_v37 = vmul.f32 0.03125, %v1627_v1  ;;  %v1624_v21 = vpop.xlane.xlu0 %1623  ;;  %2745 = vmatprep.subr.bf16.mxu0 %v2744_v52  ;;  %v1924_v56 = vadd.f32 %v4159_v36, %v1872_v4  ;;  %v1822_v16 = vmul.f32 %v2908_v19, %v4045_v11 }
 0x360   :  { %2919 = vrsqrt.f32 %v1732_v45  ;;  %v1686_v42 = vmul.f32 0.03125, %v1624_v21  ;;  %2747 = vmatpush3.bf16.msra.mxu0 %v2746_v62  ;;  %v1875_v28 = vmul.f32 %v4155_v7, %v1823_v58 }
 0x361   :  { %v2910_v8 = vpop.eup %2909  ;;  %v1735_v22 = vadd.f32 1e-05, %v1687_v37  ;;  %v2748_v13 = vpack.c.bf16 %v1925_v6, %v1924_v56  ;;  %v1874_v20 = vmul.f32 %v4155_v7, %v1822_v16  ;;  %v1948_v6 = vld [vmem:[%s4434_s6 + $0x30] sm:$0xff] }
 0x362   :  { %v2912_v61 = vpop.eup %2911  ;;  %v1734_v25 = vadd.f32 1e-05, %v1686_v42  ;;  %v1633_v0 = vpop.xlane.xlu1 %1632  ;;  %v1927_v14 = vadd.f32 %v4159_v36, %v1875_v28  ;;  %v1825_v43 = vmul.f32 %v2910_v8, %v4038_v51  ;;  %v1952_v56 = vld [vmem:[%s4434_s6 + $0x50] sm:$0xff]  ;;  %v4551_v8 = vld [vmem:[#allocation7_spill] sm:$0xff] }
 0x363   :  { %2921 = vrsqrt.f32 %v1735_v22  ;;  %v1689_v11 = vmul.f32 0.03125, %v1633_v0  ;;  %v1630_v48 = vpop.xlane.xlu0 %1629  ;;  %2749 = vmatprep.subr.bf16.mxu0 %v2748_v13  ;;  %v1926_v10 = vadd.f32 %v4159_v36, %v1874_v20  ;;  %v1824_v53 = vmul.f32 %v2912_v61, %v4059_v2  ;;  %v4552_v20 = vld [vmem:[#allocation10_spill] sm:$0xff]  ;;  %v1951_v0 = vld [vmem:[%s4434_s6 + $0x48] sm:$0xff] }
 0x364   :  { %2923 = vrsqrt.f32 %v1734_v25  ;;  %v1688_v55 = vmul.f32 0.03125, %v1630_v48  ;;  %2751 = vmatpush3.bf16.msra.mxu0 %v2750_v59  ;;  %v1877_v39 = vmul.f32 %v4155_v7, %v1825_v43 }
 0x365   :  { %v2914_v47 = vpop.eup %2913  ;;  %v1737_v3 = vadd.f32 1e-05, %v1689_v11  ;;  %v2752_v51 = vpack.c.bf16 %v1927_v14, %v1926_v10  ;;  %v1876_v33 = vmul.f32 %v4155_v7, %v1824_v53  ;;  %v1955_v11 = vld [vmem:[%s4434_s6 + $0x68] sm:$0xff]  ;;  %v4553_v53 = vld [vmem:[#allocation9_spill] sm:$0xff] }
 0x366   :  { %v2916_v31 = vpop.eup %2915  ;;  %v1736_v2 = vadd.f32 1e-05, %v1688_v55  ;;  %v1639_v34 = vpop.xlane.xlu1 %1638  ;;  %v1929_v40 = vadd.f32 %v4159_v36, %v1877_v39  ;;  %v1827_v50 = vmul.f32 %v2914_v47, %v4052_v41  ;;  %v4554_v39 = vld [vmem:[#allocation12_spill] sm:$0xff] }
 0x367   :  { %2925 = vrsqrt.f32 %v1737_v3  ;;  %v1691_v24 = vmul.f32 0.03125, %v1639_v34  ;;  %v1636_v54 = vpop.xlane.xlu0 %1635  ;;  %2753 = vmatprep.subr.bf16.mxu0 %v2752_v51  ;;  %2025 = vmatmul.mubr.f32.vlgmr.msra.gmra.mrb[40].mxu0 %v1942_v26  ;;  %v1928_v35 = vadd.f32 %v4159_v36, %v1876_v33  ;;  %v1826_v29 = vmul.f32 %v2916_v31, %v4548_v27 }
 0x368   :  { %2927 = vrsqrt.f32 %v1736_v2  ;;  %v1690_v49 = vmul.f32 0.03125, %v1636_v54  ;;  %2755 = vmatpush3.bf16.msra.mxu0 %v2752_v51  ;;  %v1879_v23 = vmul.f32 %v4155_v7, %v1827_v50  ;;  %2029 = vmatprep.mubr.f32.mxu0 %v1946_v12  ;;  %v1954_v51 = vld [vmem:[%s4434_s6 + $0x60] sm:$0xff] }
 0x369   :  { %v2918_v41 = vpop.eup %2917  ;;  %v1739_v60 = vadd.f32 1e-05, %v1691_v24  ;;  %v2756_v18 = vpack.c.bf16 %v1929_v40, %v1928_v35  ;;  %v1878_v5 = vmul.f32 %v4155_v7, %v1826_v29  ;;  %v1958_v2 = vld [vmem:[%s4434_s6 + $0x80] sm:$0xff]  ;;  %v4556_v35 = vld [vmem:[#allocation14_spill] sm:$0xff] }
 0x36a   :  { %v2920_v9 = vpop.eup %2919  ;;  %v1738_v38 = vadd.f32 1e-05, %v1690_v49  ;;  %v1645_v57 = vpop.xlane.xlu1 %1644  ;;  %v1931_v62 = vadd.f32 %v4159_v36, %v1879_v23  ;;  %v1829_v15 = vmul.f32 %v2918_v41, %v4549_v44  ;;  %v4555_v50 = vld [vmem:[#allocation11_spill] sm:$0xff]  ;;  %v1957_v49 = vld [vmem:[%s4434_s6 + $0x78] sm:$0xff] }
 0x36b   :  { %2929 = vrsqrt.f32 %v1739_v60  ;;  %v1693_v46 = vmul.f32 0.03125, %v1645_v57  ;;  %v1642_v52 = vpop.xlane.xlu0 %1641  ;;  %2757 = vmatprep.subr.bf16.mxu0 %v2756_v18  ;;  %v1930_v4 = vadd.f32 %v4159_v36, %v1878_v5  ;;  %v1828_v19 = vmul.f32 %v2920_v9, %v4550_v30  ;;  %2030 = vmatmul.mubr.f32.gmra.mrb[42].mxu0 %v1945_v17  ;;  %v1944_v60 = vld [vmem:[%s4434_s6 + $0x10] sm:$0xff]  ;;  %v4558_v57 = vld [vmem:[#allocation15_spill] sm:$0xff] }
 0x36c   :  { %2931 = vrsqrt.f32 %v1738_v38  ;;  %v1692_v45 = vmul.f32 0.03125, %v1642_v52  ;;  %2759 = vmatpush3.bf16.msra.mxu0 %v2756_v18  ;;  %v1881_v1 = vmul.f32 %v4155_v7, %v1829_v15  ;;  %2034 = vmatprep.mubr.f32.mxu0 %v1949_v63  ;;  %v4557_v63 = vld [vmem:[#allocation13_spill] sm:$0xff] }
 0x36d   :  { %v2922_v32 = vpop.eup %2921  ;;  %v1741_v58 = vadd.f32 1e-05, %v1693_v46  ;;  %v2760_v37 = vpack.c.bf16 %v1931_v62, %v1930_v4  ;;  %v1880_v21 = vmul.f32 %v4155_v7, %v1828_v19  ;;  %v1947_v19 = vld [vmem:[%s4434_s6 + $0x28] sm:$0xff] }
 0x36e   :  { %v2924_v16 = vpop.eup %2923  ;;  %v1740_v42 = vadd.f32 1e-05, %v1692_v45  ;;  %v1933_v28 = vadd.f32 %v4159_v36, %v1881_v1  ;;  %v1831_v22 = vmul.f32 %v2922_v32, %v4551_v8  ;;  %v1950_v45 = vld [vmem:[%s4434_s6 + $0x40] sm:$0xff]  ;;  %v1959_v1 = vld [vmem:[%s4434_s6 + $0x88] sm:$0xff] }
 0x36f   :  { %2933 = vrsqrt.f32 %v1741_v58  ;;  %2761 = vmatprep.subr.bf16.mxu0 %v2760_v37  ;;  %v1932_v13 = vadd.f32 %v4159_v36, %v1880_v21  ;;  %v1830_v61 = vmul.f32 %v2924_v16, %v4552_v20  ;;  %2035 = vmatmul.mubr.f32.gmra.mrb[44].mxu0 %v1948_v6 }
 0x370   :  { %2935 = vrsqrt.f32 %v1740_v42  ;;  %2763 = vmatpush3.bf16.msra.mxu0 %v2760_v37  ;;  %v1883_v25 = vmul.f32 %v4155_v7, %v1831_v22  ;;  %2039 = vmatprep.mubr.f32.mxu0 %v1952_v56 }
 0x371   :  { %v2926_v59 = vpop.eup %2925  ;;  %v2764_v14 = vpack.c.bf16 %v1933_v28, %v1932_v13  ;;  %v1882_v43 = vmul.f32 %v4155_v7, %v1830_v61 }
 0x372   :  { %v2928_v48 = vpop.eup %2927  ;;  %v1935_v10 = vadd.f32 %v4159_v36, %v1883_v25  ;;  %v1833_v55 = vmul.f32 %v2926_v59, %v4553_v53 }
 0x373   :  { %2765 = vmatprep.subr.bf16.mxu0 %v2764_v14  ;;  %v1934_v26 = vadd.f32 %v4159_v36, %v1882_v43  ;;  %v1832_v47 = vmul.f32 %v2928_v48, %v4554_v39  ;;  %2040 = vmatmul.mubr.f32.gmra.mrb[46].mxu0 %v1951_v0 }
 0x374   :  { %2767 = vmatpush3.bf16.msra.mxu0 %v2764_v14  ;;  %v1885_v3 = vmul.f32 %v4155_v7, %v1833_v55  ;;  %2044 = vmatprep.mubr.f32.mxu0 %v1955_v11 }
 0x375   :  { %v2930_v33 = vpop.eup %2929  ;;  %v2768_v12 = vpack.c.bf16 %v1935_v10, %v1934_v26  ;;  %v1884_v31 = vmul.f32 %v4155_v7, %v1832_v47 }
 0x376   :  { %v2932_v34 = vpop.eup %2931  ;;  %v1937_v40 = vadd.f32 %v4159_v36, %v1885_v3  ;;  %v1835_v24 = vmul.f32 %v2930_v33, %v4555_v50 }
 0x377   :  { %2769 = vmatprep.subr.bf16.mxu0 %v2768_v12  ;;  %v1936_v54 = vadd.f32 %v4159_v36, %v1884_v31  ;;  %v1834_v27 = vmul.f32 %v2932_v34, %v4556_v35  ;;  %2045 = vmatmul.mubr.f32.gmra.mrb[48].mxu0 %v1954_v51 }
 0x378   :  { %2771 = vmatpush3.bf16.msra.mxu0 %v2768_v12  ;;  %v1887_v29 = vmul.f32 %v4155_v7, %v1835_v24  ;;  %2049 = vmatprep.mubr.f32.mxu0 %v1958_v2 }
 0x379   :  { %v2934_v23 = vpop.eup %2933  ;;  %v2772_v17 = vpack.c.bf16 %v1937_v40, %v1936_v54  ;;  %v1886_v41 = vmul.f32 %v4155_v7, %v1834_v27 }
 0x37a   :  { %v2936_v18 = vpop.eup %2935  ;;  %v1939_v5 = vadd.f32 %v4159_v36, %v1887_v29  ;;  %v1837_v9 = vmul.f32 %v2934_v23, %v4557_v63 }
 0x37b   :  { %2773 = vmatprep.subr.bf16.mxu0 %v2772_v17  ;;  %v1938_v38 = vadd.f32 %v4159_v36, %v1886_v41  ;;  %v1836_v62 = vmul.f32 %v2936_v18, %v4558_v57  ;;  %2050 = vmatmul.mubr.f32.gmra.mrb[50].mxu0 %v1957_v49 }
 0x37c   :  { %2775 = vmatpush3.bf16.msra.mxu0 %v2772_v17  ;;  %v1889_v44 = vmul.f32 %v4155_v7, %v1837_v9  ;;  %2683 = vmatprep.mubr.f32.mxu0 %v1944_v60 }
 0x37d   :  { %v2776_v15 = vpack.c.bf16 %v1939_v5, %v1938_v38  ;;  %v1888_v46 = vmul.f32 %v4155_v7, %v1836_v62  ;;  %v1953_v7 = vld [vmem:[%s4434_s6 + $0x58] sm:$0xff] }
 0x37e   :  { %v1941_v52 = vadd.f32 %v4159_v36, %v1889_v44 }
 0x37f   :  { %2777 = vmatprep.subr.bf16.mxu0 %v2776_v15  ;;  %v1940_v4 = vadd.f32 %v4159_v36, %v1888_v46  ;;  %v1956_v36 = vld [vmem:[%s4434_s6 + $0x70] sm:$0xff]  ;;  %s2962_s6 = smov [#allocation2]  }
 0x380   :  { %2779 = vmatpush3.bf16.msra.mxu0 %v2776_v15  ;;  %s2161_s23 = sshll.u32 %s2962_s6, 4  ;;  %s2162_s23 = int_to_ptr.vmem [resolvable:$true] %s2161_s23 }
 0x381   :  { %v2780_v30 = vpack.c.bf16 %v1941_v52, %v1940_v4  ;;  %s2938_s24 = scalar_lea.vmem %s2162_s23, 768  ;;  %p2943_p1 = scmp.lt.s32.totalorder %s2162_s23, %s2162_s23 }
 0x382   :  { %p2939_p0 = scmp.ne.s32.totalorder %s2162_s23, %s2938_s24  ;;  %p2944_p2 = scmp.lt.s32.totalorder %s2938_s24, %s2938_s24 }
 0x383   :  { %2781 = vmatprep.subr.bf16.mxu0 %v2780_v30 }
 0x384   :  { %2783 = vmatpush3.bf16.msra.mxu0 %v2780_v30  ;;  %p2945_p3 = por %p2944_p2, %p2943_p1 }
 0x386   :  { %p2946_p4 = pnand %p2945_p3, %p2939_p0 }
 0x387   :  { %2684 = vmatmul.mubr.f32.vlgmr.msra.gmra.mrb[52].mxu0 %v1947_v19 }
 0x388   :  { %2686 = vmatprep.mubr.f32.mxu0 %v1950_v45 }
 0x38b   :  { %2687 = vmatmul.mubr.f32.gmra.mrb[54].mxu0 %v1953_v7 }
 0x38c   :  { %2689 = vmatprep.mubr.f32.mxu0 %v1956_v36 }
 0x38f   :  { %2690 = vmatmul.mubr.f32.gmra.mrb[56].mxu0 %v1959_v1 }
 0x43a   :  { %v2426_v6 = vpop.f32.mrb[40].mxu0 }
 0x43b   :  { %v2427_v32 = vpop.f32.mrb[41].mxu0 }
 0x43c   :  { %v2428_v58 = vadd.f32 %v2427_v32, %v2426_v6 }
 0x43e   :  { %v2429_v37 = vpop.f32.mrb[42].mxu0 }
 0x43f   :  { %v2430_v21 = vpop.f32.mrb[43].mxu0 }
 0x440   :  { %v2431_v56 = vadd.f32 %v2430_v21, %v2429_v37 }
 0x442   :  { %v2432_v16 = vpop.f32.mrb[44].mxu0 }
 0x443   :  { %v2433_v42 = vpop.f32.mrb[45].mxu0 }
 0x444   :  { %v2434_v28 = vadd.f32 %v2433_v42, %v2432_v16 }
 0x446   :  { %v2435_v8 = vpop.f32.mrb[46].mxu0 }
 0x447   :  { %v2436_v22 = vpop.f32.mrb[47].mxu0 }
 0x448   :  { %v2437_v13 = vadd.f32 %v2436_v22, %v2435_v8 }
 0x44a   :  { %v2438_v20 = vpop.f32.mrb[48].mxu0 }
 0x44b   :  { %v2439_v61 = vpop.f32.mrb[49].mxu0 }
 0x44c   :  { %v2440_v25 = vadd.f32 %v2439_v61, %v2438_v20 }
 0x44e   :  { %v2441_v0 = vpop.f32.mrb[50].mxu0 }
 0x44f   :  { %v2442_v59 = vpop.f32.mrb[51].mxu0 }
 0x450   :  { %v2443_v14 = vadd.f32 %v2442_v59, %v2441_v0 }
 0x45a   :  { %v2685_v43 = vpop.f32.mrb[52].mxu0 }
 0x45b   :  { %v2127_v11 = vadd.f32 %v2685_v43, %v2431_v56  ;;  %v2121_v48 = vpop.f32.mrb[53].mxu0 }
 0x45c   :  { %v2122_v10 = vadd.f32 %v2428_v58, %v2121_v48 }
 0x45d   :  { %2151 = vst.msk [vmem:[#allocation2 + $0x8] sm:$0xff] %vm1212_vm3, %v2127_v11 }
 0x45e   :  { %2150 = vst.msk [vmem:[#allocation2] sm:$0xff] %vm1212_vm3, %v2122_v10  ;;  %v2688_v53 = vpop.f32.mrb[54].mxu0 }
 0x45f   :  { %v2137_v55 = vadd.f32 %v2688_v53, %v2437_v13  ;;  %v2131_v26 = vpop.f32.mrb[55].mxu0 }
 0x460   :  { %v2132_v39 = vadd.f32 %v2434_v28, %v2131_v26 }
 0x461   :  { %2153 = vst.msk [vmem:[#allocation2 + $0x18] sm:$0xff] %vm1212_vm3, %v2137_v55 }
 0x462   :  { %2152 = vst.msk [vmem:[#allocation2 + $0x10] sm:$0xff] %vm1212_vm3, %v2132_v39  ;;  %v2691_v47 = vpop.f32.mrb[56].mxu0 }
 0x463   :  { %v2147_v3 = vadd.f32 %v2691_v47, %v2443_v14  ;;  %v2141_v51 = vpop.f32.mrb[57].mxu0 }
 0x464   :  { %v2142_v33 = vadd.f32 %v2440_v25, %v2141_v51 }
 0x465   :  { %2155 = vst.msk [vmem:[#allocation2 + $0x28] sm:$0xff] %vm1212_vm3, %v2147_v3 }
 0x466   :  { %2154 = vst.msk [vmem:[#allocation2 + $0x20] sm:$0xff] %vm1212_vm3, %v2142_v33 }
 0x467   :  { %2949 = shalt.err (!%p2946_p4)
}
 0x468   :  { %s2950_s26 = scalar_lea.hbm %s4435_s7, 768 }
 0x469   :  { %p2951_p5 = scmp.ne.s32.totalorder %s4435_s7, %s2950_s26  ;;  %p2954_p6 = scmp.lt.u32.totalorder %s2950_s26, %s4435_s7 }
 0x46b   :  { %p2956_p7 = pnand %p2954_p6, %p2951_p5 }
 0x46d   :  { %2959 = shalt.err (!%p2956_p7)
}
 0x46e   :  { %s2963_s8 = smov 128   ;;  %s2964_s2 = smov 8  }
 0x46f   :  { %2167 = dma.vmem_to_hbm [thread:$0]  %s2162_s23, 768, %s4435_s7, [#allocation3], %s2963_s8, %s2963_s8, %s2964_s2  }
 0x470   :  { %2960 = dma.done.wait [#allocation3], 768  }
 0x471   :  { %2961 = vsyncadd [#allocation3], 4294966528 }
 0x472   :  { %2171 = vsyncpa [#allocation3], 1 }

</bundles_post_ra>
